<compile_context>
chip_gen: v5e
topology: v5e:2x2
jax: 0.10.0
libtpu: 0.0.40
codegen_flags: <defaults>
</compile_context>

<pallas_src>
import functools

import jax
import jax.numpy as jnp
from jax import lax
from jax.experimental import pallas as pl
from jax.experimental.pallas import tpu as pltpu

KSIZE = 3  # fused kernel assumes the module defaults kernel_size=3, stride=2 (pad=1)


# ----------------------------- Pallas kernel ------------------------------- #

def _fused_downsample_kernel(xph_ref, w1_ref, b1_ref, w2_ref, b2_ref,
                             out_ref, mid_ref, *, cin, cout, bt, ho, wo):
    """Bt images per step: conv1(s2)+ReLU -> conv2(s1, 2x ch)+ReLU, all in VMEM.

    xph_ref : (bt, 4, Hp2, Wp2, cin) bf16  -- 4 stride-2 phase grids of padded x
    w1_ref  : (9*cin, cin)  bf16           -- conv1 weights, (kh,kw,ci) x co
    b1_ref  : (1, cin)      f32
    w2_ref  : (9*cin, cout) bf16
    b2_ref  : (1, cout)     f32
    out_ref : (bt, ho*wo, cout) f32
    mid_ref : (bt, ho+2, wo+2, cin) bf16 VMEM scratch (conv1 act, 1-px halo)
    """
    m = bt * ho * wo

    # -------- conv1: 3x3 / stride 2 -- 9 accumulating matmuls over phase taps
    acc1 = None
    t = 0
    for kh in range(KSIZE):
        ah, rh = kh // 2, kh % 2
        for kw in range(KSIZE):
            aw, rw = kw // 2, kw % 2
            ph = rh * 2 + rw
            win = xph_ref[:, ph, pl.ds(ah, ho), pl.ds(aw, wo), :]  # (bt,ho,wo,cin)
            part = jnp.dot(win.reshape(m, cin),
                           w1_ref[pl.ds(t * cin, cin), :],
                           preferred_element_type=jnp.float32)
            acc1 = part if acc1 is None else acc1 + part
            t += 1
    h1 = jnp.maximum(acc1 + b1_ref[...], 0.0)                      # (m, cin) f32

    # -------- keep conv1 activation resident in VMEM (bf16, zeroed halo only)
    zrow = jnp.zeros((bt, 1, wo + 2, cin), mid_ref.dtype)
    zcol = jnp.zeros((bt, ho + 2, 1, cin), mid_ref.dtype)
    mid_ref[:, pl.ds(0, 1), :, :] = zrow
    mid_ref[:, pl.ds(ho + 1, 1), :, :] = zrow
    mid_ref[:, :, pl.ds(0, 1), :] = zcol
    mid_ref[:, :, pl.ds(wo + 1, 1), :] = zcol
    mid_ref[:, pl.ds(1, ho), pl.ds(1, wo), :] = (
        h1.astype(mid_ref.dtype).reshape(bt, ho, wo, cin))

    # -------- conv2: 3x3 / stride 1 -- 9 accumulating matmuls on resident act
    acc2 = None
    t = 0
    for kh in range(KSIZE):
        for kw in range(KSIZE):
            win = mid_ref[:, pl.ds(kh, ho), pl.ds(kw, wo), :]       # (bt,ho,wo,cin) bf16
            part = jnp.dot(win.reshape(m, cin),
                           w2_ref[pl.ds(t * cin, cin), :],
                           preferred_element_type=jnp.float32)
            acc2 = part if acc2 is None else acc2 + part
            t += 1
    out = jnp.maximum(acc2 + b2_ref[...], 0.0)
    out_ref[...] = out.reshape(bt, ho * wo, cout).astype(out_ref.dtype)


# ------------------------------- JAX wrapper -------------------------------- #

def downsample_forward(x_nchw, params, *, kernel_size=3, stride=2):
    """Equivalent of DownSample.forward. x: NCHW f32 -> out: NCHW f32."""
    assert kernel_size == 3 and stride == 2, "fused kernel supports module defaults"
    N, C, H, W = x_nchw.shape
    pad = (kernel_size - 1) // 2
    Ho = (H + 2 * pad - kernel_size) // stride + 1
    Wo = (W + 2 * pad - kernel_size) // stride + 1
    C2 = stride * C
    M0 = Ho * Wo

    # NCHW -> NHWC, zero-pad, split into the four stride-2 phase grids, bf16.
    # Pure pad/reshape/transpose/cast; XLA fuses it into one pass over x.
    x = jnp.transpose(x_nchw, (0, 2, 3, 1))
    Hp, Wp = H + 2 * pad, W + 2 * pad
    eh, ew = Hp % 2, Wp % 2
    xpad = jnp.pad(x, ((0, 0), (pad, pad + eh), (pad, pad + ew), (0, 0)))
    Hp2, Wp2 = (Hp + eh) // 2, (Wp + ew) // 2
    xph = xpad.reshape(N, Hp2, 2, Wp2, 2, C)
    xph = jnp.transpose(xph, (0, 2, 4, 1, 3, 5)).reshape(N, 4, Hp2, Wp2, C)
    xph = xph.astype(jnp.bfloat16)

    # PyTorch (Cout, Cin, kh, kw) -> (kh*kw*Cin, Cout), tap-major to match the
    # in-kernel per-tap weight slices.  bf16 for the MXU; biases stay f32.
    w1 = jnp.transpose(params["w1"], (2, 3, 1, 0)).reshape(9 * C, C).astype(jnp.bfloat16)
    w2 = jnp.transpose(params["w2"], (2, 3, 1, 0)).reshape(9 * C, C2).astype(jnp.bfloat16)
    b1 = params["b1"].reshape(1, C).astype(jnp.float32)
    b2 = params["b2"].reshape(1, C2).astype(jnp.float32)

    # Pick Bt (images per grid step): largest divisor of N that keeps the
    # per-step VMEM footprint under a conservative budget and M reasonable.
    in_bytes_img = 4 * Hp2 * Wp2 * C * 2          # bf16 phase-split input
    out_bytes_img = M0 * C2 * 4                   # f32 output block
    mid_bytes_img = (Ho + 2) * (Wo + 2) * C * 2   # bf16 scratch
    acc_bytes_img = M0 * (C + C2) * 4             # f32 matmul accumulators
    budget = 12 << 20
    bt = 1
    for cand in range(1, N + 1):
        if N % cand:
            continue
        step_bytes = cand * (2 * in_bytes_img + 2 * out_bytes_img
                             + mid_bytes_img + acc_bytes_img)
        if cand * M0 <= 1024 and step_bytes <= budget:
            bt = cand
    step_bytes = bt * (2 * in_bytes_img + 2 * out_bytes_img
                       + mid_bytes_img + acc_bytes_img)
    vmem_limit = int(min(max(4 * step_bytes, 16 << 20), 48 << 20))

    kern = functools.partial(_fused_downsample_kernel,
                             cin=C, cout=C2, bt=bt, ho=Ho, wo=Wo)
    out = pl.pallas_call(
        kern,
        out_shape=jax.ShapeDtypeStruct((N, M0, C2), jnp.float32),
        grid_spec=pltpu.PrefetchScalarGridSpec(
            num_scalar_prefetch=0,
            grid=(N // bt,),
            in_specs=[
                pl.BlockSpec((bt, 4, Hp2, Wp2, C), lambda b: (b, 0, 0, 0, 0)),
                pl.BlockSpec((9 * C, C), lambda b: (0, 0)),
                pl.BlockSpec((1, C), lambda b: (0, 0)),
                pl.BlockSpec((9 * C, C2), lambda b: (0, 0)),
                pl.BlockSpec((1, C2), lambda b: (0, 0)),
            ],
            out_specs=pl.BlockSpec((bt, M0, C2), lambda b: (b, 0, 0)),
            scratch_shapes=[pltpu.VMEM((bt, Ho + 2, Wo + 2, C), jnp.bfloat16)],
        ),
        compiler_params=pltpu.CompilerParams(
            dimension_semantics=("parallel",),
            vmem_limit_bytes=vmem_limit),
    )(xph, w1, b1, w2, b2)

    out = out.reshape(N, Ho, Wo, C2)
    return jnp.transpose(out, (0, 3, 1, 2))   # NHWC -> NCHW


def init_params(key, in_channels, kernel_size=3, stride=2):
    k1, k2, k3, k4 = jax.random.split(key, 4)
    fan = in_channels * kernel_size * kernel_size
    lim = 1.0 / jnp.sqrt(fan)
    return {
        "w1": jax.random.uniform(k1, (in_channels, in_channels,
                                      kernel_size, kernel_size),
                                 jnp.float32, -lim, lim),
        "b1": jax.random.uniform(k2, (in_channels,), jnp.float32, -lim, lim),
        "w2": jax.random.uniform(k3, (stride * in_channels, in_channels,
                                      kernel_size, kernel_size),
                                 jnp.float32, -lim, lim),
        "b2": jax.random.uniform(k4, (stride * in_channels,),
                                 jnp.float32, -lim, lim),
    }


# ---------------------------- reference (pure JAX) -------------------------- #

def _ref_conv_relu(x_nhwc, w_oihw, bias, stride):
    w_hwio = jnp.transpose(w_oihw, (2, 3, 1, 0))
    pad = (w_oihw.shape[2] - 1) // 2
    y = lax.conv_general_dilated(
        x_nhwc, w_hwio, window_strides=(stride, stride),
        padding=[(pad, pad), (pad, pad)],
        dimension_numbers=("NHWC", "HWIO", "NHWC"))
    return jnp.maximum(y + bias, 0.0)


def downsample_reference(x_nchw, params):
    x = jnp.transpose(x_nchw, (0, 2, 3, 1))
    out = _ref_conv_relu(x, params["w1"], params["b1"], 2)
    out = _ref_conv_relu(out, params["w2"], params["b2"], 1)
    return jnp.transpose(out, (0, 3, 1, 2))


# ----------------------------------- main ----------------------------------- #

if __name__ == "__main__":
    key = jax.random.PRNGKey(0)
    fwd = jax.jit(downsample_forward)

    # config 1: module-default small shapes (even spatial)
    k_x, k_p, key = jax.random.split(key, 3)
    N, C, H, W = 2, 4, 16, 16
    x = jax.random.normal(k_x, (N, C, H, W), jnp.float32)
    params = init_params(k_p, in_channels=C)
    out = jax.block_until_ready(fwd(x, params))
    ref = jax.block_until_ready(downsample_reference(x, params))
    assert out.shape == (N, 2 * C, (H + 1) // 2, (W + 1) // 2), out.shape
    # bf16 MXU operands with f32 accumulation -> loosened tolerance vs f32 ref
    assert jnp.allclose(out, ref, atol=5e-2, rtol=5e-2), \
        float(jnp.max(jnp.abs(out - ref)))

    # config 2: odd spatial dims, batch 1 (exercises phase padding / bt=1 path)
    k_x2, k_p2, key = jax.random.split(key, 3)
    N2, C2i, H2, W2 = 1, 4, 15, 15
    x2 = jax.random.normal(k_x2, (N2, C2i, H2, W2), jnp.float32)
    params2 = init_params(k_p2, in_channels=C2i)
    out2 = jax.block_until_ready(fwd(x2, params2))
    ref2 = jax.block_until_ready(downsample_reference(x2, params2))
    assert out2.shape == (N2, 2 * C2i, (H2 + 1) // 2, (W2 + 1) // 2), out2.shape
    assert jnp.allclose(out2, ref2, atol=5e-2, rtol=5e-2), \
        float(jnp.max(jnp.abs(out2 - ref2)))

    print("KERNEL_OK")
</pallas_src>

<mosaic_0001>
module attributes {stable_mosaic.version = 11 : i64} {
  func.func @_fused_downsample_kernel(%arg0: i32, %arg1: memref<2x4x9x9x4xbf16, #tpu.memory_space<vmem>>, %arg2: memref<36x4xbf16, #tpu.memory_space<vmem>>, %arg3: memref<1x4xf32, #tpu.memory_space<vmem>>, %arg4: memref<36x8xbf16, #tpu.memory_space<vmem>>, %arg5: memref<1x8xf32, #tpu.memory_space<vmem>>, %arg6: memref<2x64x8xf32, #tpu.memory_space<vmem>>, %arg7: memref<2x10x10x4xbf16, #tpu.memory_space<vmem>>) attributes {dimension_semantics = [#tpu.dimension_semantics<parallel>], iteration_bounds = array<i64: 1>, scalar_prefetch = 0 : i64, scratch_operands = 1 : i64, tpu.core_type = #tpu.core_type<tc>, window_params = [{transform_indices = @transform_0, window_bounds = array<i64: 2, 4, 9, 9, 4>}, {pipeline_mode = #tpu.pipeline_mode<synchronous>, transform_indices = @transform_1, window_bounds = array<i64: 36, 4>}, {pipeline_mode = #tpu.pipeline_mode<synchronous>, transform_indices = @transform_2, window_bounds = array<i64: 1, 4>}, {pipeline_mode = #tpu.pipeline_mode<synchronous>, transform_indices = @transform_3, window_bounds = array<i64: 36, 8>}, {pipeline_mode = #tpu.pipeline_mode<synchronous>, transform_indices = @transform_4, window_bounds = array<i64: 1, 8>}, {transform_indices = @transform_5, window_bounds = array<i64: 2, 64, 8>}]} {
    %c0 = arith.constant 0 : index
    %c0_0 = arith.constant 0 : index
    %c0_1 = arith.constant 0 : index
    %c0_2 = arith.constant 0 : index
    %c0_3 = arith.constant 0 : index
    %0 = vector.load %arg1[%c0, %c0_0, %c0_1, %c0_2, %c0_3] : memref<2x4x9x9x4xbf16, #tpu.memory_space<vmem>>, vector<2x1x8x8x4xbf16>
    %1 = vector.shape_cast %0 : vector<2x1x8x8x4xbf16> to vector<2x8x8x4xbf16>
    %2 = vector.shape_cast %1 : vector<2x8x8x4xbf16> to vector<128x4xbf16>
    %c0_4 = arith.constant 0 : index
    %c0_5 = arith.constant 0 : index
    %3 = vector.load %arg2[%c0_4, %c0_5] : memref<36x4xbf16, #tpu.memory_space<vmem>>, vector<4x4xbf16>
    %cst = arith.constant dense<0.000000e+00> : vector<128x4xf32>
    %4 = tpu.matmul %2, %3, %cst {dimension_numbers = #tpu.dot_dimension_numbers<[1], [0], [0], [1], [0, 0, 1, 1], [], []>} : vector<128x4xbf16>, vector<4x4xbf16>, vector<128x4xf32> -> vector<128x4xf32>
    %c0_6 = arith.constant 0 : index
    %c1 = arith.constant 1 : index
    %c0_7 = arith.constant 0 : index
    %c0_8 = arith.constant 0 : index
    %c0_9 = arith.constant 0 : index
    %5 = vector.load %arg1[%c0_6, %c1, %c0_7, %c0_8, %c0_9] : memref<2x4x9x9x4xbf16, #tpu.memory_space<vmem>>, vector<2x1x8x8x4xbf16>
    %6 = vector.shape_cast %5 : vector<2x1x8x8x4xbf16> to vector<2x8x8x4xbf16>
    %7 = vector.shape_cast %6 : vector<2x8x8x4xbf16> to vector<128x4xbf16>
    %c4 = arith.constant 4 : index
    %c0_10 = arith.constant 0 : index
    %8 = vector.load %arg2[%c4, %c0_10] : memref<36x4xbf16, #tpu.memory_space<vmem>>, vector<4x4xbf16>
    %cst_11 = arith.constant dense<0.000000e+00> : vector<128x4xf32>
    %9 = tpu.matmul %7, %8, %cst_11 {dimension_numbers = #tpu.dot_dimension_numbers<[1], [0], [0], [1], [0, 0, 1, 1], [], []>} : vector<128x4xbf16>, vector<4x4xbf16>, vector<128x4xf32> -> vector<128x4xf32>
    %10 = arith.addf %4, %9 : vector<128x4xf32>
    %c0_12 = arith.constant 0 : index
    %c0_13 = arith.constant 0 : index
    %c0_14 = arith.constant 0 : index
    %c1_15 = arith.constant 1 : index
    %c0_16 = arith.constant 0 : index
    %11 = vector.load %arg1[%c0_12, %c0_13, %c0_14, %c1_15, %c0_16] : memref<2x4x9x9x4xbf16, #tpu.memory_space<vmem>>, vector<2x1x8x8x4xbf16>
    %12 = vector.shape_cast %11 : vector<2x1x8x8x4xbf16> to vector<2x8x8x4xbf16>
    %13 = vector.shape_cast %12 : vector<2x8x8x4xbf16> to vector<128x4xbf16>
    %c8 = arith.constant 8 : index
    %c0_17 = arith.constant 0 : index
    %14 = vector.load %arg2[%c8, %c0_17] : memref<36x4xbf16, #tpu.memory_space<vmem>>, vector<4x4xbf16>
    %cst_18 = arith.constant dense<0.000000e+00> : vector<128x4xf32>
    %15 = tpu.matmul %13, %14, %cst_18 {dimension_numbers = #tpu.dot_dimension_numbers<[1], [0], [0], [1], [0, 0, 1, 1], [], []>} : vector<128x4xbf16>, vector<4x4xbf16>, vector<128x4xf32> -> vector<128x4xf32>
    %16 = arith.addf %10, %15 : vector<128x4xf32>
    %c0_19 = arith.constant 0 : index
    %c2 = arith.constant 2 : index
    %c0_20 = arith.constant 0 : index
    %c0_21 = arith.constant 0 : index
    %c0_22 = arith.constant 0 : index
    %17 = vector.load %arg1[%c0_19, %c2, %c0_20, %c0_21, %c0_22] : memref<2x4x9x9x4xbf16, #tpu.memory_space<vmem>>, vector<2x1x8x8x4xbf16>
    %18 = vector.shape_cast %17 : vector<2x1x8x8x4xbf16> to vector<2x8x8x4xbf16>
    %19 = vector.shape_cast %18 : vector<2x8x8x4xbf16> to vector<128x4xbf16>
    %c12 = arith.constant 12 : index
    %c0_23 = arith.constant 0 : index
    %20 = vector.load %arg2[%c12, %c0_23] : memref<36x4xbf16, #tpu.memory_space<vmem>>, vector<4x4xbf16>
    %cst_24 = arith.constant dense<0.000000e+00> : vector<128x4xf32>
    %21 = tpu.matmul %19, %20, %cst_24 {dimension_numbers = #tpu.dot_dimension_numbers<[1], [0], [0], [1], [0, 0, 1, 1], [], []>} : vector<128x4xbf16>, vector<4x4xbf16>, vector<128x4xf32> -> vector<128x4xf32>
    %22 = arith.addf %16, %21 : vector<128x4xf32>
    %c0_25 = arith.constant 0 : index
    %c3 = arith.constant 3 : index
    %c0_26 = arith.constant 0 : index
    %c0_27 = arith.constant 0 : index
    %c0_28 = arith.constant 0 : index
    %23 = vector.load %arg1[%c0_25, %c3, %c0_26, %c0_27, %c0_28] : memref<2x4x9x9x4xbf16, #tpu.memory_space<vmem>>, vector<2x1x8x8x4xbf16>
    %24 = vector.shape_cast %23 : vector<2x1x8x8x4xbf16> to vector<2x8x8x4xbf16>
    %25 = vector.shape_cast %24 : vector<2x8x8x4xbf16> to vector<128x4xbf16>
    %c16 = arith.constant 16 : index
    %c0_29 = arith.constant 0 : index
    %26 = vector.load %arg2[%c16, %c0_29] : memref<36x4xbf16, #tpu.memory_space<vmem>>, vector<4x4xbf16>
    %cst_30 = arith.constant dense<0.000000e+00> : vector<128x4xf32>
    %27 = tpu.matmul %25, %26, %cst_30 {dimension_numbers = #tpu.dot_dimension_numbers<[1], [0], [0], [1], [0, 0, 1, 1], [], []>} : vector<128x4xbf16>, vector<4x4xbf16>, vector<128x4xf32> -> vector<128x4xf32>
    %28 = arith.addf %22, %27 : vector<128x4xf32>
    %c0_31 = arith.constant 0 : index
    %c2_32 = arith.constant 2 : index
    %c0_33 = arith.constant 0 : index
    %c1_34 = arith.constant 1 : index
    %c0_35 = arith.constant 0 : index
    %29 = vector.load %arg1[%c0_31, %c2_32, %c0_33, %c1_34, %c0_35] : memref<2x4x9x9x4xbf16, #tpu.memory_space<vmem>>, vector<2x1x8x8x4xbf16>
    %30 = vector.shape_cast %29 : vector<2x1x8x8x4xbf16> to vector<2x8x8x4xbf16>
    %31 = vector.shape_cast %30 : vector<2x8x8x4xbf16> to vector<128x4xbf16>
    %c20 = arith.constant 20 : index
    %c0_36 = arith.constant 0 : index
    %32 = vector.load %arg2[%c20, %c0_36] : memref<36x4xbf16, #tpu.memory_space<vmem>>, vector<4x4xbf16>
    %cst_37 = arith.constant dense<0.000000e+00> : vector<128x4xf32>
    %33 = tpu.matmul %31, %32, %cst_37 {dimension_numbers = #tpu.dot_dimension_numbers<[1], [0], [0], [1], [0, 0, 1, 1], [], []>} : vector<128x4xbf16>, vector<4x4xbf16>, vector<128x4xf32> -> vector<128x4xf32>
    %34 = arith.addf %28, %33 : vector<128x4xf32>
    %c0_38 = arith.constant 0 : index
    %c0_39 = arith.constant 0 : index
    %c1_40 = arith.constant 1 : index
    %c0_41 = arith.constant 0 : index
    %c0_42 = arith.constant 0 : index
    %35 = vector.load %arg1[%c0_38, %c0_39, %c1_40, %c0_41, %c0_42] : memref<2x4x9x9x4xbf16, #tpu.memory_space<vmem>>, vector<2x1x8x8x4xbf16>
    %36 = vector.shape_cast %35 : vector<2x1x8x8x4xbf16> to vector<2x8x8x4xbf16>
    %37 = vector.shape_cast %36 : vector<2x8x8x4xbf16> to vector<128x4xbf16>
    %c24 = arith.constant 24 : index
    %c0_43 = arith.constant 0 : index
    %38 = vector.load %arg2[%c24, %c0_43] : memref<36x4xbf16, #tpu.memory_space<vmem>>, vector<4x4xbf16>
    %cst_44 = arith.constant dense<0.000000e+00> : vector<128x4xf32>
    %39 = tpu.matmul %37, %38, %cst_44 {dimension_numbers = #tpu.dot_dimension_numbers<[1], [0], [0], [1], [0, 0, 1, 1], [], []>} : vector<128x4xbf16>, vector<4x4xbf16>, vector<128x4xf32> -> vector<128x4xf32>
    %40 = arith.addf %34, %39 : vector<128x4xf32>
    %c0_45 = arith.constant 0 : index
    %c1_46 = arith.constant 1 : index
    %c1_47 = arith.constant 1 : index
    %c0_48 = arith.constant 0 : index
    %c0_49 = arith.constant 0 : index
    %41 = vector.load %arg1[%c0_45, %c1_46, %c1_47, %c0_48, %c0_49] : memref<2x4x9x9x4xbf16, #tpu.memory_space<vmem>>, vector<2x1x8x8x4xbf16>
    %42 = vector.shape_cast %41 : vector<2x1x8x8x4xbf16> to vector<2x8x8x4xbf16>
    %43 = vector.shape_cast %42 : vector<2x8x8x4xbf16> to vector<128x4xbf16>
    %c28 = arith.constant 28 : index
    %c0_50 = arith.constant 0 : index
    %44 = vector.load %arg2[%c28, %c0_50] : memref<36x4xbf16, #tpu.memory_space<vmem>>, vector<4x4xbf16>
    %cst_51 = arith.constant dense<0.000000e+00> : vector<128x4xf32>
    %45 = tpu.matmul %43, %44, %cst_51 {dimension_numbers = #tpu.dot_dimension_numbers<[1], [0], [0], [1], [0, 0, 1, 1], [], []>} : vector<128x4xbf16>, vector<4x4xbf16>, vector<128x4xf32> -> vector<128x4xf32>
    %46 = arith.addf %40, %45 : vector<128x4xf32>
    %c0_52 = arith.constant 0 : index
    %c0_53 = arith.constant 0 : index
    %c1_54 = arith.constant 1 : index
    %c1_55 = arith.constant 1 : index
    %c0_56 = arith.constant 0 : index
    %47 = vector.load %arg1[%c0_52, %c0_53, %c1_54, %c1_55, %c0_56] : memref<2x4x9x9x4xbf16, #tpu.memory_space<vmem>>, vector<2x1x8x8x4xbf16>
    %48 = vector.shape_cast %47 : vector<2x1x8x8x4xbf16> to vector<2x8x8x4xbf16>
    %49 = vector.shape_cast %48 : vector<2x8x8x4xbf16> to vector<128x4xbf16>
    %c32 = arith.constant 32 : index
    %c0_57 = arith.constant 0 : index
    %50 = vector.load %arg2[%c32, %c0_57] : memref<36x4xbf16, #tpu.memory_space<vmem>>, vector<4x4xbf16>
    %cst_58 = arith.constant dense<0.000000e+00> : vector<128x4xf32>
    %51 = tpu.matmul %49, %50, %cst_58 {dimension_numbers = #tpu.dot_dimension_numbers<[1], [0], [0], [1], [0, 0, 1, 1], [], []>} : vector<128x4xbf16>, vector<4x4xbf16>, vector<128x4xf32> -> vector<128x4xf32>
    %52 = arith.addf %46, %51 : vector<128x4xf32>
    %c0_59 = arith.constant 0 : index
    %c0_60 = arith.constant 0 : index
    %53 = vector.load %arg3[%c0_59, %c0_60] : memref<1x4xf32, #tpu.memory_space<vmem>>, vector<1x4xf32>
    %54 = vector.broadcast %53 : vector<1x4xf32> to vector<128x4xf32>
    %55 = arith.addf %52, %54 : vector<128x4xf32>
    %cst_61 = arith.constant 0.000000e+00 : f32
    %56 = vector.broadcast %cst_61 : f32 to vector<128x4xf32>
    %57 = arith.maximumf %55, %56 : vector<128x4xf32>
    %cst_62 = arith.constant 0.000000e+00 : bf16
    %58 = vector.broadcast %cst_62 : bf16 to vector<2x1x10x4xbf16>
    %cst_63 = arith.constant 0.000000e+00 : bf16
    %59 = vector.broadcast %cst_63 : bf16 to vector<2x10x1x4xbf16>
    %c0_64 = arith.constant 0 : index
    %c0_65 = arith.constant 0 : index
    %c0_66 = arith.constant 0 : index
    %c0_67 = arith.constant 0 : index
    %60 = vector.load %arg7[%c0_64, %c0_65, %c0_66, %c0_67] : memref<2x10x10x4xbf16, #tpu.memory_space<vmem>>, vector<2x1x10x4xbf16>
    tpu.vector_store %arg7[%c0_64, %c0_65, %c0_66, %c0_67], %58 {strides = array<i32>} : memref<2x10x10x4xbf16, #tpu.memory_space<vmem>>, vector<2x1x10x4xbf16>,
    %c0_68 = arith.constant 0 : index
    %c9 = arith.constant 9 : index
    %c0_69 = arith.constant 0 : index
    %c0_70 = arith.constant 0 : index
    %61 = vector.load %arg7[%c0_68, %c9, %c0_69, %c0_70] : memref<2x10x10x4xbf16, #tpu.memory_space<vmem>>, vector<2x1x10x4xbf16>
    tpu.vector_store %arg7[%c0_68, %c9, %c0_69, %c0_70], %58 {strides = array<i32>} : memref<2x10x10x4xbf16, #tpu.memory_space<vmem>>, vector<2x1x10x4xbf16>,
    %c0_71 = arith.constant 0 : index
    %c0_72 = arith.constant 0 : index
    %c0_73 = arith.constant 0 : index
    %c0_74 = arith.constant 0 : index
    %62 = vector.load %arg7[%c0_71, %c0_72, %c0_73, %c0_74] : memref<2x10x10x4xbf16, #tpu.memory_space<vmem>>, vector<2x10x1x4xbf16>
    tpu.vector_store %arg7[%c0_71, %c0_72, %c0_73, %c0_74], %59 {strides = array<i32>} : memref<2x10x10x4xbf16, #tpu.memory_space<vmem>>, vector<2x10x1x4xbf16>,
    %c0_75 = arith.constant 0 : index
    %c0_76 = arith.constant 0 : index
    %c9_77 = arith.constant 9 : index
    %c0_78 = arith.constant 0 : index
    %63 = vector.load %arg7[%c0_75, %c0_76, %c9_77, %c0_78] : memref<2x10x10x4xbf16, #tpu.memory_space<vmem>>, vector<2x10x1x4xbf16>
    tpu.vector_store %arg7[%c0_75, %c0_76, %c9_77, %c0_78], %59 {strides = array<i32>} : memref<2x10x10x4xbf16, #tpu.memory_space<vmem>>, vector<2x10x1x4xbf16>,
    %64 = arith.truncf %57 : vector<128x4xf32> to vector<128x4xbf16>
    %65 = vector.shape_cast %64 : vector<128x4xbf16> to vector<2x8x8x4xbf16>
    %c0_79 = arith.constant 0 : index
    %c1_80 = arith.constant 1 : index
    %c1_81 = arith.constant 1 : index
    %c0_82 = arith.constant 0 : index
    %66 = vector.load %arg7[%c0_79, %c1_80, %c1_81, %c0_82] : memref<2x10x10x4xbf16, #tpu.memory_space<vmem>>, vector<2x8x8x4xbf16>
    tpu.vector_store %arg7[%c0_79, %c1_80, %c1_81, %c0_82], %65 {strides = array<i32>} : memref<2x10x10x4xbf16, #tpu.memory_space<vmem>>, vector<2x8x8x4xbf16>,
    %c0_83 = arith.constant 0 : index
    %c0_84 = arith.constant 0 : index
    %c0_85 = arith.constant 0 : index
    %c0_86 = arith.constant 0 : index
    %67 = vector.load %arg7[%c0_83, %c0_84, %c0_85, %c0_86] : memref<2x10x10x4xbf16, #tpu.memory_space<vmem>>, vector<2x8x8x4xbf16>
    %68 = vector.shape_cast %67 : vector<2x8x8x4xbf16> to vector<128x4xbf16>
    %c0_87 = arith.constant 0 : index
    %c0_88 = arith.constant 0 : index
    %69 = vector.load %arg4[%c0_87, %c0_88] : memref<36x8xbf16, #tpu.memory_space<vmem>>, vector<4x8xbf16>
    %cst_89 = arith.constant dense<0.000000e+00> : vector<128x8xf32>
    %70 = tpu.matmul %68, %69, %cst_89 {dimension_numbers = #tpu.dot_dimension_numbers<[1], [0], [0], [1], [0, 0, 1, 1], [], []>} : vector<128x4xbf16>, vector<4x8xbf16>, vector<128x8xf32> -> vector<128x8xf32>
    %c0_90 = arith.constant 0 : index
    %c0_91 = arith.constant 0 : index
    %c1_92 = arith.constant 1 : index
    %c0_93 = arith.constant 0 : index
    %71 = vector.load %arg7[%c0_90, %c0_91, %c1_92, %c0_93] : memref<2x10x10x4xbf16, #tpu.memory_space<vmem>>, vector<2x8x8x4xbf16>
    %72 = vector.shape_cast %71 : vector<2x8x8x4xbf16> to vector<128x4xbf16>
    %c4_94 = arith.constant 4 : index
    %c0_95 = arith.constant 0 : index
    %73 = vector.load %arg4[%c4_94, %c0_95] : memref<36x8xbf16, #tpu.memory_space<vmem>>, vector<4x8xbf16>
    %cst_96 = arith.constant dense<0.000000e+00> : vector<128x8xf32>
    %74 = tpu.matmul %72, %73, %cst_96 {dimension_numbers = #tpu.dot_dimension_numbers<[1], [0], [0], [1], [0, 0, 1, 1], [], []>} : vector<128x4xbf16>, vector<4x8xbf16>, vector<128x8xf32> -> vector<128x8xf32>
    %75 = arith.addf %70, %74 : vector<128x8xf32>
    %c0_97 = arith.constant 0 : index
    %c0_98 = arith.constant 0 : index
    %c2_99 = arith.constant 2 : index
    %c0_100 = arith.constant 0 : index
    %76 = vector.load %arg7[%c0_97, %c0_98, %c2_99, %c0_100] : memref<2x10x10x4xbf16, #tpu.memory_space<vmem>>, vector<2x8x8x4xbf16>
    %77 = vector.shape_cast %76 : vector<2x8x8x4xbf16> to vector<128x4xbf16>
    %c8_101 = arith.constant 8 : index
    %c0_102 = arith.constant 0 : index
    %78 = vector.load %arg4[%c8_101, %c0_102] : memref<36x8xbf16, #tpu.memory_space<vmem>>, vector<4x8xbf16>
    %cst_103 = arith.constant dense<0.000000e+00> : vector<128x8xf32>
    %79 = tpu.matmul %77, %78, %cst_103 {dimension_numbers = #tpu.dot_dimension_numbers<[1], [0], [0], [1], [0, 0, 1, 1], [], []>} : vector<128x4xbf16>, vector<4x8xbf16>, vector<128x8xf32> -> vector<128x8xf32>
    %80 = arith.addf %75, %79 : vector<128x8xf32>
    %c0_104 = arith.constant 0 : index
    %c1_105 = arith.constant 1 : index
    %c0_106 = arith.constant 0 : index
    %c0_107 = arith.constant 0 : index
    %81 = vector.load %arg7[%c0_104, %c1_105, %c0_106, %c0_107] : memref<2x10x10x4xbf16, #tpu.memory_space<vmem>>, vector<2x8x8x4xbf16>
    %82 = vector.shape_cast %81 : vector<2x8x8x4xbf16> to vector<128x4xbf16>
    %c12_108 = arith.constant 12 : index
    %c0_109 = arith.constant 0 : index
    %83 = vector.load %arg4[%c12_108, %c0_109] : memref<36x8xbf16, #tpu.memory_space<vmem>>, vector<4x8xbf16>
    %cst_110 = arith.constant dense<0.000000e+00> : vector<128x8xf32>
    %84 = tpu.matmul %82, %83, %cst_110 {dimension_numbers = #tpu.dot_dimension_numbers<[1], [0], [0], [1], [0, 0, 1, 1], [], []>} : vector<128x4xbf16>, vector<4x8xbf16>, vector<128x8xf32> -> vector<128x8xf32>
    %85 = arith.addf %80, %84 : vector<128x8xf32>
    %c0_111 = arith.constant 0 : index
    %c1_112 = arith.constant 1 : index
    %c1_113 = arith.constant 1 : index
    %c0_114 = arith.constant 0 : index
    %86 = vector.load %arg7[%c0_111, %c1_112, %c1_113, %c0_114] : memref<2x10x10x4xbf16, #tpu.memory_space<vmem>>, vector<2x8x8x4xbf16>
    %87 = vector.shape_cast %86 : vector<2x8x8x4xbf16> to vector<128x4xbf16>
    %c16_115 = arith.constant 16 : index
    %c0_116 = arith.constant 0 : index
    %88 = vector.load %arg4[%c16_115, %c0_116] : memref<36x8xbf16, #tpu.memory_space<vmem>>, vector<4x8xbf16>
    %cst_117 = arith.constant dense<0.000000e+00> : vector<128x8xf32>
    %89 = tpu.matmul %87, %88, %cst_117 {dimension_numbers = #tpu.dot_dimension_numbers<[1], [0], [0], [1], [0, 0, 1, 1], [], []>} : vector<128x4xbf16>, vector<4x8xbf16>, vector<128x8xf32> -> vector<128x8xf32>
    %90 = arith.addf %85, %89 : vector<128x8xf32>
    %c0_118 = arith.constant 0 : index
    %c1_119 = arith.constant 1 : index
    %c2_120 = arith.constant 2 : index
    %c0_121 = arith.constant 0 : index
    %91 = vector.load %arg7[%c0_118, %c1_119, %c2_120, %c0_121] : memref<2x10x10x4xbf16, #tpu.memory_space<vmem>>, vector<2x8x8x4xbf16>
    %92 = vector.shape_cast %91 : vector<2x8x8x4xbf16> to vector<128x4xbf16>
    %c20_122 = arith.constant 20 : index
    %c0_123 = arith.constant 0 : index
    %93 = vector.load %arg4[%c20_122, %c0_123] : memref<36x8xbf16, #tpu.memory_space<vmem>>, vector<4x8xbf16>
    %cst_124 = arith.constant dense<0.000000e+00> : vector<128x8xf32>
    %94 = tpu.matmul %92, %93, %cst_124 {dimension_numbers = #tpu.dot_dimension_numbers<[1], [0], [0], [1], [0, 0, 1, 1], [], []>} : vector<128x4xbf16>, vector<4x8xbf16>, vector<128x8xf32> -> vector<128x8xf32>
    %95 = arith.addf %90, %94 : vector<128x8xf32>
    %c0_125 = arith.constant 0 : index
    %c2_126 = arith.constant 2 : index
    %c0_127 = arith.constant 0 : index
    %c0_128 = arith.constant 0 : index
    %96 = vector.load %arg7[%c0_125, %c2_126, %c0_127, %c0_128] : memref<2x10x10x4xbf16, #tpu.memory_space<vmem>>, vector<2x8x8x4xbf16>
    %97 = vector.shape_cast %96 : vector<2x8x8x4xbf16> to vector<128x4xbf16>
    %c24_129 = arith.constant 24 : index
    %c0_130 = arith.constant 0 : index
    %98 = vector.load %arg4[%c24_129, %c0_130] : memref<36x8xbf16, #tpu.memory_space<vmem>>, vector<4x8xbf16>
    %cst_131 = arith.constant dense<0.000000e+00> : vector<128x8xf32>
    %99 = tpu.matmul %97, %98, %cst_131 {dimension_numbers = #tpu.dot_dimension_numbers<[1], [0], [0], [1], [0, 0, 1, 1], [], []>} : vector<128x4xbf16>, vector<4x8xbf16>, vector<128x8xf32> -> vector<128x8xf32>
    %100 = arith.addf %95, %99 : vector<128x8xf32>
    %c0_132 = arith.constant 0 : index
    %c2_133 = arith.constant 2 : index
    %c1_134 = arith.constant 1 : index
    %c0_135 = arith.constant 0 : index
    %101 = vector.load %arg7[%c0_132, %c2_133, %c1_134, %c0_135] : memref<2x10x10x4xbf16, #tpu.memory_space<vmem>>, vector<2x8x8x4xbf16>
    %102 = vector.shape_cast %101 : vector<2x8x8x4xbf16> to vector<128x4xbf16>
    %c28_136 = arith.constant 28 : index
    %c0_137 = arith.constant 0 : index
    %103 = vector.load %arg4[%c28_136, %c0_137] : memref<36x8xbf16, #tpu.memory_space<vmem>>, vector<4x8xbf16>
    %cst_138 = arith.constant dense<0.000000e+00> : vector<128x8xf32>
    %104 = tpu.matmul %102, %103, %cst_138 {dimension_numbers = #tpu.dot_dimension_numbers<[1], [0], [0], [1], [0, 0, 1, 1], [], []>} : vector<128x4xbf16>, vector<4x8xbf16>, vector<128x8xf32> -> vector<128x8xf32>
    %105 = arith.addf %100, %104 : vector<128x8xf32>
    %c0_139 = arith.constant 0 : index
    %c2_140 = arith.constant 2 : index
    %c2_141 = arith.constant 2 : index
    %c0_142 = arith.constant 0 : index
    %106 = vector.load %arg7[%c0_139, %c2_140, %c2_141, %c0_142] : memref<2x10x10x4xbf16, #tpu.memory_space<vmem>>, vector<2x8x8x4xbf16>
    %107 = vector.shape_cast %106 : vector<2x8x8x4xbf16> to vector<128x4xbf16>
    %c32_143 = arith.constant 32 : index
    %c0_144 = arith.constant 0 : index
    %108 = vector.load %arg4[%c32_143, %c0_144] : memref<36x8xbf16, #tpu.memory_space<vmem>>, vector<4x8xbf16>
    %cst_145 = arith.constant dense<0.000000e+00> : vector<128x8xf32>
    %109 = tpu.matmul %107, %108, %cst_145 {dimension_numbers = #tpu.dot_dimension_numbers<[1], [0], [0], [1], [0, 0, 1, 1], [], []>} : vector<128x4xbf16>, vector<4x8xbf16>, vector<128x8xf32> -> vector<128x8xf32>
    %110 = arith.addf %105, %109 : vector<128x8xf32>
    %c0_146 = arith.constant 0 : index
    %c0_147 = arith.constant 0 : index
    %111 = vector.load %arg5[%c0_146, %c0_147] : memref<1x8xf32, #tpu.memory_space<vmem>>, vector<1x8xf32>
    %112 = vector.broadcast %111 : vector<1x8xf32> to vector<128x8xf32>
    %113 = arith.addf %110, %112 : vector<128x8xf32>
    %cst_148 = arith.constant 0.000000e+00 : f32
    %114 = vector.broadcast %cst_148 : f32 to vector<128x8xf32>
    %115 = arith.maximumf %113, %114 : vector<128x8xf32>
    %116 = vector.shape_cast %115 : vector<128x8xf32> to vector<2x64x8xf32>
    %c0_149 = arith.constant 0 : index
    %c0_150 = arith.constant 0 : index
    %c0_151 = arith.constant 0 : index
    %117 = vector.load %arg6[%c0_149, %c0_150, %c0_151] : memref<2x64x8xf32, #tpu.memory_space<vmem>>, vector<2x64x8xf32>
    tpu.vector_store %arg6[%c0_149, %c0_150, %c0_151], %116 {strides = array<i32>} : memref<2x64x8xf32, #tpu.memory_space<vmem>>, vector<2x64x8xf32>,
    return
  }
  func.func @transform_0(%arg0: i32) -> (i32, i32, i32, i32, i32) {
    %c0_i32 = arith.constant 0 : i32
    %c0_i32_0 = arith.constant 0 : i32
    %c0_i32_1 = arith.constant 0 : i32
    %c0_i32_2 = arith.constant 0 : i32
    %c0_i32_3 = arith.constant 0 : i32
    return %arg0, %c0_i32, %c0_i32_0, %c0_i32_1, %c0_i32_2 : i32, i32, i32, i32, i32
  }
  func.func @transform_1(%arg0: i32) -> (i32, i32) {
    %c0_i32 = arith.constant 0 : i32
    %c0_i32_0 = arith.constant 0 : i32
    %c0_i32_1 = arith.constant 0 : i32
    return %c0_i32, %c0_i32_0 : i32, i32
  }
  func.func @transform_2(%arg0: i32) -> (i32, i32) {
    %c0_i32 = arith.constant 0 : i32
    %c0_i32_0 = arith.constant 0 : i32
    %c0_i32_1 = arith.constant 0 : i32
    return %c0_i32, %c0_i32_0 : i32, i32
  }
  func.func @transform_3(%arg0: i32) -> (i32, i32) {
    %c0_i32 = arith.constant 0 : i32
    %c0_i32_0 = arith.constant 0 : i32
    %c0_i32_1 = arith.constant 0 : i32
    return %c0_i32, %c0_i32_0 : i32, i32
  }
  func.func @transform_4(%arg0: i32) -> (i32, i32) {
    %c0_i32 = arith.constant 0 : i32
    %c0_i32_0 = arith.constant 0 : i32
    %c0_i32_1 = arith.constant 0 : i32
    return %c0_i32, %c0_i32_0 : i32, i32
  }
  func.func @transform_5(%arg0: i32) -> (i32, i32, i32) {
    %c0_i32 = arith.constant 0 : i32
    %c0_i32_0 = arith.constant 0 : i32
    %c0_i32_1 = arith.constant 0 : i32
    return %arg0, %c0_i32, %c0_i32_0 : i32, i32, i32
  }
}

</mosaic_0001>

<bundles_post_ra>
// kernel: downsample_forward.1
= control target key start
LH: loop header
LB: loop body
LE: loop exit
PB: predicated region body
PF: predicated region fallthrough
CT: control target
= control target key end

     0   :  { %vm125_vm0 = vcmask 1041408   ;;  %vm100_vm1 = vcmask 31744   ;;  %vm326_vm2 = vsmask.f32 3328  ;;  %vm327_vm3 = vsmask.f32 7440  ;;  %s7383_s1 = inlined_call_operand.vmem [shape: bf16[36,4], index: 1, kind: input, shape index: {}]   ;;  %s7384_s0 = inlined_call_operand.vmem [shape: bf16[2,4,9,9,4], index: 0, kind: input, shape index: {}]   ;;  %s7385_s2 = inlined_call_operand.vmem [shape: f32[1,4], index: 2, kind: input, shape index: {}]   ;;  %s7386_s3 = inlined_call_operand.vmem [shape: bf16[36,8], index: 3, kind: input, shape index: {}]   ;;  %s7387_s4 = inlined_call_operand.vmem [shape: f32[1,8], index: 4, kind: input, shape index: {}]   ;;  %s7388_s5 = inlined_call_operand.vmem [shape: f32[2,64,8], index: 5, kind: output, shape index: {}]  }
   0x1   :  { %v37_v0 = vld [vmem:[%s7383_s1] sm:$0x3]  ;;  %v5385_v2 = vld [vmem:[%s7384_s0 + $0x124] sm:$0xf0]  ;;  %v55_v5 = vld [vmem:[%s7383_s1] sm:$0xc] }
   0x2   :  { %v4831_v1 = vld [vmem:[%s7384_s0 + $0x120] sm:$0xf]  ;;  %v243_v3 = vsel %vm125_vm0, %v37_v0, 0  ;;  %v97_v6 = vunpack.c.l.b16 %v55_v5  ;;  %v4791_v7 = vld [vmem:[%s7384_s0 + $0x168] sm:$0xf]  ;;  %vm5667_vm4 = vmor %vm326_vm2, %vm327_vm3  ;;  %vm2066_vm5 = vcmask 24576  }
   0x3   :  { %v4832_v4 = vor.u32 %v5385_v2, %v4831_v1  ;;  %5454 = vmatpush.bf16.msra.mxu3 %v243_v3  ;;  %252 = vmatpush.bf16.msra.mxu1 %v243_v3  ;;  %v5393_v8 = vld [vmem:[%s7384_s0 + $0x16c] sm:$0xf0]  ;;  %v4815_v9 = vld [vmem:[%s7384_s0] sm:$0xf]  ;;  %v553_v11 = vld [vmem:[%s7383_s1 + $0x4] sm:$0x3] }
   0x4   :  { %v98_v10 = vpack.c.b16 %v97_v6, %v97_v6  ;;  %v5381_v12 = vld [vmem:[%s7384_s0 + $0x4] sm:$0xf0]  ;;  %v687_v13 = vld [vmem:[%s7383_s1 + $0x4] sm:$0xc]  ;;  %v5389_v15 = vld [vmem:[%s7384_s0 + $0x4c] sm:$0xf0]  ;;  %v4792_v24 = vor.u32 %v5393_v8, %v4791_v7 }
   0x5   :  { %v4775_v14 = vld [vmem:[%s7384_s0 + $0x48] sm:$0xf]  ;;  %v4816_v16 = vor.u32 %v5381_v12, %v4815_v9  ;;  %v729_v17 = vunpack.c.l.b16 %v687_v13  ;;  %v603_v20 = vsel %vm125_vm0, %v553_v11, 0  ;;  %v4835_v28 = vld [vmem:[%s7384_s0 + $0x130] sm:$0xf]  ;;  %vm2064_vm9 = vcmask 27648  }
   0x6   :  { %4849 = vmatmul.msk.bf16.vlgmr.msra.gmra.mxu3 %vm100_vm1, %v4832_v4  ;;  %v841_v18 = vld [vmem:[%s7383_s1 + $0x8] sm:$0x3]  ;;  %v99_v19 = vrot.slane %v98_v10, 2  ;;  %v4776_v25 = vor.u32 %v5389_v15, %v4775_v14  ;;  %v5386_v29 = vld [vmem:[%s7384_s0 + $0x134] sm:$0xf0]  ;;  %vm3001_vm12 = vcmask 1042432  }
   0x7   :  { %4845 = vmatmul.msk.bf16.vlgmr.msra.gmra.mxu1 %vm100_vm1, %v4816_v16  ;;  %v730_v21 = vpack.c.b16 %v729_v17, %v729_v17  ;;  %v907_v22 = vsel %vm125_vm0, %v841_v18, 0  ;;  %v4819_v30 = vld [vmem:[%s7384_s0 + $0x10] sm:$0xf]  ;;  %v5382_v31 = vld [vmem:[%s7384_s0 + $0x14] sm:$0xf0]  ;;  %v4836_v32 = vor.u32 %v5386_v29, %v4835_v28  ;;  %vm3002_vm13 = vcmask 1046532  }
   0x8   :  { %v127_v23 = vsel %vm125_vm0, %v99_v19, 0  ;;  %v4820_v33 = vor.u32 %v5382_v31, %v4819_v30  ;;  %v4795_v34 = vld [vmem:[%s7384_s0 + $0x178] sm:$0xf]  ;;  %v5394_v35 = vld [vmem:[%s7384_s0 + $0x17c] sm:$0xf0]  ;;  %vm6480_vm14 = vmor %vm3001_vm12, %vm3002_vm13  ;;  %vm4736_vm15 = vcmask 64512  }
   0x9   :  { %5453 = vmatpush.bf16.msra.mxu2 %v127_v23  ;;  %136 = vmatpush.bf16.msra.mxu0 %v127_v23  ;;  %v731_v26 = vrot.slane %v730_v21, 2  ;;  %v4779_v36 = vld [vmem:[%s7384_s0 + $0x58] sm:$0xf]  ;;  %v5390_v37 = vld [vmem:[%s7384_s0 + $0x5c] sm:$0xf0]  ;;  %v4796_v38 = vor.u32 %v5394_v35, %v4795_v34 }
   0xa   :  { %v4780_v39 = vor.u32 %v5390_v37, %v4779_v36  ;;  %v4839_v40 = vld [vmem:[%s7384_s0 + $0x140] sm:$0xf]  ;;  %v5387_v41 = vld [vmem:[%s7384_s0 + $0x144] sm:$0xf0]  ;;  %v5395_v47 = vld [vmem:[%s7384_s0 + $0x18c] sm:$0xf0] }
   0xb   :  { %v757_v27 = vsel %vm125_vm0, %v731_v26, 0  ;;  %v4823_v42 = vld [vmem:[%s7384_s0 + $0x20] sm:$0xf]  ;;  %v5383_v43 = vld [vmem:[%s7384_s0 + $0x24] sm:$0xf0]  ;;  %v4840_v44 = vor.u32 %v5387_v41, %v4839_v40 }
   0xc   :  { %4809 = vmatmul.msk.bf16.vlgmr.msra.gmra.mxu2 %vm100_vm1, %v4792_v24  ;;  %4805 = vmatmul.msk.bf16.vlgmr.msra.gmra.mxu0 %vm100_vm1, %v4776_v25  ;;  %v4824_v45 = vor.u32 %v5383_v43, %v4823_v42  ;;  %v4799_v46 = vld [vmem:[%s7384_s0 + $0x188] sm:$0xf]  ;;  %v5391_v49 = vld [vmem:[%s7384_s0 + $0x6c] sm:$0xf0]  ;;  %v294_v50 = vld [vmem:[%s7384_s0] sm:$0xf] }
   0xd   :  { %612 = vmatpush.bf16.msrb.mxu2 %v603_v20  ;;  %916 = vmatpush.bf16.msrb.mxu0 %v907_v22  ;;  %v4783_v48 = vld [vmem:[%s7384_s0 + $0x68] sm:$0xf]  ;;  %v4800_v51 = vor.u32 %v5395_v47, %v4799_v46  ;;  %v4843_v54 = vld [vmem:[%s7384_s0 + $0x150] sm:$0xf]  ;;  %v5388_v55 = vld [vmem:[%s7384_s0 + $0x154] sm:$0xf0] }
   0xe   :  { %766 = vmatpush.bf16.msrb.mxu3 %v757_v27  ;;  %v4784_v52 = vor.u32 %v5391_v49, %v4783_v48  ;;  %v296_v53 = vld [vmem:[%s7384_s0 + $0x8] sm:$0xf]  ;;  %v330_v56 = vshrl.u32 %v294_v50, 16  ;;  %v4973_v57 = vld [vmem:[%s7384_s0 + $0x90] sm:$0xf]  ;;  %v333_v58 = vshll.u32 %v294_v50, 16  ;;  %v4844_v10 = vor.u32 %v5388_v55, %v4843_v54 }
   0xf   :  { %v344_v59 = vshrl.u32 %v296_v53, 16  ;;  %v4975_v60 = vld [vmem:[%s7384_s0 + $0x98] sm:$0xf]  ;;  %v1007_v61 = vshrl.u32 %v4973_v57, 16  ;;  %v1010_v62 = vshll.u32 %v4973_v57, 16  ;;  %v347_v2 = vshll.u32 %v296_v53, 16 }
  0x10   :  { %v1368_v63 = vld [vmem:[%s7383_s1 + $0xc] sm:$0x3]  ;;  %v1518_v0 = vld [vmem:[%s7383_s1 + $0xc] sm:$0xc]  ;;  %v1230_v1 = vld [vmem:[%s7383_s1 + $0x8] sm:$0xc] }
  0x11   :  { %v1434_v3 = vsel %vm125_vm0, %v1368_v63, 0  ;;  %v1560_v4 = vunpack.c.l.b16 %v1518_v0  ;;  %v1256_v5 = vunpack.c.l.b16 %v1230_v1  ;;  %v4827_v6 = vld [vmem:[%s7384_s0 + $0x30] sm:$0xf]  ;;  %v1009_v7 = vrot.slane %v1007_v61, 4  ;;  %v5384_v11 = vld [vmem:[%s7384_s0 + $0x34] sm:$0xf0] }
  0x12   :  { %1443 = vmatpush.bf16.msra.mxu2 %v1434_v3  ;;  %v1012_v8 = vrot.slane %v1010_v62, 5  ;;  %v1021_v9 = vshrl.u32 %v4975_v60, 16  ;;  %v4974_v14 = vld [vmem:[%s7384_s0 + $0x94] sm:$0x1]  ;;  %v1024_v15 = vshll.u32 %v4975_v60, 16  ;;  %v332_v16 = vrot.slane %v330_v56, 4 }
  0x13   :  { %v1561_v12 = vpack.c.b16 %v1560_v4, %v1560_v4  ;;  %v1257_v13 = vpack.c.b16 %v1256_v5, %v1256_v5  ;;  %v335_v17 = vrot.slane %v333_v58, 5  ;;  %v346_v18 = vrot.slane %v344_v59, 4  ;;  %v4976_v19 = vld [vmem:[%s7384_s0 + $0x9c] sm:$0x1]  ;;  %v295_v26 = vld [vmem:[%s7384_s0 + $0x4] sm:$0x1] }
  0x14   :  { %v1023_v20 = vrot.slane %v1021_v9, 4  ;;  %v349_v21 = vrot.slane %v347_v2, 5  ;;  %v1026_v24 = vrot.slane %v1024_v15, 5  ;;  %v4828_v25 = vor.u32 %v5384_v11, %v4827_v6  ;;  %v297_v27 = vld [vmem:[%s7384_s0 + $0xc] sm:$0x1] }
  0x15   :  { %v1562_v22 = vrot.slane %v1561_v12, 2  ;;  %v1258_v23 = vrot.slane %v1257_v13, 2  ;;  %v1013_v28 = vor.u32 %v1012_v8, %v1009_v7  ;;  %v1016_v29 = vshll.u32 %v4974_v14, 16  ;;  %v4803_v34 = vld [vmem:[%s7384_s0 + $0x198] sm:$0xf] }
  0x16   :  { %4850 = vmatmul.msk.bf16.gmra.mxu3 %vm100_vm1, %v4836_v32  ;;  %v1027_v32 = vor.u32 %v1026_v24, %v1023_v20  ;;  %v5396_v35 = vld [vmem:[%s7384_s0 + $0x19c] sm:$0xf0]  ;;  %v4787_v36 = vld [vmem:[%s7384_s0 + $0x78] sm:$0xf]  ;;  %v350_v40 = vor.u32 %v349_v21, %v346_v18  ;;  %v353_v41 = vshll.u32 %v297_v27, 16 }
  0x17   :  { %4846 = vmatmul.msk.bf16.gmra.mxu1 %vm100_vm1, %v4820_v33  ;;  %v1588_v30 = vsel %vm125_vm0, %v1562_v22, 0  ;;  %v1284_v31 = vsel %vm125_vm0, %v1258_v23, 0  ;;  %v1030_v33 = vshll.u32 %v4976_v19, 16  ;;  %v5392_v37 = vld [vmem:[%s7384_s0 + $0x7c] sm:$0xf0]  ;;  %v4804_v48 = vor.u32 %v5396_v35, %v4803_v34 }
  0x18   :  { %1597 = vmatpush.bf16.msra.mxu3 %v1588_v30  ;;  %1293 = vmatpush.bf16.msrb.mxu1 %v1284_v31  ;;  %v1911_v42 = vld [vmem:[%s7383_s1 + $0x10] sm:$0x3]  ;;  %v1028_v46 = vrot.slane %v1027_v32, 4  ;;  %v4788_v49 = vor.u32 %v5392_v37, %v4787_v36  ;;  %v355_v53 = vrot.slane %v353_v41, 5  ;;  %v4977_v55 = vld [vmem:[%s7384_s0 + $0xa0] sm:$0xf] }
  0x19   :  { %v1961_v43 = vsel %vm125_vm0, %v1911_v42, 0  ;;  %v1032_v47 = vrot.slane %v1030_v33, 5  ;;  %v4979_v56 = vld [vmem:[%s7384_s0 + $0xa8] sm:$0xf]  ;;  %v298_v59 = vld [vmem:[%s7384_s0 + $0x10] sm:$0xf] }
  0x1a   :  { %1970 = vmatpush.bf16.msra.mxu0 %v1961_v43  ;;  %v1035_v60 = vshrl.u32 %v4977_v55, 16  ;;  %v1038_v61 = vshll.u32 %v4977_v55, 16  ;;  %v1049_v62 = vshrl.u32 %v4979_v56, 16  ;;  %v300_v1 = vld [vmem:[%s7384_s0 + $0x18] sm:$0xf]  ;;  %v358_v6 = vshrl.u32 %v298_v59, 16 }
  0x1b   :  { %v1033_v58 = vsel %vm5667_vm4, %v1028_v46, %v1032_v47  ;;  %v4879_v2 = vld [vmem:[%s7384_s0 + $0x90] sm:$0xf]  ;;  %v5397_v3 = vld [vmem:[%s7384_s0 + $0x94] sm:$0xf0]  ;;  %v361_v7 = vshll.u32 %v298_v59, 16  ;;  %v1052_v11 = vshll.u32 %v4979_v56, 16 }
  0x1c   :  { %4810 = vmatmul.msk.bf16.gmra.mxu2 %vm100_vm1, %v4796_v38  ;;  %4806 = vmatmul.msk.bf16.gmra.mxu0 %vm100_vm1, %v4780_v39  ;;  %v336_v38 = vor.u32 %v335_v17, %v332_v16  ;;  %v339_v39 = vshll.u32 %v295_v26, 16  ;;  %v1232_v5 = vunpack.c.l.b16 %v1033_v58  ;;  %v1037_v8 = vrot.slane %v1035_v60, 4  ;;  %v4978_v14 = vld [vmem:[%s7384_s0 + $0xa4] sm:$0x1]  ;;  %v4980_v15 = vld [vmem:[%s7384_s0 + $0xac] sm:$0x1] }
  0x1d   :  { %v1040_v9 = vrot.slane %v1038_v61, 5  ;;  %v372_v12 = vshrl.u32 %v300_v1, 16  ;;  %v375_v13 = vshll.u32 %v300_v1, 16  ;;  %v4880_v16 = vor.u32 %v5397_v3, %v4879_v2  ;;  %v299_v21 = vld [vmem:[%s7384_s0 + $0x14] sm:$0x1] }
  0x1e   :  { %v337_v50 = vrot.slane %v336_v38, 4  ;;  %v1054_v17 = vrot.slane %v1052_v11, 5  ;;  %v301_v22 = vld [vmem:[%s7384_s0 + $0x1c] sm:$0x1]  ;;  %v1044_v24 = vshll.u32 %v4978_v14, 16  ;;  %v1058_v26 = vshll.u32 %v4980_v15, 16 }
  0x1f   :  { %v1041_v23 = vor.u32 %v1040_v9, %v1037_v8  ;;  %v360_v27 = vrot.slane %v358_v6, 4  ;;  %v377_v30 = vrot.slane %v375_v13, 5  ;;  %v4935_v31 = vld [vmem:[%s7384_s0 + $0xd8] sm:$0xf]  ;;  %v5405_v32 = vld [vmem:[%s7384_s0 + $0xdc] sm:$0xf0] }
  0x20   :  { %v367_v33 = vshll.u32 %v299_v21, 16  ;;  %v381_v34 = vshll.u32 %v301_v22, 16  ;;  %v1046_v36 = vrot.slane %v1044_v24, 5  ;;  %v1060_v38 = vrot.slane %v1058_v26, 5  ;;  %v304_v46 = vld [vmem:[%s7384_s0 + $0x28] sm:$0xf] }
  0x21   :  { %v1042_v35 = vrot.slane %v1041_v23, 4  ;;  %v4981_v47 = vld [vmem:[%s7384_s0 + $0xb0] sm:$0xf]  ;;  %v5398_v59 = vld [vmem:[%s7384_s0 + $0xa4] sm:$0xf0] }
  0x22   :  { %v369_v43 = vrot.slane %v367_v33, 5  ;;  %v4982_v9 = vld [vmem:[%s7384_s0 + $0xb4] sm:$0x1]  ;;  %v4939_v24 = vld [vmem:[%s7384_s0 + $0xe8] sm:$0xf] }
  0x23   :  { %vm2076_vm6 = vsmask.f32 256  ;;  %vm2138_vm7 = vsmask.f32 7938 }
  0x24   :  { %vm6373_vm8 = vmand %vm2066_vm5, %vm2076_vm6 }
  0x25   :  { %vm6381_vm10 = vmand %vm2066_vm5, %vm2138_vm7 }
  0x26   :  { %4851 = vmatmul.msk.bf16.gmra.mxu3 %vm100_vm1, %v4840_v44  ;;  %v1014_v44 = vrot.slane %v1013_v28, 4  ;;  %v363_v28 = vrot.slane %v361_v7, 5  ;;  %vm6461_vm11 = vmand %vm2064_vm9, %vm2138_vm7 }
  0x27   :  { %4847 = vmatmul.msk.bf16.gmra.mxu1 %vm100_vm1, %v4824_v45  ;;  %v1018_v45 = vrot.slane %v1016_v29, 5  ;;  %v374_v29 = vrot.slane %v372_v12, 4 }
  0x28   :  { %v364_v41 = vor.u32 %v363_v28, %v360_v27 }
  0x29   :  { %v1019_v57 = vsel %vm5667_vm4, %v1014_v44, %v1018_v45  ;;  %v378_v42 = vor.u32 %v377_v30, %v374_v29  ;;  %v383_v44 = vrot.slane %v381_v34, 5  ;;  %v302_v45 = vld [vmem:[%s7384_s0 + $0x20] sm:$0xf] }
  0x2a   :  { %v1231_v4 = vunpack.c.l.b16 %v1019_v57  ;;  %v365_v55 = vrot.slane %v364_v41, 4  ;;  %v386_v60 = vshrl.u32 %v302_v45, 16  ;;  %v389_v61 = vshll.u32 %v302_v45, 16  ;;  %v4987_v41 = vld [vmem:[%s7384_s0 + $0xc8] sm:$0xf] }
  0x2b   :  { %v379_v56 = vrot.slane %v378_v42, 4 }
  0x2c   :  { %4811 = vmatmul.msk.bf16.gmra.mxu2 %vm100_vm1, %v4800_v51  ;;  %4807 = vmatmul.msk.bf16.gmra.mxu0 %vm100_vm1, %v4784_v52  ;;  %v341_v51 = vrot.slane %v339_v39, 5  ;;  %v351_v52 = vrot.slane %v350_v40, 4  ;;  %v1247_v20 = vpack.c.b16 %v1232_v5, %v1231_v4  ;;  %v4936_v40 = vor.u32 %v5405_v32, %v4935_v31 }
  0x2d   :  { %v370_v7 = vsel %vm5667_vm4, %v365_v55, %v369_v43  ;;  %v384_v8 = vsel %vm5667_vm4, %v379_v56, %v383_v44  ;;  %v388_v11 = vrot.slane %v386_v60, 4  ;;  %v391_v12 = vrot.slane %v389_v61, 5  ;;  %v306_v44 = vld [vmem:[%s7384_s0 + $0x30] sm:$0xf] }
  0x2e   :  { %v342_v63 = vsel %vm5667_vm4, %v337_v50, %v341_v51  ;;  %v356_v0 = vsel %vm5667_vm4, %v351_v52, %v355_v53  ;;  %v1063_v51 = vshrl.u32 %v4981_v47, 16  ;;  %v1066_v52 = vshll.u32 %v4981_v47, 16  ;;  %v4883_v53 = vld [vmem:[%s7384_s0 + $0xa0] sm:$0xf] }
  0x2f   :  { %v554_v18 = vunpack.c.l.b16 %v342_v63  ;;  %v555_v19 = vunpack.c.l.b16 %v356_v0  ;;  %v403_v63 = vshll.u32 %v304_v46, 16  ;;  %v4884_v6 = vor.u32 %v5398_v59, %v4883_v53  ;;  %v5399_v53 = vld [vmem:[%s7384_s0 + $0xb4] sm:$0xf0] }
  0x30   :  { %v1065_v2 = vrot.slane %v1063_v51, 4  ;;  %v1068_v3 = vrot.slane %v1066_v52, 5  ;;  %v556_v22 = vunpack.c.l.b16 %v370_v7  ;;  %v557_v23 = vunpack.c.l.b16 %v384_v8  ;;  %v308_v51 = vld [vmem:[%s7384_s0 + $0x38] sm:$0xf]  ;;  %v4887_v52 = vld [vmem:[%s7384_s0 + $0xb0] sm:$0xf] }
  0x31   :  { %v570_v39 = vpack.c.b16 %v555_v19, %v554_v18  ;;  %v405_v14 = vrot.slane %v403_v63, 5  ;;  %v1072_v19 = vshll.u32 %v4982_v9, 16  ;;  %v392_v26 = vor.u32 %v391_v12, %v388_v11  ;;  %v307_v7 = vld [vmem:[%s7384_s0 + $0x34] sm:$0x1]  ;;  %v309_v8 = vld [vmem:[%s7384_s0 + $0x3c] sm:$0x1] }
  0x32   :  { %v1069_v18 = vor.u32 %v1068_v3, %v1065_v2  ;;  %v571_v34 = vpack.c.b16 %v557_v23, %v556_v22  ;;  %v1105_v47 = vshrl.u32 %v4987_v41, 16  ;;  %v428_v63 = vshrl.u32 %v308_v51, 16  ;;  %v4988_v2 = vld [vmem:[%s7384_s0 + $0xcc] sm:$0x1] }
  0x33   :  { %v1074_v31 = vrot.slane %v1072_v19, 5  ;;  %v4888_v3 = vor.u32 %v5399_v53, %v4887_v52  ;;  %v1114_v12 = vshll.u32 %v4988_v2, 16  ;;  %v423_v19 = vshll.u32 %v307_v7, 16  ;;  %v311_v2 = vld [vmem:[%s7384_s0 + $0x124] sm:$0x1] }
  0x34   :  { %v1070_v30 = vrot.slane %v1069_v18, 4  ;;  %v1107_v61 = vrot.slane %v1105_v47, 4  ;;  %v5407_v18 = vld [vmem:[%s7384_s0 + $0xfc] sm:$0xf0] }
  0x36   :  { %4852 = vmatmul.msk.bf16.gmra.mxu3 %vm100_vm1, %v4844_v10  ;;  %v1051_v10 = vrot.slane %v1049_v62, 4  ;;  %v400_v62 = vshrl.u32 %v304_v46, 16  ;;  %v1075_v42 = vsel %vm5667_vm4, %v1070_v30, %v1074_v31  ;;  %v310_v31 = vld [vmem:[%s7384_s0 + $0x120] sm:$0xf] }
  0x37   :  { %4848 = vmatmul.msk.bf16.gmra.mxu1 %vm100_vm1, %v4828_v25  ;;  %v1235_v55 = vunpack.c.l.b16 %v1075_v42 }
  0x38   :  { %v1055_v25 = vor.u32 %v1054_v17, %v1051_v10  ;;  %v4984_v10 = vld [vmem:[%s7384_s0 + $0xbc] sm:$0x1]  ;;  %v402_v13 = vrot.slane %v400_v62, 4  ;;  %v305_v17 = vld [vmem:[%s7384_s0 + $0x2c] sm:$0x1] }
  0x39   :  { %v1086_v21 = vshll.u32 %v4984_v10, 16  ;;  %v409_v29 = vshll.u32 %v305_v17, 16  ;;  %v4943_v17 = vld [vmem:[%s7384_s0 + $0xf8] sm:$0xf] }
  0x3a   :  { %v1056_v37 = vrot.slane %v1055_v25, 4  ;;  %v5406_v25 = vld [vmem:[%s7384_s0 + $0xec] sm:$0xf0]  ;;  %v406_v28 = vor.u32 %v405_v14, %v402_v13 }
  0x3b   :  { %v1088_v33 = vrot.slane %v1086_v21, 5 }
  0x3c   :  { %4812 = vmatmul.msk.bf16.gmra.mxu2 %vm100_vm1, %v4804_v48  ;;  %4808 = vmatmul.msk.bf16.gmra.mxu0 %vm100_vm1, %v4788_v49  ;;  %v4983_v48 = vld [vmem:[%s7384_s0 + $0xb8] sm:$0xf]  ;;  %v1047_v49 = vsel %vm5667_vm4, %v1042_v35, %v1046_v36  ;;  %v1061_v50 = vsel %vm5667_vm4, %v1056_v37, %v1060_v38  ;;  %v4940_v35 = vor.u32 %v5406_v25, %v4939_v24  ;;  %v393_v36 = vrot.slane %v392_v26, 4 }
  0x3d   :  { %v1077_v57 = vshrl.u32 %v4983_v48, 16  ;;  %v1080_v58 = vshll.u32 %v4983_v48, 16  ;;  %v1233_v0 = vunpack.c.l.b16 %v1047_v49  ;;  %v1234_v1 = vunpack.c.l.b16 %v1061_v50 }
  0x3e   :  { %v407_v38 = vrot.slane %v406_v28, 4  ;;  %v1108_v48 = vshll.u32 %v4987_v41, 16  ;;  %v1116_v24 = vrot.slane %v1114_v12, 5  ;;  %v4944_v26 = vor.u32 %v5407_v18, %v4943_v17 }
  0x3f   :  { %v1079_v4 = vrot.slane %v1077_v57, 4  ;;  %v1082_v5 = vrot.slane %v1080_v58, 5  ;;  %v1248_v15 = vpack.c.b16 %v1234_v1, %v1233_v0  ;;  %v414_v57 = vshrl.u32 %v306_v44, 16  ;;  %v4986_v1 = vld [vmem:[%s7384_s0 + $0xc4] sm:$0x1] }
  0x40   :  { %v417_v58 = vshll.u32 %v306_v44, 16  ;;  %v1110_v62 = vrot.slane %v1108_v48, 5  ;;  %v431_v0 = vshll.u32 %v308_v51, 16  ;;  %v1100_v10 = vshll.u32 %v4986_v1, 16  ;;  %v5400_v44 = vld [vmem:[%s7384_s0 + $0xc4] sm:$0xf0] }
  0x41   :  { %v416_v13 = vrot.slane %v414_v57, 4 }
  0x42   :  { %v1111_v11 = vor.u32 %v1110_v62, %v1107_v61  ;;  %v419_v14 = vrot.slane %v417_v58, 5  ;;  %v1102_v22 = vrot.slane %v1100_v10, 5  ;;  %v4947_v10 = vld [vmem:[%s7384_s0 + $0x108] sm:$0xf] }
  0x44   :  { %v1112_v23 = vrot.slane %v1111_v11, 4  ;;  %v5408_v11 = vld [vmem:[%s7384_s0 + $0x10c] sm:$0xf0] }
  0x46   :  { %4909 = vmatmul.msk.bf16.vlgmr.msrb.gmra.mxu3 %vm100_vm1, %v4880_v16  ;;  %v303_v16 = vld [vmem:[%s7384_s0 + $0x24] sm:$0x1] }
  0x47   :  { %5005 = vmatmul.msk.bf16.vlgmr.msrb.gmra.mxu1 %vm100_vm1, %v1247_v20  ;;  %v1083_v20 = vor.u32 %v1082_v5, %v1079_v4  ;;  %v395_v27 = vshll.u32 %v303_v16, 16  ;;  %v433_v16 = vrot.slane %v431_v0, 5 }
  0x49   :  { %v1084_v32 = vrot.slane %v1083_v20, 4  ;;  %v397_v37 = vrot.slane %v395_v27, 5  ;;  %v437_v20 = vshll.u32 %v309_v8, 16  ;;  %v420_v27 = vor.u32 %v419_v14, %v416_v13 }
  0x4a   :  { %v451_v13 = vshll.u32 %v311_v2, 16 }
  0x4b   :  { %v1089_v43 = vsel %vm5667_vm4, %v1084_v32, %v1088_v33  ;;  %v398_v49 = vsel %vm5667_vm4, %v393_v36, %v397_v37  ;;  %v439_v30 = vrot.slane %v437_v20, 5  ;;  %v312_v32 = vld [vmem:[%s7384_s0 + $0x128] sm:$0xf]  ;;  %v4989_v33 = vld [vmem:[%s7384_s0 + $0x1b0] sm:$0xf]  ;;  %v1117_v36 = vsel %vm5667_vm4, %v1112_v23, %v1116_v24 }
  0x4c   :  { %4853 = vmatmul.msk.bf16.vlgmr.msrb.gmra.mxu2 %vm100_vm1, %v570_v39  ;;  %4965 = vmatmul.msk.bf16.vlgmr.msrb.gmra.mxu0 %vm100_vm1, %v4936_v40  ;;  %v411_v39 = vrot.slane %v409_v29, 5  ;;  %v4985_v40 = vld [vmem:[%s7384_s0 + $0xc0] sm:$0xf]  ;;  %v1236_v56 = vunpack.c.l.b16 %v1089_v43  ;;  %v558_v4 = vunpack.c.l.b16 %v398_v49  ;;  %v425_v29 = vrot.slane %v423_v19, 5 }
  0x4d   :  { %v1091_v45 = vshrl.u32 %v4985_v40, 16  ;;  %v1094_v46 = vshll.u32 %v4985_v40, 16  ;;  %v1119_v37 = vshrl.u32 %v4989_v33, 16  ;;  %v421_v40 = vrot.slane %v420_v27, 4  ;;  %v4993_v27 = vld [vmem:[%s7384_s0 + $0x1c0] sm:$0xf] }
  0x4e   :  { %v412_v50 = vsel %vm5667_vm4, %v407_v38, %v411_v39  ;;  %v1122_v38 = vshll.u32 %v4989_v33, 16  ;;  %v4891_v39 = vld [vmem:[%s7384_s0 + $0xc0] sm:$0xf]  ;;  %v456_v47 = vshrl.u32 %v312_v32, 16  ;;  %v459_v48 = vshll.u32 %v312_v32, 16 }
  0x4f   :  { %v1093_v59 = vrot.slane %v1091_v45, 4  ;;  %v1096_v60 = vrot.slane %v1094_v46, 5  ;;  %v559_v5 = vunpack.c.l.b16 %v412_v50  ;;  %v442_v45 = vshrl.u32 %v310_v31, 16 }
  0x50   :  { %v445_v46 = vshll.u32 %v310_v31, 16  ;;  %v1238_v50 = vunpack.c.l.b16 %v1117_v36  ;;  %v1121_v51 = vrot.slane %v1119_v37, 4  ;;  %v1124_v52 = vrot.slane %v1122_v38, 5  ;;  %v316_v31 = vld [vmem:[%s7384_s0 + $0x138] sm:$0xf] }
  0x51   :  { %v1097_v9 = vor.u32 %v1096_v60, %v1093_v59  ;;  %v572_v25 = vpack.c.b16 %v559_v5, %v558_v4  ;;  %v426_v57 = vsel %vm5667_vm4, %v421_v40, %v425_v29  ;;  %v4990_v59 = vld [vmem:[%s7384_s0 + $0x1b4] sm:$0x1]  ;;  %v4992_v60 = vld [vmem:[%s7384_s0 + $0x1bc] sm:$0x1]  ;;  %v444_v61 = vrot.slane %v442_v45, 4 }
  0x52   :  { %v447_v62 = vrot.slane %v445_v46, 5  ;;  %v461_v0 = vrot.slane %v459_v48, 5  ;;  %v1125_v4 = vor.u32 %v1124_v52, %v1121_v51  ;;  %v1128_v5 = vshll.u32 %v4990_v59, 16  ;;  %v4895_v38 = vld [vmem:[%s7384_s0 + $0x1b0] sm:$0xf] }
  0x53   :  { %v1098_v21 = vrot.slane %v1097_v9, 4  ;;  %v1142_v7 = vshll.u32 %v4992_v60, 16  ;;  %v560_v8 = vunpack.c.l.b16 %v426_v57  ;;  %v453_v23 = vrot.slane %v451_v13, 5  ;;  %v315_v57 = vld [vmem:[%s7384_s0 + $0x134] sm:$0x1] }
  0x54   :  { %v448_v12 = vor.u32 %v447_v62, %v444_v61  ;;  %v1130_v17 = vrot.slane %v1128_v5, 5  ;;  %v1147_v32 = vshrl.u32 %v4993_v27, 16  ;;  %v1150_v33 = vshll.u32 %v4993_v27, 16  ;;  %v4951_v59 = vld [vmem:[%s7384_s0 + $0x1f8] sm:$0xf] }
  0x55   :  { %v1144_v19 = vrot.slane %v1142_v7, 5  ;;  %v487_v45 = vshll.u32 %v316_v31, 16 }
  0x56   :  { %4910 = vmatmul.msk.bf16.gmra.mxu3 %vm100_vm1, %v4884_v6  ;;  %v1249_v6 = vpack.c.b16 %v1236_v56, %v1235_v55  ;;  %v4892_v56 = vor.u32 %v5400_v44, %v4891_v39  ;;  %v5401_v39 = vld [vmem:[%s7384_s0 + $0x1b4] sm:$0xf0]  ;;  %v484_v44 = vshrl.u32 %v316_v31, 16  ;;  %v1149_v46 = vrot.slane %v1147_v32, 4 }
  0x57   :  { %5006 = vmatmul.msk.bf16.gmra.mxu1 %vm100_vm1, %v1248_v15  ;;  %v430_v15 = vrot.slane %v428_v63, 4  ;;  %v458_v63 = vrot.slane %v456_v47, 4  ;;  %v1152_v47 = vrot.slane %v1150_v33, 5  ;;  %v489_v62 = vrot.slane %v487_v45, 5 }
  0x58   :  { %v486_v61 = vrot.slane %v484_v44, 4 }
  0x59   :  { %v434_v28 = vor.u32 %v433_v16, %v430_v15  ;;  %v462_v14 = vor.u32 %v461_v0, %v458_v63  ;;  %v1126_v16 = vrot.slane %v1125_v4, 4  ;;  %v5409_v63 = vld [vmem:[%s7384_s0 + $0x1fc] sm:$0xf0]  ;;  %v317_v0 = vld [vmem:[%s7384_s0 + $0x13c] sm:$0x1] }
  0x5b   :  { %v435_v41 = vrot.slane %v434_v28, 4  ;;  %v463_v24 = vrot.slane %v462_v14, 4  ;;  %v4995_v28 = vld [vmem:[%s7384_s0 + $0x1c8] sm:$0xf]  ;;  %v1131_v29 = vsel %vm5667_vm4, %v1126_v16, %v1130_v17  ;;  %v4899_v17 = vld [vmem:[%s7384_s0 + $0x1c0] sm:$0xf] }
  0x5c   :  { %4854 = vmatmul.msk.bf16.gmra.mxu2 %vm100_vm1, %v571_v34  ;;  %4966 = vmatmul.msk.bf16.gmra.mxu0 %vm100_vm1, %v4940_v35  ;;  %v4991_v34 = vld [vmem:[%s7384_s0 + $0x1b8] sm:$0xf]  ;;  %v1103_v35 = vsel %vm5667_vm4, %v1098_v21, %v1102_v22  ;;  %v4948_v21 = vor.u32 %v5408_v11, %v4947_v10  ;;  %v449_v22 = vrot.slane %v448_v12, 4  ;;  %v493_v10 = vshll.u32 %v317_v0, 16  ;;  %v4955_v0 = vld [vmem:[%s7384_s0 + $0x208] sm:$0xf] }
  0x5d   :  { %v1133_v42 = vshrl.u32 %v4991_v34, 16  ;;  %v1136_v43 = vshll.u32 %v4991_v34, 16  ;;  %v1237_v49 = vunpack.c.l.b16 %v1103_v35  ;;  %v440_v58 = vsel %vm5667_vm4, %v435_v41, %v439_v30 }
  0x5e   :  { %v561_v9 = vunpack.c.l.b16 %v440_v58  ;;  %v1161_v34 = vshrl.u32 %v4995_v28, 16  ;;  %v1164_v35 = vshll.u32 %v4995_v28, 16  ;;  %v454_v40 = vsel %vm5667_vm4, %v449_v22, %v453_v23  ;;  %v4997_v22 = vld [vmem:[%s7384_s0 + $0x1d0] sm:$0xf]  ;;  %v4999_v23 = vld [vmem:[%s7384_s0 + $0x1d8] sm:$0xf] }
  0x5f   :  { %v1135_v53 = vrot.slane %v1133_v42, 4  ;;  %v1138_v55 = vrot.slane %v1136_v43, 5  ;;  %v1250_v1 = vpack.c.b16 %v1238_v50, %v1237_v49  ;;  %v1239_v42 = vunpack.c.l.b16 %v1131_v29 }
  0x60   :  { %v573_v20 = vpack.c.b16 %v561_v9, %v560_v8  ;;  %v1163_v48 = vrot.slane %v1161_v34, 4  ;;  %v1166_v49 = vrot.slane %v1164_v35, 5  ;;  %v4896_v50 = vor.u32 %v5401_v39, %v4895_v38 }
  0x61   :  { %v4952_v8 = vor.u32 %v5409_v63, %v4951_v59  ;;  %v490_v9 = vor.u32 %v489_v62, %v486_v61  ;;  %v1175_v27 = vshrl.u32 %v4997_v22, 16  ;;  %v1178_v28 = vshll.u32 %v4997_v22, 16 }
  0x62   :  { %v1189_v31 = vshrl.u32 %v4999_v23, 16  ;;  %v1192_v32 = vshll.u32 %v4999_v23, 16  ;;  %v5001_v23 = vld [vmem:[%s7384_s0 + $0x1e0] sm:$0xf] }
  0x66   :  { %4911 = vmatmul.msk.bf16.gmra.mxu3 %vm100_vm1, %v4888_v3  ;;  %v313_v3 = vld [vmem:[%s7384_s0 + $0x12c] sm:$0x1] }
  0x67   :  { %5007 = vmatmul.msk.bf16.gmra.mxu1 %vm100_vm1, %v1249_v6  ;;  %v1139_v6 = vor.u32 %v1138_v55, %v1135_v53  ;;  %v465_v15 = vshll.u32 %v313_v3, 16  ;;  %v4994_v53 = vld [vmem:[%s7384_s0 + $0x1c4] sm:$0x1]  ;;  %v4996_v55 = vld [vmem:[%s7384_s0 + $0x1cc] sm:$0x1]  ;;  %v1167_v3 = vor.u32 %v1166_v49, %v1163_v48  ;;  %v1191_v48 = vrot.slane %v1189_v31, 4 }
  0x68   :  { %v1156_v2 = vshll.u32 %v4994_v53, 16  ;;  %v1170_v4 = vshll.u32 %v4996_v55, 16  ;;  %v1194_v49 = vrot.slane %v1192_v32, 5 }
  0x69   :  { %v1140_v18 = vrot.slane %v1139_v6, 4  ;;  %v479_v6 = vshll.u32 %v315_v57, 16  ;;  %v1168_v14 = vrot.slane %v1167_v3, 4  ;;  %v319_v57 = vld [vmem:[%s7384_s0 + $0x144] sm:$0x1] }
  0x6a   :  { %v1158_v13 = vrot.slane %v1156_v2, 5  ;;  %v1195_v2 = vor.u32 %v1194_v49, %v1191_v48 }
  0x6b   :  { %v1145_v30 = vsel %vm5667_vm4, %v1140_v18, %v1144_v19  ;;  %v481_v19 = vrot.slane %v479_v6, 5 }
  0x6c   :  { %4855 = vmatmul.msk.bf16.gmra.mxu2 %vm100_vm1, %v572_v25  ;;  %4967 = vmatmul.msk.bf16.gmra.mxu0 %vm100_vm1, %v4944_v26  ;;  %v467_v25 = vrot.slane %v465_v15, 5  ;;  %v314_v26 = vld [vmem:[%s7384_s0 + $0x130] sm:$0xf]  ;;  %v1240_v43 = vunpack.c.l.b16 %v1145_v30  ;;  %v1172_v15 = vrot.slane %v1170_v4, 5 }
  0x6d   :  { %v470_v36 = vshrl.u32 %v314_v26, 16  ;;  %v473_v37 = vshll.u32 %v314_v26, 16  ;;  %v495_v26 = vrot.slane %v493_v10, 5 }
  0x6e   :  { %v468_v41 = vsel %vm5667_vm4, %v463_v24, %v467_v25  ;;  %v1251_v60 = vpack.c.b16 %v1240_v43, %v1239_v42  ;;  %v5402_v24 = vld [vmem:[%s7384_s0 + $0x1c4] sm:$0xf0]  ;;  %v491_v25 = vrot.slane %v490_v9, 4  ;;  %v1173_v30 = vsel %vm5667_vm4, %v1168_v14, %v1172_v15 }
  0x6f   :  { %v472_v51 = vrot.slane %v470_v36, 4  ;;  %v475_v52 = vrot.slane %v473_v37, 5  ;;  %v563_v58 = vunpack.c.l.b16 %v468_v41  ;;  %v4900_v37 = vor.u32 %v5402_v24, %v4899_v17  ;;  %v5003_v24 = vld [vmem:[%s7384_s0 + $0x1e8] sm:$0xf] }
  0x70   :  { %v1242_v41 = vunpack.c.l.b16 %v1173_v30  ;;  %v1177_v42 = vrot.slane %v1175_v27, 4  ;;  %v1180_v43 = vrot.slane %v1178_v28, 5  ;;  %v1196_v15 = vrot.slane %v1195_v2, 4  ;;  %v324_v27 = vld [vmem:[%s7384_s0 + $0x158] sm:$0xf] }
  0x71   :  { %v476_v5 = vor.u32 %v475_v52, %v472_v51  ;;  %v1203_v28 = vshrl.u32 %v5001_v23, 16  ;;  %v1217_v31 = vshrl.u32 %v5003_v24, 16  ;;  %v1220_v32 = vshll.u32 %v5003_v24, 16 }
  0x73   :  { %v477_v18 = vrot.slane %v476_v5, 4  ;;  %v507_v5 = vshll.u32 %v319_v57, 16  ;;  %v1219_v49 = vrot.slane %v1217_v31, 4  ;;  %v4907_v31 = vld [vmem:[%s7384_s0 + $0x1e0] sm:$0xf] }
  0x75   :  { %v482_v38 = vsel %vm5667_vm4, %v477_v18, %v481_v19 }
  0x76   :  { %4912 = vmatmul.msk.bf16.gmra.mxu3 %vm100_vm1, %v4892_v56  ;;  %v562_v56 = vunpack.c.l.b16 %v454_v40  ;;  %v564_v62 = vunpack.c.l.b16 %v482_v38 }
  0x77   :  { %5008 = vmatmul.msk.bf16.gmra.mxu1 %vm100_vm1, %v1250_v1  ;;  %v1153_v1 = vor.u32 %v1152_v47, %v1149_v46  ;;  %v496_v46 = vsel %vm5667_vm4, %v491_v25, %v495_v26  ;;  %v4998_v47 = vld [vmem:[%s7384_s0 + $0x1d4] sm:$0x1]  ;;  %v322_v26 = vld [vmem:[%s7384_s0 + $0x150] sm:$0xf] }
  0x78   :  { %v574_v7 = vpack.c.b16 %v563_v58, %v562_v56  ;;  %v5000_v56 = vld [vmem:[%s7384_s0 + $0x1dc] sm:$0x1]  ;;  %v321_v58 = vld [vmem:[%s7384_s0 + $0x14c] sm:$0x1]  ;;  %v1184_v61 = vshll.u32 %v4998_v47, 16  ;;  %v565_v63 = vunpack.c.l.b16 %v496_v46  ;;  %v526_v38 = vshrl.u32 %v322_v26, 16 }
  0x79   :  { %v1154_v12 = vrot.slane %v1153_v1, 4  ;;  %v5410_v1 = vld [vmem:[%s7384_s0 + $0x20c] sm:$0xf0]  ;;  %v1198_v3 = vshll.u32 %v5000_v56, 16  ;;  %v5004_v56 = vld [vmem:[%s7384_s0 + $0x1ec] sm:$0x1] }
  0x7a   :  { %v4956_v9 = vor.u32 %v5410_v1, %v4955_v0  ;;  %v575_v14 = vpack.c.b16 %v565_v63, %v564_v62  ;;  %v5411_v62 = vld [vmem:[%s7384_s0 + $0x21c] sm:$0xf0]  ;;  %v323_v0 = vld [vmem:[%s7384_s0 + $0x154] sm:$0x1] }
  0x7b   :  { %v1159_v29 = vsel %vm5667_vm4, %v1154_v12, %v1158_v13  ;;  %v1200_v17 = vrot.slane %v1198_v3, 5 }
  0x7c   :  { %4856 = vmatmul.msk.bf16.gmra.mxu2 %vm100_vm1, %v573_v20  ;;  %4968 = vmatmul.msk.bf16.gmra.mxu0 %vm100_vm1, %v4948_v21  ;;  %v318_v20 = vld [vmem:[%s7384_s0 + $0x140] sm:$0xf]  ;;  %v320_v21 = vld [vmem:[%s7384_s0 + $0x148] sm:$0xf]  ;;  %v1241_v40 = vunpack.c.l.b16 %v1159_v29  ;;  %v1206_v29 = vshll.u32 %v5001_v23, 16 }
  0x7d   :  { %v498_v33 = vshrl.u32 %v318_v20, 16  ;;  %v501_v34 = vshll.u32 %v318_v20, 16  ;;  %v512_v35 = vshrl.u32 %v320_v21, 16  ;;  %v515_v36 = vshll.u32 %v320_v21, 16 }
  0x7e   :  { %v1252_v59 = vpack.c.b16 %v1242_v41, %v1241_v40  ;;  %v509_v20 = vrot.slane %v507_v5, 5  ;;  %v1201_v30 = vsel %vm5667_vm4, %v1196_v15, %v1200_v17  ;;  %v540_v40 = vshrl.u32 %v324_v27, 16 }
  0x7f   :  { %v500_v51 = vrot.slane %v498_v33, 4  ;;  %v503_v52 = vrot.slane %v501_v34, 5  ;;  %v514_v53 = vrot.slane %v512_v35, 4  ;;  %v517_v55 = vrot.slane %v515_v36, 5  ;;  %v4903_v33 = vld [vmem:[%s7384_s0 + $0x1d0] sm:$0xf] }
  0x80   :  { %v5403_v36 = vld [vmem:[%s7384_s0 + $0x1d4] sm:$0xf0]  ;;  %v1208_v46 = vrot.slane %v1206_v29, 5  ;;  %v542_v1 = vrot.slane %v540_v40, 4 }
  0x81   :  { %v504_v4 = vor.u32 %v503_v52, %v500_v51  ;;  %v518_v6 = vor.u32 %v517_v55, %v514_v53  ;;  %v1222_v51 = vrot.slane %v1220_v32, 5  ;;  %v4904_v53 = vor.u32 %v5403_v36, %v4903_v33  ;;  %v5002_v55 = vld [vmem:[%s7384_s0 + $0x1e4] sm:$0x1]  ;;  %v5404_v32 = vld [vmem:[%s7384_s0 + $0x1e4] sm:$0xf0] }
  0x82   :  { %v1212_v5 = vshll.u32 %v5002_v55, 16  ;;  %v5125_v33 = vld [vmem:[%s7384_s0 + $0x8] sm:$0xf]  ;;  %v4908_v40 = vor.u32 %v5404_v32, %v4907_v31 }
  0x83   :  { %v505_v19 = vrot.slane %v504_v4, 4  ;;  %v519_v21 = vrot.slane %v518_v6, 4  ;;  %v325_v4 = vld [vmem:[%s7384_s0 + $0x15c] sm:$0x1]  ;;  %v1223_v6 = vor.u32 %v1222_v51, %v1219_v49 }
  0x84   :  { %v549_v15 = vshll.u32 %v325_v4, 16 }
  0x85   :  { %v510_v34 = vsel %vm5667_vm4, %v505_v19, %v509_v20 }
  0x86   :  { %4913 = vmatmul.msk.bf16.gmra.mxu3 %vm100_vm1, %v4896_v50  ;;  %v566_v57 = vunpack.c.l.b16 %v510_v34  ;;  %v5127_v34 = vld [vmem:[%s7384_s0 + $0x10] sm:$0xf] }
  0x87   :  { %5009 = vmatmul.msk.bf16.gmra.mxu1 %vm100_vm1, %v1251_v60  ;;  %v1181_v60 = vor.u32 %v1180_v43, %v1177_v42  ;;  %v1244_v42 = vunpack.c.l.b16 %v1201_v30  ;;  %v543_v43 = vshll.u32 %v324_v27, 16  ;;  %v1705_v49 = vshll.u32 %v5127_v34, 16 }
  0x89   :  { %v274_v11 = vpop.f32.mrf.mxu3  ;;  %v5911_v16 = vpop.f32.mrf.mxu0  ;;  %v1182_v10 = vrot.slane %v1181_v60, 4  ;;  %v528_v60 = vrot.slane %v526_v38, 4  ;;  %v545_v2 = vrot.slane %v543_v43, 5 }
  0x8c   :  { %4857 = vmatmul.msk.bf16.gmra.mxu2 %vm100_vm1, %v574_v7  ;;  %4969 = vmatmul.msk.bf16.gmra.mxu0 %vm100_vm1, %v4952_v8  ;;  %v521_v7 = vshll.u32 %v321_v58, 16 }
  0x8e   :  { %v523_v22 = vrot.slane %v521_v7, 5  ;;  %v1226_v7 = vshll.u32 %v5004_v56, 16  ;;  %v4963_v56 = vld [vmem:[%s7384_s0 + $0x228] sm:$0xf] }
  0x8f   :  { %v158_v39 = vpop.f32.mrf.mxu2 }
  0x90   :  { %v5939_v44 = vadd.f32 %v274_v11, %v158_v39  ;;  %v1186_v11 = vrot.slane %v1184_v61, 5  ;;  %v524_v35 = vsel %vm5667_vm4, %v519_v21, %v523_v22  ;;  %v529_v39 = vshll.u32 %v322_v26, 16 }
  0x91   :  { %v276_v45 = vpop.f32.mrf.mxu3  ;;  %v5946_v50 = vpop.f32.mrf.mxu0  ;;  %v567_v58 = vunpack.c.l.b16 %v524_v35  ;;  %v1214_v21 = vrot.slane %v1212_v5, 5  ;;  %v1224_v22 = vrot.slane %v1223_v6, 4  ;;  %v1228_v23 = vrot.slane %v1226_v7, 5 }
  0x92   :  { %v1187_v25 = vsel %vm5667_vm4, %v1182_v10, %v1186_v11  ;;  %v531_v61 = vrot.slane %v529_v39, 5  ;;  %v535_v10 = vshll.u32 %v323_v0, 16 }
  0x93   :  { %v1229_v30 = vsel %vm5667_vm4, %v1224_v22, %v1228_v23  ;;  %v5131_v22 = vld [vmem:[%s7384_s0 + $0x20] sm:$0xf] }
  0x94   :  { %v537_v26 = vrot.slane %v535_v10, 5  ;;  %v5087_v10 = vld [vmem:[%s7384_s0 + $0x50] sm:$0xf] }
  0x96   :  { %4914 = vmatmul.msk.bf16.gmra.mxu3 %vm100_vm1, %v4900_v37  ;;  %v1243_v37 = vunpack.c.l.b16 %v1187_v25 }
  0x97   :  { %v160_v8 = vpop.f32.mrf.mxu2  ;;  %5010 = vmatmul.msk.bf16.gmra.mxu1 %vm100_vm1, %v1252_v59  ;;  %v4959_v59 = vld [vmem:[%s7384_s0 + $0x218] sm:$0xf] }
  0x98   :  { %v5965_v12 = vadd.f32 %v276_v45, %v160_v8  ;;  %v1205_v45 = vrot.slane %v1203_v28, 4  ;;  %v1253_v63 = vpack.c.b16 %v1244_v42, %v1243_v37  ;;  %v576_v8 = vpack.c.b16 %v567_v58, %v566_v57  ;;  %v5412_v57 = vld [vmem:[%s7384_s0 + $0x22c] sm:$0xf0] }
  0x99   :  { %v279_v13 = vpop.f32.mrf.mxu3  ;;  %v5967_v18 = vpop.f32.mrf.mxu0  ;;  %v551_v28 = vrot.slane %v549_v15, 5  ;;  %v1246_v37 = vunpack.c.l.b16 %v1229_v30  ;;  %v4964_v4 = vor.u32 %v5412_v57, %v4963_v56 }
  0x9a   :  { %v1209_v3 = vor.u32 %v1208_v46, %v1205_v45  ;;  %v1688_v45 = vshrl.u32 %v5125_v33, 16  ;;  %v1691_v46 = vshll.u32 %v5125_v33, 16  ;;  %v1730_v33 = vshrl.u32 %v5131_v22, 16 }
  0x9c   :  { %4858 = vmatmul.msk.bf16.gmra.mxu2 %vm100_vm1, %v575_v14  ;;  %4970 = vmatmul.msk.bf16.gmra.mxu0 %vm100_vm1, %v4956_v9  ;;  %v4960_v9 = vor.u32 %v5411_v62, %v4959_v59  ;;  %v546_v14 = vor.u32 %v545_v2, %v542_v1  ;;  %v1210_v17 = vrot.slane %v1209_v3, 4  ;;  %v1690_v58 = vrot.slane %v1688_v45, 4  ;;  %v5126_v62 = vld [vmem:[%s7384_s0 + $0xc] sm:$0x1] }
  0x9d   :  { %v1693_v59 = vrot.slane %v1691_v46, 5  ;;  %v1697_v7 = vshll.u32 %v5126_v62, 16  ;;  %v1732_v45 = vrot.slane %v1730_v33, 4 }
  0x9e   :  { %v547_v27 = vrot.slane %v546_v14, 4  ;;  %v1215_v29 = vsel %vm5667_vm4, %v1210_v17, %v1214_v21  ;;  %v5129_v21 = vld [vmem:[%s7384_s0 + $0x18] sm:$0xf] }
  0x9f   :  { %v163_v41 = vpop.f32.mrf.mxu2  ;;  %v1245_v36 = vunpack.c.l.b16 %v1215_v29  ;;  %v1694_v6 = vor.u32 %v1693_v59, %v1690_v58  ;;  %v1699_v15 = vrot.slane %v1697_v7, 5  ;;  %v1719_v29 = vshll.u32 %v5129_v21, 16 }
  0xa0   :  { %v5997_v47 = vadd.f32 %v279_v13, %v163_v41  ;;  %v532_v13 = vor.u32 %v531_v61, %v528_v60  ;;  %v552_v42 = vsel %vm5667_vm4, %v547_v27, %v551_v28  ;;  %v1707_v61 = vrot.slane %v1705_v49, 5 }
  0xa1   :  { %v281_v48 = vpop.f32.mrf.mxu3  ;;  %v5999_v52 = vpop.f32.mrf.mxu0  ;;  %v1254_v51 = vpack.c.b16 %v1246_v37, %v1245_v36  ;;  %v569_v55 = vunpack.c.l.b16 %v552_v42  ;;  %v1695_v14 = vrot.slane %v1694_v6, 4  ;;  %v1716_v28 = vshrl.u32 %v5129_v21, 16  ;;  %v5413_v36 = vld [vmem:[%s7384_s0 + $0xc] sm:$0xf0]  ;;  %v5130_v42 = vld [vmem:[%s7384_s0 + $0x1c] sm:$0x1] }
  0xa2   :  { %v533_v25 = vrot.slane %v532_v13, 4  ;;  %v254_v13 = vpop.f32.mrf.mxu1  ;;  %v1725_v59 = vshll.u32 %v5130_v42, 16  ;;  %v5135_v6 = vld [vmem:[%s7384_s0 + $0x30] sm:$0xf] }
  0xa3   :  { %v1700_v31 = vsel %vm5667_vm4, %v1695_v14, %v1699_v15  ;;  %v255_v7 = vadd.f32 %v254_v13, %v5911_v16  ;;  %v1758_v21 = vshrl.u32 %v5135_v6, 16 }
  0xa4   :  { %v538_v41 = vsel %vm5667_vm4, %v533_v25, %v537_v26  ;;  %v1912_v37 = vunpack.c.l.b16 %v1700_v31 }
  0xa6   :  { %4915 = vmatmul.msk.bf16.gmra.mxu3 %vm100_vm1, %v4904_v53  ;;  %v568_v53 = vunpack.c.l.b16 %v538_v41  ;;  %v1721_v41 = vrot.slane %v1719_v29, 5 }
  0xa7   :  { %v165_v11 = vpop.f32.mrf.mxu2  ;;  %5011 = vmatmul.msk.bf16.gmra.mxu1 %vm100_vm1, %v1253_v63  ;;  %v5128_v63 = vld [vmem:[%s7384_s0 + $0x14] sm:$0x1] }
  0xa8   :  { %v6021_v19 = vadd.f32 %v281_v48, %v165_v11  ;;  %v1702_v48 = vshrl.u32 %v5127_v34, 16  ;;  %v577_v3 = vpack.c.b16 %v569_v55, %v568_v53  ;;  %v5421_v11 = vld [vmem:[%s7384_s0 + $0x54] sm:$0xf0]  ;;  %v1733_v34 = vshll.u32 %v5131_v22, 16 }
  0xa9   :  { %v284_v20 = vpop.f32.mrf.mxu3  ;;  %v6023_v24 = vpop.f32.mrf.mxu0  ;;  %v5088_v27 = vor.u32 %v5421_v11, %v5087_v10  ;;  %v1761_v22 = vshll.u32 %v5135_v6, 16 }
  0xaa   :  { %v1704_v60 = vrot.slane %v1702_v48, 4  ;;  %v1735_v46 = vrot.slane %v1733_v34, 5  ;;  %v5132_v48 = vld [vmem:[%s7384_s0 + $0x24] sm:$0x1]  ;;  %v256_v49 = vpop.f32.mrf.mxu1  ;;  %v5414_v34 = vld [vmem:[%s7384_s0 + $0x1c] sm:$0xf0] }
  0xab   :  { %v1739_v62 = vshll.u32 %v5132_v48, 16 }
  0xac   :  { %4859 = vmatmul.msk.bf16.gmra.mxu2 %vm100_vm1, %v576_v8  ;;  %4971 = vmatmul.msk.bf16.gmra.mxu0 %vm100_vm1, %v4960_v9  ;;  %v1708_v8 = vor.u32 %v1707_v61, %v1704_v60  ;;  %v1711_v9 = vshll.u32 %v5128_v63, 16  ;;  %v1736_v61 = vor.u32 %v1735_v46, %v1732_v45 }
  0xae   :  { %v1709_v17 = vrot.slane %v1708_v8, 4  ;;  %v5091_v8 = vld [vmem:[%s7384_s0 + $0x60] sm:$0xf] }
  0xaf   :  { %v168_v35 = vpop.f32.mrf.mxu2 }
  0xb0   :  { %v6043_v38 = vadd.f32 %v284_v20, %v168_v35  ;;  %v1713_v20 = vrot.slane %v1711_v9, 5  ;;  %v5031_v35 = vld [vmem:[%s7384_s0 + $0x8] sm:$0xf] }
  0xb1   :  { %v286_v39 = vpop.f32.mrf.mxu3  ;;  %v6049_v43 = vpop.f32.mrf.mxu0  ;;  %v5032_v53 = vor.u32 %v5413_v36, %v5031_v35  ;;  %v5422_v9 = vld [vmem:[%s7384_s0 + $0x64] sm:$0xf0]  ;;  %v5134_v36 = vld [vmem:[%s7384_s0 + $0x2c] sm:$0x1] }
  0xb2   :  { %v1714_v32 = vsel %vm5667_vm4, %v1709_v17, %v1713_v20  ;;  %v5092_v13 = vor.u32 %v5422_v9, %v5091_v8  ;;  %v1753_v48 = vshll.u32 %v5134_v36, 16  ;;  %v5095_v9 = vld [vmem:[%s7384_s0 + $0x70] sm:$0xf]  ;;  %v5039_v36 = vld [vmem:[%s7384_s0 + $0x28] sm:$0xf] }
  0xb6   :  { %4916 = vmatmul.msk.bf16.gmra.mxu3 %vm100_vm1, %v4908_v40  ;;  %v1718_v40 = vrot.slane %v1716_v28, 4  ;;  %v5035_v28 = vld [vmem:[%s7384_s0 + $0x18] sm:$0xf] }
  0xb7   :  { %v170_v0 = vpop.f32.mrf.mxu2  ;;  %5012 = vmatmul.msk.bf16.gmra.mxu1 %vm100_vm1, %v1254_v51  ;;  %v5036_v45 = vor.u32 %v5414_v34, %v5035_v28 }
  0xb8   :  { %v6065_v1 = vadd.f32 %v286_v39, %v170_v0  ;;  %v1913_v39 = vunpack.c.l.b16 %v1714_v32  ;;  %v1722_v58 = vor.u32 %v1721_v41, %v1718_v40  ;;  %v1727_v0 = vrot.slane %v1725_v59, 5  ;;  %v5136_v40 = vld [vmem:[%s7384_s0 + $0x34] sm:$0x1] }
  0xb9   :  { %v289_v2 = vpop.f32.mrf.mxu3  ;;  %v6067_v5 = vpop.f32.mrf.mxu0  ;;  %v257_v41 = vadd.f32 %v256_v49, %v5946_v50 }
  0xba   :  { %v1928_v57 = vpack.c.b16 %v1913_v39, %v1912_v37  ;;  %v1723_v63 = vrot.slane %v1722_v58, 4  ;;  %v1760_v37 = vrot.slane %v1758_v21, 4  ;;  %v1763_v39 = vrot.slane %v1761_v22, 5 }
  0xbb   :  { %v1767_v58 = vshll.u32 %v5136_v40, 16 }
  0xbc   :  { %4860 = vmatmul.msk.bf16.gmra.mxu2 %vm100_vm1, %v577_v3  ;;  %4972 = vmatmul.msk.bf16.gmra.mxu0 %vm100_vm1, %v4964_v4  ;;  %v1737_v3 = vrot.slane %v1736_v61, 4  ;;  %v1741_v4 = vrot.slane %v1739_v62, 5  ;;  %v1728_v20 = vsel %vm5667_vm4, %v1723_v63, %v1727_v0  ;;  %v2732_v61 = vld [vmem:[%s7386_s3] sm:$0xc]  ;;  %v1755_v0 = vrot.slane %v1753_v48, 5 }
  0xbd   :  { %v1914_v29 = vunpack.c.l.b16 %v1728_v20 }
  0xbf   :  { %v173_v23 = vpop.f32.mrf.mxu2 }
  0xc0   :  { %v6083_v25 = vadd.f32 %v289_v2, %v173_v23  ;;  %v5133_v2 = vld [vmem:[%s7384_s0 + $0x28] sm:$0xf]  ;;  %v259_v23 = vpop.f32.mrf.mxu1 }
  0xc1   :  { %v291_v26 = vpop.f32.mrf.mxu3  ;;  %v6085_v30 = vpop.f32.mrf.mxu0  ;;  %v1744_v11 = vshrl.u32 %v5133_v2, 16  ;;  %v1747_v14 = vshll.u32 %v5133_v2, 16  ;;  %v2758_v2 = vunpack.c.l.b16 %v2732_v61  ;;  %v260_v8 = vadd.f32 %v259_v23, %v5967_v18 }
  0xc3   :  { %v1746_v31 = vrot.slane %v1744_v11, 4  ;;  %v1749_v32 = vrot.slane %v1747_v14, 5  ;;  %v2759_v6 = vpack.c.b16 %v2758_v2, %v2758_v2 }
  0xc5   :  { %v1750_v46 = vor.u32 %v1749_v32, %v1746_v31 }
  0xc6   :  { %5117 = vmatmul.msk.bf16.vlgmr.msra.gmra.mxu3 %vm100_vm1, %v5088_v27 }
  0xc7   :  { %v175_v51 = vpop.f32.mrf.mxu2  ;;  %v1751_v63 = vrot.slane %v1750_v46, 4 }
  0xc8   :  { %v6104_v55 = vadd.f32 %v291_v26, %v175_v51  ;;  %v1742_v26 = vsel %vm5667_vm4, %v1737_v3, %v1741_v4  ;;  %v261_v62 = vpop.f32.mrf.mxu1  ;;  %v1769_v3 = vrot.slane %v1767_v58, 5  ;;  %v5137_v4 = vld [vmem:[%s7384_s0 + $0x38] sm:$0xf] }
  0xc9   :  { %v768_v56 = vpop.f32.mrf.mxu3  ;;  %v918_v60 = vpop.f32.mrf.mxu0  ;;  %v1915_v35 = vunpack.c.l.b16 %v1742_v26  ;;  %v1756_v14 = vsel %vm5667_vm4, %v1751_v63, %v1755_v0  ;;  %v1775_v20 = vshll.u32 %v5137_v4, 16  ;;  %v262_v46 = vadd.f32 %v261_v62, %v5999_v52 }
  0xcb   :  { %v1777_v34 = vrot.slane %v1775_v20, 5 }
  0xcc   :  { %5061 = vmatmul.msk.bf16.vlgmr.msra.gmra.mxu2 %vm100_vm1, %v5032_v53  ;;  %5157 = vmatmul.msk.bf16.vlgmr.msra.gmra.mxu0 %vm100_vm1, %v1928_v57  ;;  %v1764_v57 = vor.u32 %v1763_v39, %v1760_v37  ;;  %v5415_v37 = vld [vmem:[%s7384_s0 + $0x2c] sm:$0xf0] }
  0xce   :  { %v1765_v49 = vrot.slane %v1764_v57, 4 }
  0xcf   :  { %v614_v10 = vpop.f32.mrf.mxu2 }
  0xd0   :  { %v654_v15 = vadd.f32 %v614_v10, %v255_v7  ;;  %v5139_v7 = vld [vmem:[%s7384_s0 + $0x40] sm:$0xf]  ;;  %v5423_v10 = vld [vmem:[%s7384_s0 + $0x74] sm:$0xf0]  ;;  %v1770_v18 = vsel %vm5667_vm4, %v1765_v49, %v1769_v3 }
  0xd1   :  { %v770_v17 = vpop.f32.mrf.mxu3  ;;  %v920_v16 = vpop.f32.mrf.mxu0  ;;  %v1786_v23 = vshrl.u32 %v5139_v7, 16  ;;  %v5096_v26 = vor.u32 %v5423_v10, %v5095_v9  ;;  %v1917_v31 = vunpack.c.l.b16 %v1770_v18  ;;  %v5143_v9 = vld [vmem:[%s7384_s0 + $0x130] sm:$0xf] }
  0xd2   :  { %v808_v27 = vadd.f32 %v768_v56, %v654_v15  ;;  %v1929_v56 = vpack.c.b16 %v1915_v35, %v1914_v29  ;;  %v2760_v15 = vrot.slane %v2759_v6, 2  ;;  %v1916_v29 = vunpack.c.l.b16 %v1756_v14  ;;  %v5424_v6 = vld [vmem:[%s7384_s0 + $0x84] sm:$0xf0] }
  0xd3   :  { %v1788_v39 = vrot.slane %v1786_v23, 4  ;;  %v1814_v23 = vshrl.u32 %v5143_v9, 16 }
  0xd4   :  { %v6128_v33 = vadd.f32 %v918_v60, %v808_v27  ;;  %v2786_v27 = vsel %vm125_vm0, %v2760_v15, 0 }
  0xd5   :  { %2795 = vmatpush.bf16.msra.mxu1 %v2786_v27  ;;  %v5043_v27 = vld [vmem:[%s7384_s0 + $0x38] sm:$0xf] }
  0xd6   :  { %5118 = vmatmul.msk.bf16.gmra.mxu3 %vm100_vm1, %v5092_v13 }
  0xd7   :  { %v616_v42 = vpop.f32.mrf.mxu2 }
  0xd8   :  { %v655_v51 = vadd.f32 %v616_v42, %v257_v41  ;;  %v264_v41 = vpop.f32.mrf.mxu1  ;;  %v5138_v42 = vld [vmem:[%s7384_s0 + $0x3c] sm:$0x1] }
  0xd9   :  { %v773_v53 = vpop.f32.mrf.mxu3  ;;  %v923_v59 = vpop.f32.mrf.mxu0 }
  0xda   :  { %v809_v60 = vadd.f32 %v770_v17, %v655_v51  ;;  %v1772_v17 = vshrl.u32 %v5137_v4, 16  ;;  %v5040_v51 = vor.u32 %v5415_v37, %v5039_v36  ;;  %v5099_v4 = vld [vmem:[%s7384_s0 + $0x80] sm:$0xf]  ;;  %v1816_v36 = vrot.slane %v1814_v23, 4 }
  0xdc   :  { %5062 = vmatmul.msk.bf16.gmra.mxu2 %vm100_vm1, %v5036_v45  ;;  %v6145_v50 = vadd.f32 %v920_v16, %v809_v60  ;;  %5158 = vmatmul.msk.bf16.gmra.mxu0 %vm100_vm1, %v1929_v56  ;;  %v1789_v16 = vshll.u32 %v5139_v7, 16  ;;  %v1774_v32 = vrot.slane %v1772_v17, 4  ;;  %v5140_v45 = vld [vmem:[%s7384_s0 + $0x44] sm:$0x1]  ;;  %v265_v7 = vadd.f32 %v264_v41, %v6023_v24  ;;  %v5144_v41 = vld [vmem:[%s7384_s0 + $0x134] sm:$0x1] }
  0xdd   :  { %v1795_v61 = vshll.u32 %v5140_v45, 16  ;;  %v5100_v17 = vor.u32 %v5424_v6, %v5099_v4  ;;  %v5103_v6 = vld [vmem:[%s7384_s0 + $0x170] sm:$0xf] }
  0xde   :  { %v1791_v40 = vrot.slane %v1789_v16, 5  ;;  %v1778_v56 = vor.u32 %v1777_v34, %v1774_v32  ;;  %v1817_v16 = vshll.u32 %v5143_v9, 16 }
  0xdf   :  { %v619_v11 = vpop.f32.mrf.mxu2  ;;  %v1797_v62 = vrot.slane %v1795_v61, 5 }
  0xe0   :  { %v656_v21 = vadd.f32 %v619_v11, %v260_v8  ;;  %v1792_v60 = vor.u32 %v1791_v40, %v1788_v39  ;;  %v1779_v2 = vrot.slane %v1778_v56, 4  ;;  %v5141_v8 = vld [vmem:[%s7384_s0 + $0x128] sm:$0xf]  ;;  %v266_v10 = vpop.f32.mrf.mxu1  ;;  %v1819_v37 = vrot.slane %v1817_v16, 5  ;;  %v5142_v40 = vld [vmem:[%s7384_s0 + $0x12c] sm:$0x1] }
  0xe1   :  { %v775_v22 = vpop.f32.mrf.mxu3  ;;  %v925_v13 = vpop.f32.mrf.mxu0  ;;  %v1803_v18 = vshll.u32 %v5141_v8, 16  ;;  %v267_v39 = vadd.f32 %v266_v10, %v6049_v43 }
  0xe2   :  { %v810_v28 = vadd.f32 %v773_v53, %v656_v21  ;;  %v1930_v53 = vpack.c.b16 %v1917_v31, %v1916_v29  ;;  %v1793_v52 = vrot.slane %v1792_v60, 4  ;;  %v5416_v31 = vld [vmem:[%s7384_s0 + $0x3c] sm:$0xf0]  ;;  %v1823_v60 = vshll.u32 %v5144_v41, 16 }
  0xe3   :  { %v1805_v34 = vrot.slane %v1803_v18, 5 }
  0xe4   :  { %v6166_v35 = vadd.f32 %v923_v59, %v810_v28  ;;  %v1781_v59 = vshll.u32 %v5138_v42, 16  ;;  %v1798_v21 = vsel %vm5667_vm4, %v1793_v52, %v1797_v62  ;;  %v1825_v62 = vrot.slane %v1823_v60, 5 }
  0xe5   :  { %v1919_v29 = vunpack.c.l.b16 %v1798_v21 }
  0xe6   :  { %5119 = vmatmul.msk.bf16.gmra.mxu3 %vm100_vm1, %v5096_v26  ;;  %v1783_v3 = vrot.slane %v1781_v59, 5  ;;  %v1820_v59 = vor.u32 %v1819_v37, %v1816_v36  ;;  %v5047_v36 = vld [vmem:[%s7384_s0 + $0x128] sm:$0xf]  ;;  %v5417_v37 = vld [vmem:[%s7384_s0 + $0x12c] sm:$0xf0] }
  0xe7   :  { %v621_v48 = vpop.f32.mrf.mxu2 }
  0xe8   :  { %v657_v57 = vadd.f32 %v621_v48, %v262_v46  ;;  %v1784_v20 = vsel %vm5667_vm4, %v1779_v2, %v1783_v3  ;;  %v5044_v48 = vor.u32 %v5416_v31, %v5043_v27  ;;  %v1821_v52 = vrot.slane %v1820_v59, 4 }
  0xe9   :  { %v778_v58 = vpop.f32.mrf.mxu3  ;;  %v928_v63 = vpop.f32.mrf.mxu0  ;;  %v1918_v28 = vunpack.c.l.b16 %v1784_v20 }
  0xea   :  { %v811_v0 = vadd.f32 %v775_v22, %v657_v57  ;;  %v1800_v22 = vshrl.u32 %v5141_v8, 16 }
  0xec   :  { %5063 = vmatmul.msk.bf16.gmra.mxu2 %vm100_vm1, %v5040_v51  ;;  %v6183_v49 = vadd.f32 %v925_v13, %v811_v0  ;;  %5159 = vmatmul.msk.bf16.gmra.mxu0 %vm100_vm1, %v1930_v53  ;;  %v1802_v32 = vrot.slane %v1800_v22, 4  ;;  %v1931_v51 = vpack.c.b16 %v1919_v29, %v1918_v28  ;;  %v269_v53 = vpop.f32.mrf.mxu1  ;;  %v5147_v0 = vld [vmem:[%s7384_s0 + $0x140] sm:$0xf] }
  0xed   :  { %v270_v4 = vadd.f32 %v269_v53, %v6067_v5  ;;  %v5048_v53 = vor.u32 %v5417_v37, %v5047_v36 }
  0xee   :  { %v1806_v57 = vor.u32 %v1805_v34, %v1802_v32  ;;  %v5146_v32 = vld [vmem:[%s7384_s0 + $0x13c] sm:$0x1]  ;;  %v5148_v34 = vld [vmem:[%s7384_s0 + $0x144] sm:$0x1] }
  0xef   :  { %v624_v11 = vpop.f32.mrf.mxu2 }
  0xf0   :  { %v658_v14 = vadd.f32 %v624_v11, %v265_v7  ;;  %v1807_v2 = vrot.slane %v1806_v57, 4  ;;  %v5425_v7 = vld [vmem:[%s7384_s0 + $0x174] sm:$0xf0]  ;;  %v1842_v11 = vshrl.u32 %v5147_v0, 16 }
  0xf1   :  { %v780_v15 = vpop.f32.mrf.mxu3  ;;  %v930_v24 = vpop.f32.mrf.mxu0  ;;  %v5104_v21 = vor.u32 %v5425_v7, %v5103_v6 }
  0xf2   :  { %v812_v13 = vadd.f32 %v778_v58, %v658_v14  ;;  %v1809_v58 = vshll.u32 %v5142_v40, 16  ;;  %v1845_v14 = vshll.u32 %v5147_v0, 16 }
  0xf4   :  { %v6203_v26 = vadd.f32 %v928_v63, %v812_v13  ;;  %v5145_v63 = vld [vmem:[%s7384_s0 + $0x138] sm:$0xf]  ;;  %v1811_v3 = vrot.slane %v1809_v58, 5  ;;  %v271_v18 = vpop.f32.mrf.mxu1  ;;  %v1844_v13 = vrot.slane %v1842_v11, 4  ;;  %v1847_v27 = vrot.slane %v1845_v14, 5 }
  0xf5   :  { %v1828_v9 = vshrl.u32 %v5145_v63, 16  ;;  %v1831_v10 = vshll.u32 %v5145_v63, 16 }
  0xf6   :  { %5120 = vmatmul.msk.bf16.gmra.mxu3 %vm100_vm1, %v5100_v17  ;;  %v1812_v5 = vsel %vm5667_vm4, %v1807_v2, %v1811_v3  ;;  %v5151_v2 = vld [vmem:[%s7384_s0 + $0x150] sm:$0xf]  ;;  %v5107_v3 = vld [vmem:[%s7384_s0 + $0x180] sm:$0xf] }
  0xf7   :  { %v626_v42 = vpop.f32.mrf.mxu2  ;;  %v1830_v23 = vrot.slane %v1828_v9, 4  ;;  %v1833_v16 = vrot.slane %v1831_v10, 5  ;;  %v1920_v29 = vunpack.c.l.b16 %v1812_v5  ;;  %v1870_v11 = vshrl.u32 %v5151_v2, 16 }
  0xf8   :  { %v659_v45 = vadd.f32 %v626_v42, %v267_v39  ;;  %v272_v39 = vadd.f32 %v271_v18, %v6085_v30  ;;  %v1837_v42 = vshll.u32 %v5146_v32, 16  ;;  %v5149_v30 = vld [vmem:[%s7384_s0 + $0x148] sm:$0xf]  ;;  %v1873_v14 = vshll.u32 %v5151_v2, 16 }
  0xf9   :  { %v783_v46 = vpop.f32.mrf.mxu3  ;;  %v933_v56 = vpop.f32.mrf.mxu0  ;;  %v1834_v41 = vor.u32 %v1833_v16, %v1830_v23  ;;  %v1856_v7 = vshrl.u32 %v5149_v30, 16  ;;  %v1859_v10 = vshll.u32 %v5149_v30, 16  ;;  %v1872_v16 = vrot.slane %v1870_v11, 4 }
  0xfa   :  { %v813_v43 = vadd.f32 %v780_v15, %v659_v45  ;;  %v1848_v45 = vor.u32 %v1847_v27, %v1844_v13  ;;  %v1839_v60 = vrot.slane %v1837_v42, 5  ;;  %v1875_v13 = vrot.slane %v1873_v14, 5  ;;  %v5150_v27 = vld [vmem:[%s7384_s0 + $0x14c] sm:$0x1] }
  0xfb   :  { %v1835_v59 = vrot.slane %v1834_v41, 4  ;;  %v1861_v23 = vrot.slane %v1859_v10, 5 }
  0xfc   :  { %5064 = vmatmul.msk.bf16.gmra.mxu2 %vm100_vm1, %v5044_v48  ;;  %v6220_v61 = vadd.f32 %v930_v24, %v813_v43  ;;  %5160 = vmatmul.msk.bf16.gmra.mxu0 %vm100_vm1, %v1931_v51  ;;  %v1826_v24 = vsel %vm5667_vm4, %v1821_v52, %v1825_v62  ;;  %v1849_v43 = vrot.slane %v1848_v45, 4  ;;  %v5426_v52 = vld [vmem:[%s7384_s0 + $0x184] sm:$0xf0]  ;;  %v6298_v45 = vpop.f32.mrf.mxu1 }
  0xfd   :  { %v1921_v31 = vunpack.c.l.b16 %v1826_v24 }
  0xff   :  { %v629_v8 = vpop.f32.mrf.mxu2 }
 0x100   :  { %v660_v15 = vadd.f32 %v629_v8, %v270_v4  ;;  %v1840_v4 = vsel %vm5667_vm4, %v1835_v59, %v1839_v60  ;;  %v5155_v59 = vld [vmem:[%s7384_s0 + $0x160] sm:$0xf] }
 0x101   :  { %v785_v17 = vpop.f32.mrf.mxu3  ;;  %v935_v20 = vpop.f32.mrf.mxu0  ;;  %v1922_v5 = vunpack.c.l.b16 %v1840_v4 }
 0x102   :  { %v814_v22 = vadd.f32 %v783_v46, %v660_v15  ;;  %v1851_v46 = vshll.u32 %v5148_v34, 16 }
 0x104   :  { %v6240_v28 = vadd.f32 %v933_v56, %v814_v22  ;;  %v1932_v56 = vpack.c.b16 %v1921_v31, %v1920_v29  ;;  %v1853_v63 = vrot.slane %v1851_v46, 5  ;;  %v1858_v22 = vrot.slane %v1856_v7, 4  ;;  %v5152_v29 = vld [vmem:[%s7384_s0 + $0x154] sm:$0x1] }
 0x105   :  { %v1879_v41 = vshll.u32 %v5152_v29, 16  ;;  %v1901_v7 = vshll.u32 %v5155_v59, 16 }
 0x106   :  { %5121 = vmatmul.msk.bf16.gmra.mxu3 %vm100_vm1, %v5104_v21  ;;  %v1854_v6 = vsel %vm5667_vm4, %v1849_v43, %v1853_v63  ;;  %v5051_v21 = vld [vmem:[%s7384_s0 + $0x138] sm:$0xf]  ;;  %v1862_v37 = vor.u32 %v1861_v23, %v1858_v22  ;;  %v6332_v22 = vpop.f32.mrf.mxu1  ;;  %v5156_v23 = vld [vmem:[%s7384_s0 + $0x164] sm:$0x1] }
 0x107   :  { %v631_v40 = vpop.f32.mrf.mxu2  ;;  %v1923_v24 = vunpack.c.l.b16 %v1854_v6  ;;  %v1898_v6 = vshrl.u32 %v5155_v59, 16 }
 0x108   :  { %v661_v48 = vadd.f32 %v631_v40, %v272_v39  ;;  %v1865_v39 = vshll.u32 %v5150_v27, 16  ;;  %v1876_v40 = vor.u32 %v1875_v13, %v1872_v16  ;;  %v1863_v46 = vrot.slane %v1862_v37, 4 }
 0x109   :  { %v788_v51 = vpop.f32.mrf.mxu3  ;;  %v938_v57 = vpop.f32.mrf.mxu0  ;;  %v1933_v34 = vpack.c.b16 %v1923_v24, %v1922_v5  ;;  %v1900_v5 = vrot.slane %v1898_v6, 4  ;;  %v1903_v24 = vrot.slane %v1901_v7, 5  ;;  %v5420_v6 = vld [vmem:[%s7384_s0 + $0x15c] sm:$0xf0] }
 0x10a   :  { %v815_v58 = vadd.f32 %v785_v17, %v661_v48  ;;  %v5108_v17 = vor.u32 %v5426_v52, %v5107_v3  ;;  %v1867_v48 = vrot.slane %v1865_v39, 5  ;;  %v1907_v39 = vshll.u32 %v5156_v23, 16 }
 0x10b   :  { %v1904_v37 = vor.u32 %v1903_v24, %v1900_v5 }
 0x10c   :  { %5065 = vmatmul.msk.bf16.gmra.mxu2 %vm100_vm1, %v5048_v53  ;;  %v6257_v0 = vadd.f32 %v935_v20, %v815_v58  ;;  %5161 = vmatmul.msk.bf16.gmra.mxu0 %vm100_vm1, %v1932_v56  ;;  %v1881_v53 = vrot.slane %v1879_v41, 5  ;;  %v5111_v56 = vld [vmem:[%s7384_s0 + $0x190] sm:$0xf]  ;;  %v5153_v58 = vld [vmem:[%s7384_s0 + $0x158] sm:$0xf]  ;;  %v1868_v2 = vsel %vm5667_vm4, %v1863_v46, %v1867_v48  ;;  %v1909_v46 = vrot.slane %v1907_v39, 5 }
 0x10d   :  { %v1887_v4 = vshll.u32 %v5153_v58, 16  ;;  %v1924_v11 = vunpack.c.l.b16 %v1868_v2  ;;  %v5115_v48 = vld [vmem:[%s7384_s0 + $0x1a0] sm:$0xf] }
 0x10f   :  { %v634_v62 = vpop.f32.mrf.mxu2 }
 0x110   :  { %v662_v8 = vadd.f32 %v634_v62, %v5939_v44  ;;  %v5418_v44 = vld [vmem:[%s7384_s0 + $0x13c] sm:$0xf0]  ;;  %v1884_v62 = vshrl.u32 %v5153_v58, 16 }
 0x111   :  { %v6277_v9 = vpop.f32.mrf.mxu3  ;;  %v6279_v15 = vpop.f32.mrf.mxu0  ;;  %v5052_v32 = vor.u32 %v5418_v44, %v5051_v21  ;;  %v1889_v21 = vrot.slane %v1887_v4, 5  ;;  %v5154_v44 = vld [vmem:[%s7384_s0 + $0x15c] sm:$0x1] }
 0x112   :  { %v816_v20 = vadd.f32 %v788_v51, %v662_v8  ;;  %v1877_v51 = vrot.slane %v1876_v40, 4 }
 0x114   :  { %v6284_v18 = vadd.f32 %v938_v57, %v816_v20  ;;  %v5427_v57 = vld [vmem:[%s7384_s0 + $0x194] sm:$0xf0]  ;;  %v1882_v3 = vsel %vm5667_vm4, %v1877_v51, %v1881_v53  ;;  %v1886_v20 = vrot.slane %v1884_v62, 4  ;;  %v5428_v51 = vld [vmem:[%s7384_s0 + $0x1a4] sm:$0xf0] }
 0x115   :  { %v5112_v30 = vor.u32 %v5427_v57, %v5111_v56  ;;  %v1925_v14 = vunpack.c.l.b16 %v1882_v3  ;;  %v6350_v56 = vpop.f32.mrf.mxu1 }
 0x116   :  { %5122 = vmatmul.msk.bf16.gmra.mxu3 %vm100_vm1, %v5108_v17  ;;  %v5419_v17 = vld [vmem:[%s7384_s0 + $0x14c] sm:$0xf0] }
 0x117   :  { %v6296_v31 = vpop.f32.mrf.mxu2  ;;  %v1934_v29 = vpack.c.b16 %v1925_v14, %v1924_v11 }
 0x119   :  { %v793_v36 = vpop.f32.mrf.mxu3  ;;  %v943_v42 = vpop.f32.mrf.mxu0 }
 0x11c   :  { %5066 = vmatmul.msk.bf16.gmra.mxu2 %vm100_vm1, %v5052_v32  ;;  %5162 = vmatmul.msk.bf16.gmra.mxu0 %vm100_vm1, %v1933_v34  ;;  %v1890_v34 = vor.u32 %v1889_v21, %v1886_v20  ;;  %v2143_v20 = vld [vmem:[#allocation2 + $0xc] sm:$0x1] }
 0x11d   :  { %v2144_v23 = vsel %vm6381_vm10, 0, %v2143_v20 }
 0x11e   :  { %v1891_v40 = vrot.slane %v1890_v34, 4  ;;  %2145 = vst [vmem:[#allocation2 + $0xc] sm:$0x1] %v2144_v23 }
 0x11f   :  { %v639_v60 = vpop.f32.mrf.mxu2 }
 0x120   :  { %v664_v43 = vadd.f32 %v639_v60, %v5997_v47  ;;  %v5055_v47 = vld [vmem:[%s7384_s0 + $0x148] sm:$0xf]  ;;  %v5116_v60 = vor.u32 %v5428_v51, %v5115_v48 }
 0x121   :  { %v6315_v63 = vpop.f32.mrf.mxu3  ;;  %v6321_v52 = vpop.f32.mrf.mxu0  ;;  %v5056_v27 = vor.u32 %v5419_v17, %v5055_v47  ;;  %v2081_v17 = vld [vmem:[#allocation2 + $0x8] sm:$0x1] }
 0x122   :  { %v818_v8 = vadd.f32 %v793_v36, %v664_v43  ;;  %v1893_v36 = vshll.u32 %v5154_v44, 16  ;;  %v2082_v5 = vsel %vm6373_vm8, 0, %v2081_v17  ;;  %v6385_v44 = vpop.f32.mrf.mxu1  ;;  %v3068_v17 = vld [vmem:[%s7386_s3 + $0x4] sm:$0x3] }
 0x123   :  { %2083 = vst [vmem:[#allocation2 + $0x8] sm:$0x1] %v2082_v5  ;;  %v3118_v5 = vsel %vm125_vm0, %v3068_v17, 0 }
 0x124   :  { %v6323_v10 = vadd.f32 %v943_v42, %v818_v8  ;;  %v1895_v41 = vrot.slane %v1893_v36, 5  ;;  %v1905_v42 = vrot.slane %v1904_v37, 4  ;;  %v2084_v36 = vld [vmem:[#allocation2 + $0x10] sm:$0x1]  ;;  %v2146_v37 = vld [vmem:[#allocation2 + $0x14] sm:$0x1]  ;;  %3127 = vmatpush.bf16.msrb.mxu3 %v3118_v5 }
 0x126   :  { %5123 = vmatmul.msk.bf16.gmra.mxu3 %vm100_vm1, %v5112_v30  ;;  %v1896_v43 = vsel %vm5667_vm4, %v1891_v40, %v1895_v41  ;;  %v1910_v30 = vsel %vm5667_vm4, %v1905_v42, %v1909_v46  ;;  %v2085_v40 = vsel %vm6373_vm8, 0, %v2084_v36  ;;  %v2147_v41 = vsel %vm6381_vm10, 0, %v2146_v37  ;;  %v2090_v36 = vld [vmem:[#allocation2 + $0x20] sm:$0x1]  ;;  %v2152_v37 = vld [vmem:[#allocation2 + $0x24] sm:$0x1] }
 0x127   :  { %v6340_v16 = vpop.f32.mrf.mxu2  ;;  %v1926_v62 = vunpack.c.l.b16 %v1896_v43  ;;  %v1927_v4 = vunpack.c.l.b16 %v1910_v30  ;;  %2086 = vst [vmem:[#allocation2 + $0x10] sm:$0x1] %v2085_v40  ;;  %v2087_v30 = vld [vmem:[#allocation2 + $0x18] sm:$0x1]  ;;  %v2153_v40 = vsel %vm6381_vm10, 0, %v2152_v37 }
 0x128   :  { %2148 = vst [vmem:[#allocation2 + $0x14] sm:$0x1] %v2147_v41 }
 0x129   :  { %v798_v13 = vpop.f32.mrf.mxu3  ;;  %v948_v32 = vpop.f32.mrf.mxu0  ;;  %v1935_v11 = vpack.c.b16 %v1927_v4, %v1926_v62  ;;  %v2491_v62 = vld [vmem:[%s7386_s3] sm:$0x3]  ;;  %v2088_v4 = vsel %vm6373_vm8, 0, %v2087_v30  ;;  %2154 = vst [vmem:[#allocation2 + $0x24] sm:$0x1] %v2153_v40 }
 0x12a   :  { %2089 = vst [vmem:[#allocation2 + $0x18] sm:$0x1] %v2088_v4  ;;  %v2382_v40 = vld [vmem:[#allocation2 + $0xc] sm:$0x1] }
 0x12c   :  { %5067 = vmatmul.msk.bf16.gmra.mxu2 %vm100_vm1, %v5056_v27  ;;  %5163 = vmatmul.msk.bf16.gmra.mxu0 %vm100_vm1, %v1934_v29 }
 0x12f   :  { %v644_v53 = vpop.f32.mrf.mxu2 }
 0x130   :  { %v666_v57 = vadd.f32 %v644_v53, %v6043_v38  ;;  %v5059_v38 = vld [vmem:[%s7384_s0 + $0x158] sm:$0xf] }
 0x131   :  { %v6353_v58 = vpop.f32.mrf.mxu3  ;;  %v6355_v59 = vpop.f32.mrf.mxu0  ;;  %v5060_v47 = vor.u32 %v5420_v6, %v5059_v38  ;;  %v2902_v6 = vsel %vm125_vm0, %v2491_v62, 0 }
 0x132   :  { %v820_v2 = vadd.f32 %v798_v13, %v666_v57  ;;  %v5465_v13 = vmov 0   ;;  %2911 = vmatpush.bf16.msrb.mxu2 %v2902_v6  ;;  %v2093_v6 = vld [vmem:[#allocation2 + $0x28] sm:$0x1] }
 0x133   :  { %2065 = vst.msk [vmem:[#allocation2] sm:$0xf] %vm2064_vm9, %v5465_v13  ;;  %v2094_v17 = vsel %vm6373_vm8, 0, %v2093_v6 }
 0x134   :  { %v6361_v3 = vadd.f32 %v948_v32, %v820_v2  ;;  %2067 = vst.msk [vmem:[#allocation2 + $0x4] sm:$0x1] %vm2066_vm5, %v5465_v13  ;;  %v2149_v2 = vld [vmem:[#allocation2 + $0x1c] sm:$0x1] }
 0x135   :  { %2068 = vst.msk [vmem:[#allocation2 + $0x50] sm:$0xf] %vm2064_vm9, %v5465_v13  ;;  %v2150_v38 = vsel %vm6381_vm10, 0, %v2149_v2 }
 0x136   :  { %5124 = vmatmul.msk.bf16.gmra.mxu3 %vm100_vm1, %v5116_v60  ;;  %2069 = vst.msk [vmem:[#allocation2 + $0x54] sm:$0x1] %vm2066_vm5, %v5465_v13 }
 0x137   :  { %v6370_v7 = vpop.f32.mrf.mxu2  ;;  %2071 = vst.msk [vmem:[#allocation2 + $0x48] sm:$0xf] %vm2064_vm9, %v5465_v13 }
 0x138   :  { %2072 = vst.msk [vmem:[#allocation2 + $0x4c] sm:$0x1] %vm2066_vm5, %v5465_v13 }
 0x139   :  { %v803_v8 = vpop.f32.mrf.mxu3  ;;  %v953_v21 = vpop.f32.mrf.mxu0  ;;  %2073 = vst.msk [vmem:[#allocation2 + $0x98] sm:$0xf] %vm2064_vm9, %v5465_v13 }
 0x13a   :  { %v2078_v42 = vld [vmem:[#allocation2] sm:$0x1]  ;;  %2074 = vst.msk [vmem:[#allocation2 + $0x9c] sm:$0x1] %vm2066_vm5, %v5465_v13 }
 0x13b   :  { %v2079_v48 = vsel %vm6373_vm8, 0, %v2078_v42  ;;  %v2140_v51 = vld [vmem:[#allocation2 + $0x4] sm:$0x1]  ;;  %2151 = vst [vmem:[#allocation2 + $0x1c] sm:$0x1] %v2150_v38 }
 0x13c   :  { %5068 = vmatmul.msk.bf16.gmra.mxu2 %vm100_vm1, %v5060_v47  ;;  %5164 = vmatmul.msk.bf16.gmra.mxu0 %vm100_vm1, %v1935_v11  ;;  %2080 = vst [vmem:[#allocation2] sm:$0x1] %v2079_v48  ;;  %v2141_v53 = vsel %vm6381_vm10, 0, %v2140_v51  ;;  %v1335_v47 = vadd.f32 %v6298_v45, %v6128_v33  ;;  %v6440_v33 = vld [vmem:[%s7385_s2] ss:$0 sm:$0xff]  ;;  %v2091_v45 = vsel %vm6373_vm8, 0, %v2090_v36  ;;  %v1336_v51 = vadd.f32 %v6332_v22, %v6145_v50 }
 0x13d   :  { %2142 = vst [vmem:[#allocation2 + $0x4] sm:$0x1] %v2141_v53 }
 0x13e   :  { %2092 = vst [vmem:[#allocation2 + $0x20] sm:$0x1] %v2091_v45  ;;  %v2379_v45 = vld [vmem:[#allocation2 + $0x8] sm:$0xf] }
 0x13f   :  { %v649_v27 = vpop.f32.mrf.mxu2  ;;  %2095 = vst [vmem:[#allocation2 + $0x28] sm:$0x1] %v2094_v17 }
 0x140   :  { %v668_v29 = vadd.f32 %v649_v27, %v6083_v25  ;;  %v6406_v25 = vpop.f32.mrf.mxu1 }
 0x141   :  { %v6396_v32 = vpop.f32.mrf.mxu3  ;;  %v6399_v34 = vpop.f32.mrf.mxu0 }
 0x142   :  { %v822_v39 = vadd.f32 %v803_v8, %v668_v29  ;;  %v3201_v8 = vld [vmem:[%s7386_s3 + $0x4] sm:$0xc] }
 0x143   :  { %v3243_v20 = vunpack.c.l.b16 %v3201_v8  ;;  %v2155_v8 = vld [vmem:[#allocation2 + $0x2c] sm:$0x1]  ;;  %v2475_v22 = vld [vmem:[#allocation2] sm:$0xf] }
 0x144   :  { %v6408_v46 = vadd.f32 %v953_v21, %v822_v39  ;;  %v2156_v50 = vsel %vm6381_vm10, 0, %v2155_v8  ;;  %v2509_v5 = vshrl.u32 %v2475_v22, 16 }
 0x145   :  { %v3244_v27 = vpack.c.b16 %v3243_v20, %v3243_v20  ;;  %2157 = vst [vmem:[#allocation2 + $0x2c] sm:$0x1] %v2156_v50  ;;  %v2492_v50 = vld [vmem:[#allocation2 + $0x4] sm:$0x1] }
 0x147   :  { %v6415_v57 = vpop.f32.mrf.mxu2  ;;  %v3245_v41 = vrot.slane %v3244_v27, 2  ;;  %v1337_v27 = vadd.f32 %v6350_v56, %v6166_v35  ;;  %v2096_v35 = vld [vmem:[#allocation2 + $0x30] sm:$0x1]  ;;  %v2158_v56 = vld [vmem:[#allocation2 + $0x34] sm:$0x1] }
 0x148   :  { %v6431_v11 = vpop.f32.mrf.mxu1 }
 0x149   :  { %v1599_v60 = vpop.f32.mrf.mxu3  ;;  %v1972_v43 = vpop.f32.mrf.mxu0  ;;  %v3271_v48 = vsel %vm125_vm0, %v3245_v41, 0 }
 0x14a   :  { %3280 = vmatpush.bf16.msrb.mxu0 %v3271_v48 }
 0x14f   :  { %v1445_v21 = vpop.f32.mrf.mxu2 }
 0x150   :  { %v1485_v23 = vadd.f32 %v1445_v21, %v1335_v47  ;;  %v6450_v30 = vpop.f32.mrf.mxu1 }
 0x151   :  { %v1601_v13 = vpop.f32.mrf.mxu3  ;;  %v1974_v29 = vpop.f32.mrf.mxu0 }
 0x152   :  { %v1639_v39 = vadd.f32 %v1599_v60, %v1485_v23  ;;  %v2512_v23 = vshll.u32 %v2475_v22, 16  ;;  %v2953_v22 = vld [vmem:[#allocation2] sm:$0xe] }
 0x154   :  { %v2012_v42 = vadd.f32 %v1972_v43, %v1639_v39 }
 0x156   :  { %v2032_v53 = vadd.f32 %v6440_v33, %v2012_v42 }
 0x157   :  { %v1447_v60 = vpop.f32.mrf.mxu2 }
 0x158   :  { %v2048_v2 = vmax.f32 %v2032_v53, 0.0  ;;  %v1486_v62 = vadd.f32 %v1447_v60, %v1336_v51  ;;  %v6465_v6 = vpop.f32.mrf.mxu1 }
 0x159   :  { %v1604_v4 = vpop.f32.mrf.mxu3  ;;  %v1977_v38 = vpop.f32.mrf.mxu0 }
 0x15a   :  { %v2200_v47 = vpack.c.bf16 %v2048_v2, %v2048_v2  ;;  %v1640_v43 = vadd.f32 %v1601_v13, %v1486_v62  ;;  %v2511_v2 = vrot.slane %v2509_v5, 4  ;;  %v2514_v62 = vrot.slane %v2512_v23, 5 }
 0x15c   :  { %v2217_v20 = vshrl.u32 %v2200_v47, 16  ;;  %v2013_v21 = vadd.f32 %v1974_v29, %v1640_v43  ;;  %v2220_v37 = vshll.u32 %v2200_v47, 16 }
 0x15e   :  { %v2219_v36 = vrot.slane %v2217_v20, 7  ;;  %v2033_v13 = vadd.f32 %v6440_v33, %v2013_v21  ;;  %v2097_v20 = vsel %vm6373_vm8, 0, %v2096_v35  ;;  %v2159_v21 = vsel %vm6381_vm10, 0, %v2158_v56 }
 0x15f   :  { %v1450_v41 = vpop.f32.mrf.mxu2  ;;  %2098 = vst [vmem:[#allocation2 + $0x30] sm:$0x1] %v2097_v20 }
 0x160   :  { %v2222_v29 = vor.u32 %v2220_v37, %v2219_v36  ;;  %v2223_v42 = vrot.slane %v2219_v36, 4  ;;  %v2049_v48 = vmax.f32 %v2033_v13, 0.0  ;;  %v1487_v51 = vadd.f32 %v1450_v41, %v1337_v27  ;;  %2160 = vst [vmem:[#allocation2 + $0x34] sm:$0x1] %v2159_v21 }
 0x161   :  { %v1606_v53 = vpop.f32.mrf.mxu3  ;;  %v1979_v60 = vpop.f32.mrf.mxu0  ;;  %v5213_v27 = vrot.slane %v2953_v22, 9  ;;  %v3006_v36 = vrot.slane %v2492_v50, 5  ;;  %v2515_v37 = vor.u32 %v2514_v62, %v2511_v2  ;;  %v2518_v13 = vshll.u32 %v2492_v50, 16 }
 0x162   :  { %v2380_v8 = vsel %vm6461_vm11, %v2222_v29, %v2379_v45  ;;  %v2383_v47 = vsel %vm6373_vm8, %v2223_v42, %v2382_v40  ;;  %v2201_v43 = vpack.c.bf16 %v2049_v48, %v2049_v48  ;;  %v1641_v17 = vadd.f32 %v1604_v4, %v1487_v51  ;;  %v2388_v42 = vld [vmem:[#allocation2 + $0x14] sm:$0x1] }
 0x163   :  { %2381 = vst [vmem:[#allocation2 + $0x8] sm:$0xf] %v2380_v8  ;;  %v1338_v4 = vadd.f32 %v6385_v44, %v6183_v49  ;;  %v5175_v49 = vld [vmem:[#allocation2] sm:$0xf]  ;;  %v3007_v8 = vsel %vm6480_vm14, %v5213_v27, %v3006_v36  ;;  %v6500_v27 = vadd.f32 %v6431_v11, %v6220_v61 }
 0x164   :  { %2384 = vst [vmem:[#allocation2 + $0xc] sm:$0x1] %v2383_v47  ;;  %v2225_v5 = vshrl.u32 %v2201_v43, 16  ;;  %v2014_v23 = vadd.f32 %v1977_v38, %v1641_v17  ;;  %v2228_v40 = vshll.u32 %v2201_v43, 16  ;;  %v2385_v38 = vld [vmem:[#allocation2 + $0x10] sm:$0xf]  ;;  %v3069_v61 = vunpack.c.l.b16 %v3007_v8 }
 0x165   :  { %v6488_v47 = vrot.slane %v2515_v37, 4  ;;  %v6490_v43 = vrot.slane %v2518_v13, 5 }
 0x166   :  { %v2227_v45 = vrot.slane %v2225_v5, 7  ;;  %v2034_v41 = vadd.f32 %v6440_v33, %v2014_v23  ;;  %v1339_v23 = vadd.f32 %v6406_v25, %v6203_v26  ;;  %v663_v26 = vadd.f32 %v6296_v31, %v5965_v12  ;;  %v3594_v12 = vld [vmem:[%s7386_s3 + $0x8] sm:$0x3]  ;;  %v2394_v31 = vld [vmem:[#allocation2 + $0x1c] sm:$0x1] }
 0x167   :  { %v1452_v48 = vpop.f32.mrf.mxu2 }
 0x168   :  { %v2230_v51 = vor.u32 %v2228_v40, %v2227_v45  ;;  %v2231_v35 = vrot.slane %v2227_v45, 4  ;;  %v2050_v56 = vmax.f32 %v2034_v41, 0.0  ;;  %v1488_v2 = vadd.f32 %v1452_v48, %v1338_v4  ;;  %v1315_v45 = vpop.f32.mrf.mxu1 }
 0x169   :  { %v1609_v62 = vpop.f32.mrf.mxu3  ;;  %v6484_v44 = vpop.f32.mrf.mxu0  ;;  %v6504_v4 = vadd.f32 %v6450_v30, %v6240_v28  ;;  %v2391_v30 = vld [vmem:[#allocation2 + $0x18] sm:$0xf] }
 0x16a   :  { %v2386_v17 = vsel %vm6461_vm11, %v2230_v51, %v2385_v38  ;;  %v2389_v50 = vsel %vm6373_vm8, %v2231_v35, %v2388_v42  ;;  %v2202_v22 = vpack.c.bf16 %v2050_v56, %v2050_v56  ;;  %v1642_v20 = vadd.f32 %v1606_v53, %v1488_v2  ;;  %v5429_v21 = vld [vmem:[#allocation2 + $0x4] sm:$0xf0] }
 0x16b   :  { %v2954_v5 = vld [vmem:[#allocation2 + $0x8] sm:$0xe]  ;;  %2387 = vst [vmem:[#allocation2 + $0x10] sm:$0xf] %v2386_v17  ;;  %v5176_v36 = vor.u32 %v5429_v21, %v5175_v49  ;;  %v2493_v37 = vld [vmem:[#allocation2 + $0xc] sm:$0x1]  ;;  %v2521_v38 = vsel %vm5667_vm4, %v6488_v47, %v6490_v43 }
 0x16c   :  { %v5214_v13 = vrot.slane %v2954_v5, 9  ;;  %2390 = vst [vmem:[#allocation2 + $0x14] sm:$0x1] %v2389_v50  ;;  %v2233_v53 = vshrl.u32 %v2202_v22, 16  ;;  %v2015_v40 = vadd.f32 %v1979_v60, %v1642_v20  ;;  %v3010_v41 = vrot.slane %v2493_v37, 5 }
 0x16d   :  { %v2236_v25 = vshll.u32 %v2202_v22, 16  ;;  %5205 = vmatmul.msk.bf16.vlgmr.msrb.gmra.mxu2 %vm100_vm1, %v5176_v36  ;;  %v2476_v11 = vld [vmem:[#allocation2 + $0x8] sm:$0xf]  ;;  %v2532_v2 = vshll.u32 %v2493_v37, 16  ;;  %v3644_v49 = vsel %vm125_vm0, %v3594_v12, 0 }
 0x16e   :  { %v2235_v28 = vrot.slane %v2233_v53, 7  ;;  %v2035_v42 = vadd.f32 %v6440_v33, %v2015_v40  ;;  %v3011_v60 = vsel %vm6480_vm14, %v5214_v13, %v3010_v41  ;;  %v2523_v48 = vshrl.u32 %v2476_v11, 16  ;;  %3653 = vmatpush.bf16.msrb.mxu1 %v3644_v49  ;;  %v2099_v21 = vld [vmem:[#allocation2 + $0x38] sm:$0x1]  ;;  %v2161_v5 = vld [vmem:[#allocation2 + $0x3c] sm:$0x1] }
 0x16f   :  { %v1455_v51 = vpop.f32.mrf.mxu2  ;;  %v3070_v35 = vunpack.c.l.b16 %v3011_v60  ;;  %v2526_v56 = vshll.u32 %v2476_v11, 16  ;;  %v2534_v41 = vrot.slane %v2532_v2, 5  ;;  %v6538_v2 = vadd.f32 %v6465_v6, %v6257_v0  ;;  %v2164_v6 = vld [vmem:[#allocation2 + $0x44] sm:$0x1] }
 0x170   :  { %v2238_v8 = vor.u32 %v2236_v25, %v2235_v28  ;;  %v2239_v17 = vrot.slane %v2235_v28, 4  ;;  %v2051_v50 = vmax.f32 %v2035_v42, 0.0  ;;  %v1489_v22 = vadd.f32 %v1455_v51, %v1339_v23  ;;  %v5239_v23 = vld [vmem:[#allocation2 + $0x8] sm:$0xf] }
 0x171   :  { %v6520_v20 = vpop.f32.mrf.mxu3  ;;  %v3085_v36 = vpack.c.b16 %v3070_v35, %v3069_v61  ;;  %v6522_v13 = vpop.f32.mrf.mxu0  ;;  %v2525_v53 = vrot.slane %v2523_v48, 4  ;;  %v2528_v40 = vrot.slane %v2526_v56, 5  ;;  %v2100_v48 = vsel %vm6373_vm8, 0, %v2099_v21  ;;  %v2102_v21 = vld [vmem:[#allocation2 + $0x40] sm:$0x1] }
 0x172   :  { %v2392_v37 = vsel %vm6461_vm11, %v2238_v8, %v2391_v30  ;;  %v2395_v25 = vsel %vm6373_vm8, %v2239_v17, %v2394_v31  ;;  %v2203_v11 = vpack.c.bf16 %v2051_v50, %v2051_v50  ;;  %v1643_v28 = vadd.f32 %v1609_v62, %v1489_v22  ;;  %v5437_v42 = vld [vmem:[#allocation2 + $0xc] sm:$0xf0]  ;;  %v2397_v8 = vld [vmem:[#allocation2 + $0x20] sm:$0xf]  ;;  %v2400_v17 = vld [vmem:[#allocation2 + $0x24] sm:$0x1] }
 0x173   :  { %v2955_v60 = vld [vmem:[#allocation2 + $0x10] sm:$0xe]  ;;  %2393 = vst [vmem:[#allocation2 + $0x18] sm:$0xf] %v2392_v37  ;;  %5229 = vmatmul.msk.bf16.vlgmr.msrb.gmra.mxu3 %vm100_vm1, %v3085_v36  ;;  %v5240_v61 = vor.u32 %v5437_v42, %v5239_v23  ;;  %v2529_v12 = vor.u32 %v2528_v40, %v2525_v53  ;;  %v2162_v51 = vsel %vm6381_vm10, 0, %v2161_v5  ;;  %v6541_v49 = vadd.f32 %v1315_v45, %v6284_v18 }
 0x174   :  { %v6533_v30 = vld [vmem:[#allocation2 + $0x14] sm:$0x1]  ;;  %2396 = vst [vmem:[#allocation2 + $0x1c] sm:$0x1] %v2395_v25  ;;  %v2241_v31 = vshrl.u32 %v2203_v11, 16  ;;  %v2244_v35 = vshll.u32 %v2203_v11, 16  ;;  %v2016_v62 = vadd.f32 %v6484_v44, %v1643_v28  ;;  %v817_v5 = vadd.f32 %v6277_v9, %v663_v26  ;;  %v6546_v44 = vpop.f32.mrf.mxu1 }
 0x175   :  { %v5215_v56 = vrot.slane %v2955_v60, 9  ;;  %5269 = vmatmul.msk.bf16.vlgmr.msrb.gmra.mxu0 %vm100_vm1, %v5240_v61  ;;  %v2530_v50 = vrot.slane %v2529_v12, 4  ;;  %2101 = vst [vmem:[#allocation2 + $0x38] sm:$0x1] %v2100_v48  ;;  %v3014_v22 = vrot.slane %v6533_v30, 5  ;;  %v2103_v18 = vsel %vm6373_vm8, 0, %v2102_v21 }
 0x176   :  { %v2243_v36 = vrot.slane %v2241_v31, 7  ;;  %v2036_v0 = vadd.f32 %v6440_v33, %v2016_v62  ;;  %2163 = vst [vmem:[#allocation2 + $0x3c] sm:$0x1] %v2162_v51  ;;  %v2733_v9 = vunpack.c.l.b16 %v2521_v38  ;;  %v2165_v40 = vsel %vm6381_vm10, 0, %v2164_v6  ;;  %v2477_v37 = vld [vmem:[#allocation2 + $0x10] sm:$0xf] }
 0x177   :  { %v1457_v45 = vpop.f32.mrf.mxu2  ;;  %v2535_v53 = vsel %vm5667_vm4, %v2530_v50, %v2534_v41  ;;  %v6560_v26 = vsel %vm6480_vm14, %v5215_v56, %v3014_v22  ;;  %2104 = vst [vmem:[#allocation2 + $0x40] sm:$0x1] %v2103_v18  ;;  %v2537_v47 = vshrl.u32 %v2477_v37, 16  ;;  %v2540_v43 = vshll.u32 %v2477_v37, 16  ;;  %v5179_v31 = vld [vmem:[#allocation2 + $0x10] sm:$0xf] }
 0x178   :  { %v2246_v25 = vor.u32 %v2244_v35, %v2243_v36  ;;  %v2247_v11 = vrot.slane %v2243_v36, 4  ;;  %v2052_v28 = vmax.f32 %v2036_v0, 0.0  ;;  %v1490_v41 = vadd.f32 %v1457_v45, %v6500_v27  ;;  %2166 = vst [vmem:[#allocation2 + $0x44] sm:$0x1] %v2165_v40 }
 0x179   :  { %v1614_v23 = vpop.f32.mrf.mxu3  ;;  %v2734_v42 = vunpack.c.l.b16 %v2535_v53  ;;  %v6565_v60 = vpop.f32.mrf.mxu0  ;;  %v2546_v38 = vshll.u32 %v6533_v30, 16  ;;  %v2539_v21 = vrot.slane %v2537_v47, 4  ;;  %v6576_v30 = vadd.f32 %v6279_v15, %v817_v5 }
 0x17a   :  { %v2398_v61 = vsel %vm6461_vm11, %v2246_v25, %v2397_v8  ;;  %v2401_v12 = vsel %vm6373_vm8, %v2247_v11, %v2400_v17  ;;  %v2204_v48 = vpack.c.bf16 %v2052_v28, %v2052_v28  ;;  %v1644_v51 = vadd.f32 %v6520_v20, %v1490_v41  ;;  %v5430_v27 = vld [vmem:[#allocation2 + $0x14] sm:$0xf0] }
 0x17b   :  { %v2956_v35 = vld [vmem:[#allocation2 + $0x18] sm:$0xe]  ;;  %2399 = vst [vmem:[#allocation2 + $0x20] sm:$0xf] %v2398_v61  ;;  %v2749_v62 = vpack.c.b16 %v2734_v42, %v2733_v9  ;;  %v5180_v56 = vor.u32 %v5430_v27, %v5179_v31  ;;  %v6573_v50 = vld [vmem:[#allocation2 + $0x1c] sm:$0x1]  ;;  %v665_v8 = vadd.f32 %v6340_v16, %v6021_v19  ;;  %v3071_v18 = vunpack.c.l.b16 %v6560_v26 }
 0x17c   :  { %v5216_v22 = vrot.slane %v2956_v35, 9  ;;  %2402 = vst [vmem:[#allocation2 + $0x24] sm:$0x1] %v2401_v12  ;;  %v2249_v17 = vshrl.u32 %v2204_v48, 16  ;;  %v2017_v20 = vadd.f32 %v6522_v13, %v1644_v51  ;;  %v2252_v36 = vshll.u32 %v2204_v48, 16  ;;  %v6589_v28 = vpop.f32.mrf.mxu1 }
 0x17d   :  { %5165 = vmatmul.msk.bf16.vlgmr.msra.gmra.mxu1 %vm100_vm1, %v2749_v62  ;;  %5206 = vmatmul.msk.bf16.gmra.mxu2 %vm100_vm1, %v5180_v56  ;;  %v3018_v0 = vrot.slane %v6573_v50, 5  ;;  %v2478_v6 = vld [vmem:[#allocation2 + $0x18] sm:$0xf]  ;;  %v2542_v45 = vrot.slane %v2540_v43, 5  ;;  %v2548_v53 = vrot.slane %v2546_v38, 5  ;;  %v2560_v11 = vshll.u32 %v6573_v50, 16 }
 0x17e   :  { %v2251_v15 = vrot.slane %v2249_v17, 7  ;;  %v2037_v5 = vadd.f32 %v6440_v33, %v2017_v20  ;;  %v2551_v19 = vshrl.u32 %v2478_v6, 16  ;;  %v2403_v16 = vld [vmem:[#allocation2 + $0x28] sm:$0xf]  ;;  %v2406_v9 = vld [vmem:[#allocation2 + $0x2c] sm:$0x1] }
 0x17f   :  { %v1460_v40 = vpop.f32.mrf.mxu2  ;;  %v3019_v13 = vsel %vm6480_vm14, %v5216_v22, %v3018_v0  ;;  %v2543_v37 = vor.u32 %v2542_v45, %v2539_v21  ;;  %v2554_v25 = vshll.u32 %v2478_v6, 16  ;;  %v5243_v12 = vld [vmem:[#allocation2 + $0x18] sm:$0xf]  ;;  %v819_v21 = vadd.f32 %v6315_v63, %v665_v8 }
 0x180   :  { %v2254_v26 = vor.u32 %v2252_v36, %v2251_v15  ;;  %v2255_v41 = vrot.slane %v2251_v15, 4  ;;  %v2053_v42 = vmax.f32 %v2037_v5, 0.0  ;;  %v1491_v47 = vadd.f32 %v1460_v40, %v6504_v4  ;;  %v2111_v22 = vld [vmem:[#allocation2 + $0x58] sm:$0x1]  ;;  %v2173_v4 = vld [vmem:[#allocation2 + $0x5c] sm:$0x1] }
 0x181   :  { %v6592_v43 = vpop.f32.mrf.mxu3  ;;  %v3072_v38 = vunpack.c.l.b16 %v3019_v13  ;;  %v6594_v61 = vpop.f32.mrf.mxu0  ;;  %v2544_v48 = vrot.slane %v2543_v37, 4  ;;  %v2553_v51 = vrot.slane %v2551_v19, 4  ;;  %v2556_v31 = vrot.slane %v2554_v25, 5 }
 0x182   :  { %v2404_v27 = vsel %vm6461_vm11, %v2254_v26, %v2403_v16  ;;  %v2407_v35 = vsel %vm6373_vm8, %v2255_v41, %v2406_v9  ;;  %v2205_v62 = vpack.c.bf16 %v2053_v42, %v2053_v42  ;;  %v1645_v56 = vadd.f32 %v1614_v23, %v1491_v47  ;;  %v5438_v50 = vld [vmem:[#allocation2 + $0x1c] sm:$0xf0]  ;;  %v2409_v16 = vld [vmem:[#allocation2 + $0x30] sm:$0xf]  ;;  %v2412_v9 = vld [vmem:[#allocation2 + $0x34] sm:$0x1] }
 0x183   :  { %2405 = vst [vmem:[#allocation2 + $0x28] sm:$0xf] %v2404_v27  ;;  %v3086_v17 = vpack.c.b16 %v3072_v38, %v3071_v18  ;;  %v5244_v20 = vor.u32 %v5438_v50, %v5243_v12  ;;  %v2557_v36 = vor.u32 %v2556_v31, %v2553_v51  ;;  %v6601_v0 = vld [vmem:[#allocation2 + $0x24] sm:$0x1]  ;;  %v2957_v6 = vld [vmem:[#allocation2 + $0x20] sm:$0xe]  ;;  %v2549_v23 = vsel %vm5667_vm4, %v2544_v48, %v2548_v53 }
 0x184   :  { %2408 = vst [vmem:[#allocation2 + $0x2c] sm:$0x1] %v2407_v35  ;;  %v2257_v45 = vshrl.u32 %v2205_v62, 16  ;;  %v2260_v15 = vshll.u32 %v2205_v62, 16  ;;  %v2018_v5 = vadd.f32 %v6565_v60, %v1645_v56  ;;  %v6606_v19 = vld [vmem:[#allocation2 + $0x20] sm:$0xf]  ;;  %v969_v26 = vadd.f32 %v6321_v52, %v819_v21 }
 0x185   :  { %5230 = vmatmul.msk.bf16.gmra.mxu3 %vm100_vm1, %v3086_v17  ;;  %5270 = vmatmul.msk.bf16.gmra.mxu0 %vm100_vm1, %v5244_v20  ;;  %v2558_v63 = vrot.slane %v2557_v36, 4  ;;  %v2562_v8 = vrot.slane %v2560_v11, 5  ;;  %v2112_v18 = vsel %vm6373_vm8, 0, %v2111_v22  ;;  %v2174_v40 = vsel %vm6381_vm10, 0, %v2173_v4  ;;  %v2114_v60 = vld [vmem:[#allocation2 + $0x60] sm:$0x1]  ;;  %v1322_v22 = vpop.f32.mrf.mxu1 }
 0x186   :  { %v2259_v13 = vrot.slane %v2257_v45, 7  ;;  %v2038_v53 = vadd.f32 %v6440_v33, %v2018_v5  ;;  %2113 = vst [vmem:[#allocation2 + $0x58] sm:$0x1] %v2112_v18  ;;  %v5217_v37 = vrot.slane %v2957_v6, 9  ;;  %v3022_v25 = vrot.slane %v6601_v0, 5 }
 0x187   :  { %v1462_v41 = vpop.f32.mrf.mxu2  ;;  %v2563_v11 = vsel %vm5667_vm4, %v2558_v63, %v2562_v8  ;;  %v2735_v42 = vunpack.c.l.b16 %v2549_v23  ;;  %2175 = vst [vmem:[#allocation2 + $0x5c] sm:$0x1] %v2174_v40  ;;  %v2115_v47 = vsel %vm6373_vm8, 0, %v2114_v60  ;;  %v2176_v38 = vld [vmem:[#allocation2 + $0x64] sm:$0x1]  ;;  %v2565_v50 = vshrl.u32 %v6606_v19, 16 }
 0x188   :  { %v2262_v12 = vor.u32 %v2260_v15, %v2259_v13  ;;  %v2263_v48 = vrot.slane %v2259_v13, 4  ;;  %v2054_v51 = vmax.f32 %v2038_v53, 0.0  ;;  %v1492_v31 = vadd.f32 %v1462_v41, %v6538_v2  ;;  %2116 = vst [vmem:[#allocation2 + $0x60] sm:$0x1] %v2115_v47  ;;  %v5183_v20 = vld [vmem:[#allocation2 + $0x20] sm:$0xf] }
 0x189   :  { %v1619_v27 = vpop.f32.mrf.mxu3  ;;  %v2736_v35 = vunpack.c.l.b16 %v2563_v11  ;;  %v6622_v62 = vpop.f32.mrf.mxu0  ;;  %v3023_v52 = vsel %vm6480_vm14, %v5217_v37, %v3022_v25  ;;  %v2177_v56 = vsel %vm6381_vm10, 0, %v2176_v38  ;;  %v6636_v45 = vadd.f32 %v6546_v44, %v6576_v30  ;;  %v2415_v53 = vld [vmem:[#allocation2 + $0x38] sm:$0xf]  ;;  %v2418_v37 = vld [vmem:[#allocation2 + $0x3c] sm:$0x1] }
 0x18a   :  { %v2410_v4 = vsel %vm6461_vm11, %v2262_v12, %v2409_v16  ;;  %v2413_v2 = vsel %vm6373_vm8, %v2263_v48, %v2412_v9  ;;  %v2206_v21 = vpack.c.bf16 %v2054_v51, %v2054_v51  ;;  %v1646_v17 = vadd.f32 %v6592_v43, %v1492_v31  ;;  %v5431_v36 = vld [vmem:[#allocation2 + $0x24] sm:$0xf0]  ;;  %2178 = vst [vmem:[#allocation2 + $0x64] sm:$0x1] %v2177_v56 }
 0x18b   :  { %v2958_v6 = vld [vmem:[#allocation2 + $0x28] sm:$0xe]  ;;  %2411 = vst [vmem:[#allocation2 + $0x30] sm:$0xf] %v2410_v4  ;;  %v2750_v15 = vpack.c.b16 %v2736_v35, %v2735_v42  ;;  %v5184_v5 = vor.u32 %v5431_v36, %v5183_v20  ;;  %v2497_v23 = vld [vmem:[#allocation2 + $0x2c] sm:$0x1]  ;;  %v6640_v16 = vadd.f32 %v6589_v28, %v6323_v10  ;;  %v6643_v18 = vadd.f32 %v1322_v22, %v969_v26 }
 0x18c   :  { %v5218_v63 = vrot.slane %v2958_v6, 9  ;;  %2414 = vst [vmem:[#allocation2 + $0x34] sm:$0x1] %v2413_v2  ;;  %v2265_v9 = vshrl.u32 %v2206_v21, 16  ;;  %v2019_v43 = vadd.f32 %v6594_v61, %v1646_v17  ;;  %v3026_v8 = vrot.slane %v2497_v23, 5 }
 0x18d   :  { %v2268_v40 = vshll.u32 %v2206_v21, 16  ;;  %5166 = vmatmul.msk.bf16.gmra.mxu1 %vm100_vm1, %v2750_v15  ;;  %5207 = vmatmul.msk.bf16.gmra.mxu2 %vm100_vm1, %v5184_v5  ;;  %v3073_v44 = vunpack.c.l.b16 %v3023_v52  ;;  %v2480_v30 = vld [vmem:[#allocation2 + $0x28] sm:$0xf]  ;;  %v2567_v60 = vrot.slane %v2565_v50, 4  ;;  %v2568_v61 = vshll.u32 %v6606_v19, 16 }
 0x18e   :  { %v2267_v13 = vrot.slane %v2265_v9, 7  ;;  %v2039_v10 = vadd.f32 %v6440_v33, %v2019_v43  ;;  %v3027_v28 = vsel %vm6480_vm14, %v5218_v63, %v3026_v8  ;;  %v2574_v41 = vshll.u32 %v6601_v0, 16  ;;  %v5247_v52 = vld [vmem:[#allocation2 + $0x28] sm:$0xf]  ;;  %v2179_v17 = vld [vmem:[#allocation2 + $0x6c] sm:$0x1] }
 0x18f   :  { %v1465_v25 = vpop.f32.mrf.mxu2  ;;  %v3074_v26 = vunpack.c.l.b16 %v3027_v28  ;;  %v2579_v11 = vshrl.u32 %v2480_v30, 16  ;;  %v2582_v42 = vshll.u32 %v2480_v30, 16  ;;  %v2570_v56 = vrot.slane %v2568_v61, 5 }
 0x190   :  { %v2270_v47 = vor.u32 %v2268_v40, %v2267_v13  ;;  %v2271_v38 = vrot.slane %v2267_v13, 4  ;;  %v2055_v12 = vmax.f32 %v2039_v10, 0.0  ;;  %v1493_v48 = vadd.f32 %v1465_v25, %v6541_v49  ;;  %v2117_v49 = vld [vmem:[#allocation2 + $0x68] sm:$0x1] }
 0x191   :  { %v6653_v51 = vpop.f32.mrf.mxu3  ;;  %v3087_v31 = vpack.c.b16 %v3074_v26, %v3073_v44  ;;  %v6655_v35 = vpop.f32.mrf.mxu0  ;;  %v6657_v19 = vrot.slane %v2574_v41, 5  ;;  %v2581_v50 = vrot.slane %v2579_v11, 4  ;;  %v2571_v36 = vor.u32 %v2570_v56, %v2567_v60  ;;  %v2424_v44 = vld [vmem:[#allocation2 + $0x44] sm:$0x1] }
 0x192   :  { %v2416_v0 = vsel %vm6461_vm11, %v2270_v47, %v2415_v53  ;;  %v2419_v22 = vsel %vm6373_vm8, %v2271_v38, %v2418_v37  ;;  %v2207_v4 = vpack.c.bf16 %v2055_v12, %v2055_v12  ;;  %v1647_v2 = vadd.f32 %v1619_v27, %v1493_v48  ;;  %v5439_v21 = vld [vmem:[#allocation2 + $0x2c] sm:$0xf0]  ;;  %v2421_v27 = vld [vmem:[#allocation2 + $0x40] sm:$0xf]  ;;  %v2182_v48 = vld [vmem:[#allocation2 + $0x74] sm:$0x1] }
 0x193   :  { %2417 = vst [vmem:[#allocation2 + $0x38] sm:$0xf] %v2416_v0  ;;  %v5248_v20 = vor.u32 %v5439_v21, %v5247_v52  ;;  %v2584_v6 = vrot.slane %v2582_v42, 5  ;;  %v2588_v15 = vshll.u32 %v2497_v23, 16  ;;  %v2959_v5 = vld [vmem:[#allocation2 + $0x30] sm:$0xe]  ;;  %v667_v63 = vadd.f32 %v6370_v7, %v6065_v1  ;;  %v1325_v7 = vpop.f32.mrf.mxu1 }
 0x194   :  { %2420 = vst [vmem:[#allocation2 + $0x3c] sm:$0x1] %v2419_v22  ;;  %v2273_v9 = vshrl.u32 %v2207_v4, 16  ;;  %v2276_v43 = vshll.u32 %v2207_v4, 16  ;;  %v2020_v8 = vadd.f32 %v6622_v62, %v1647_v2  ;;  %v6666_v40 = vld [vmem:[#allocation2 + $0x34] sm:$0x1] }
 0x195   :  { %5231 = vmatmul.msk.bf16.gmra.mxu3 %vm100_vm1, %v3087_v31  ;;  %5271 = vmatmul.msk.bf16.gmra.mxu0 %vm100_vm1, %v5248_v20  ;;  %v2572_v30 = vrot.slane %v2571_v36, 4  ;;  %v2585_v60 = vor.u32 %v2584_v6, %v2581_v50  ;;  %v2590_v23 = vrot.slane %v2588_v15, 5  ;;  %v2118_v13 = vsel %vm6373_vm8, 0, %v2117_v49  ;;  %v2120_v1 = vld [vmem:[#allocation2 + $0x70] sm:$0x1] }
 0x196   :  { %v2275_v53 = vrot.slane %v2273_v9, 7  ;;  %v2040_v10 = vadd.f32 %v6440_v33, %v2020_v8  ;;  %2119 = vst [vmem:[#allocation2 + $0x68] sm:$0x1] %v2118_v13  ;;  %v2180_v62 = vsel %vm6381_vm10, 0, %v2179_v17  ;;  %v5219_v28 = vrot.slane %v2959_v5, 9 }
 0x197   :  { %v1467_v61 = vpop.f32.mrf.mxu2  ;;  %v2577_v37 = vsel %vm5667_vm4, %v2572_v30, %v6657_v19  ;;  %v2586_v25 = vrot.slane %v2585_v60, 4  ;;  %2181 = vst [vmem:[#allocation2 + $0x6c] sm:$0x1] %v2180_v62  ;;  %v3030_v26 = vrot.slane %v6666_v40, 5  ;;  %v2121_v41 = vsel %vm6373_vm8, 0, %v2120_v1 }
 0x198   :  { %v2278_v11 = vor.u32 %v2276_v43, %v2275_v53  ;;  %v2279_v42 = vrot.slane %v2275_v53, 4  ;;  %v2056_v47 = vmax.f32 %v2040_v10, 0.0  ;;  %v1494_v38 = vadd.f32 %v1467_v61, %v6636_v45  ;;  %2122 = vst [vmem:[#allocation2 + $0x70] sm:$0x1] %v2121_v41  ;;  %v5187_v19 = vld [vmem:[#allocation2 + $0x30] sm:$0xf] }
 0x199   :  { %v1624_v12 = vpop.f32.mrf.mxu3  ;;  %v821_v31 = vadd.f32 %v6353_v58, %v667_v63  ;;  %v2591_v52 = vsel %vm5667_vm4, %v2586_v25, %v2590_v23  ;;  %v6685_v56 = vpop.f32.mrf.mxu0  ;;  %v3031_v50 = vsel %vm6480_vm14, %v5219_v28, %v3030_v26  ;;  %v2183_v0 = vsel %vm6381_vm10, 0, %v2182_v48  ;;  %v2481_v49 = vld [vmem:[#allocation2 + $0x30] sm:$0xf]  ;;  %v2427_v23 = vld [vmem:[#allocation2 + $0x58] sm:$0xf] }
 0x19a   :  { %v2422_v45 = vsel %vm6461_vm11, %v2278_v11, %v2421_v27  ;;  %v2425_v22 = vsel %vm6373_vm8, %v2279_v42, %v2424_v44  ;;  %v2208_v4 = vpack.c.bf16 %v2056_v47, %v2056_v47  ;;  %v1648_v58 = vadd.f32 %v6653_v51, %v1494_v38  ;;  %v5432_v2 = vld [vmem:[#allocation2 + $0x34] sm:$0xf0]  ;;  %2184 = vst [vmem:[#allocation2 + $0x74] sm:$0x1] %v2183_v0  ;;  %v2430_v1 = vld [vmem:[#allocation2 + $0x5c] sm:$0x1] }
 0x19b   :  { %v2960_v21 = vld [vmem:[#allocation2 + $0x38] sm:$0xe]  ;;  %2423 = vst [vmem:[#allocation2 + $0x40] sm:$0xf] %v2422_v45  ;;  %v2737_v17 = vunpack.c.l.b16 %v2577_v37  ;;  %v2738_v20 = vunpack.c.l.b16 %v2591_v52  ;;  %v5188_v36 = vor.u32 %v5432_v2, %v5187_v19  ;;  %v6696_v6 = vld [vmem:[#allocation2 + $0x3c] sm:$0x1]  ;;  %v6699_v5 = vadd.f32 %v1325_v7, %v6361_v3  ;;  %v1327_v28 = vpop.f32.mrf.mxu1 }
 0x19c   :  { %v5220_v15 = vrot.slane %v2960_v21, 9  ;;  %2426 = vst [vmem:[#allocation2 + $0x44] sm:$0x1] %v2425_v22  ;;  %v2281_v63 = vshrl.u32 %v2208_v4, 16  ;;  %v2021_v9 = vadd.f32 %v6655_v35, %v1648_v58  ;;  %v3034_v43 = vrot.slane %v6696_v6, 5 }
 0x19d   :  { %v6704_v51 = vadd.f32 %v6355_v59, %v821_v31  ;;  %v2284_v8 = vshll.u32 %v2208_v4, 16  ;;  %v2751_v27 = vpack.c.b16 %v2738_v20, %v2737_v17  ;;  %5208 = vmatmul.msk.bf16.gmra.mxu2 %vm100_vm1, %v5188_v36  ;;  %v3075_v44 = vunpack.c.l.b16 %v3031_v50  ;;  %v2482_v30 = vld [vmem:[#allocation2 + $0x38] sm:$0xf]  ;;  %v2108_v48 = vld [vmem:[#allocation2 + $0x50] sm:$0x1] }
 0x19e   :  { %v2283_v60 = vrot.slane %v2281_v63, 7  ;;  %v2041_v3 = vadd.f32 %v6440_v33, %v2021_v9  ;;  %v3035_v13 = vsel %vm6480_vm14, %v5220_v15, %v3034_v43  ;;  %v2593_v35 = vshrl.u32 %v2481_v49, 16  ;;  %v5251_v50 = vld [vmem:[#allocation2 + $0x38] sm:$0xf]  ;;  %v2185_v2 = vld [vmem:[#allocation2 + $0x7c] sm:$0x1] }
 0x19f   :  { %5167 = vmatmul.msk.bf16.gmra.mxu1 %vm100_vm1, %v2751_v27  ;;  %v1470_v59 = vpop.f32.mrf.mxu2  ;;  %v3076_v7 = vunpack.c.l.b16 %v3035_v13  ;;  %v2596_v53 = vshll.u32 %v2481_v49, 16  ;;  %v2602_v10 = vshll.u32 %v6666_v40, 16  ;;  %v2607_v62 = vshrl.u32 %v2482_v30, 16  ;;  %v2123_v45 = vld [vmem:[#allocation2 + $0x78] sm:$0x1] }
 0x1a0   :  { %v2286_v61 = vor.u32 %v2284_v8, %v2283_v60  ;;  %v2287_v37 = vrot.slane %v2283_v60, 4  ;;  %v2057_v25 = vmax.f32 %v2041_v3, 0.0  ;;  %v1495_v26 = vadd.f32 %v1470_v59, %v6640_v16  ;;  %v2170_v16 = vld [vmem:[#allocation2 + $0x54] sm:$0x1]  ;;  %v2433_v36 = vld [vmem:[#allocation2 + $0x60] sm:$0xf] }
 0x1a1   :  { %v669_v41 = vadd.f32 %v6415_v57, %v6104_v55  ;;  %v1626_v11 = vpop.f32.mrf.mxu3  ;;  %v3088_v42 = vpack.c.b16 %v3076_v7, %v3075_v44  ;;  %v2595_v47 = vrot.slane %v2593_v35, 4  ;;  %v2598_v38 = vrot.slane %v2596_v53, 5  ;;  %v1999_v22 = vpop.f32.mrf.mxu0  ;;  %v2126_v43 = vld [vmem:[#allocation2 + $0x80] sm:$0x1]  ;;  %v2436_v60 = vld [vmem:[#allocation2 + $0x64] sm:$0x1] }
 0x1a2   :  { %v2428_v31 = vsel %vm6461_vm11, %v2286_v61, %v2427_v23  ;;  %v2431_v40 = vsel %vm6373_vm8, %v2287_v37, %v2430_v1  ;;  %v2209_v52 = vpack.c.bf16 %v2057_v25, %v2057_v25  ;;  %v1649_v19 = vadd.f32 %v1624_v12, %v1495_v26  ;;  %v5440_v0 = vld [vmem:[#allocation2 + $0x3c] sm:$0xf0]  ;;  %v2188_v7 = vld [vmem:[#allocation2 + $0x84] sm:$0x1] }
 0x1a3   :  { %2429 = vst [vmem:[#allocation2 + $0x58] sm:$0xf] %v2428_v31  ;;  %v5252_v55 = vor.u32 %v5440_v0, %v5251_v50  ;;  %v2599_v57 = vor.u32 %v2598_v38, %v2595_v47  ;;  %v2609_v4 = vrot.slane %v2607_v62, 4  ;;  %v2610_v58 = vshll.u32 %v2482_v30, 16 }
 0x1a4   :  { %2432 = vst [vmem:[#allocation2 + $0x5c] sm:$0x1] %v2431_v40  ;;  %v2289_v21 = vshrl.u32 %v2209_v52, 16  ;;  %v2292_v49 = vshll.u32 %v2209_v52, 16  ;;  %v2022_v17 = vadd.f32 %v6685_v56, %v1649_v19  ;;  %v2604_v20 = vrot.slane %v2602_v10, 5 }
 0x1a5   :  { %5232 = vmatmul.msk.bf16.gmra.mxu3 %vm100_vm1, %v3088_v42  ;;  %5272 = vmatmul.msk.bf16.gmra.mxu0 %vm100_vm1, %v5252_v55  ;;  %v2600_v12 = vrot.slane %v2599_v57, 4  ;;  %v2612_v15 = vrot.slane %v2610_v58, 5  ;;  %v2616_v63 = vshll.u32 %v6696_v6, 16  ;;  %v2109_v9 = vsel %vm6373_vm8, 0, %v2108_v48  ;;  %v2961_v42 = vld [vmem:[#allocation2 + $0x50] sm:$0xe] }
 0x1a6   :  { %v2291_v8 = vrot.slane %v2289_v21, 7  ;;  %v2042_v27 = vadd.f32 %v6440_v33, %v2022_v17  ;;  %2110 = vst [vmem:[#allocation2 + $0x50] sm:$0x1] %v2109_v9  ;;  %v2124_v56 = vsel %vm6373_vm8, 0, %v2123_v45  ;;  %v2186_v44 = vsel %vm6381_vm10, 0, %v2185_v2 }
 0x1a7   :  { %v6731_v30 = vadd.f32 %v1327_v28, %v6704_v51  ;;  %v1472_v23 = vpop.f32.mrf.mxu2  ;;  %v2605_v6 = vsel %vm5667_vm4, %v2600_v12, %v2604_v20  ;;  %v2613_v3 = vor.u32 %v2612_v15, %v2609_v4  ;;  %2125 = vst [vmem:[#allocation2 + $0x78] sm:$0x1] %v2124_v56  ;;  %v2171_v33 = vsel %vm6381_vm10, 0, %v2170_v16  ;;  %v1330_v28 = vpop.f32.mrf.mxu1  ;;  %v2439_v55 = vld [vmem:[#allocation2 + $0x68] sm:$0xf] }
 0x1a8   :  { %v2294_v13 = vor.u32 %v2292_v49, %v2291_v8  ;;  %v2295_v35 = vrot.slane %v2291_v8, 4  ;;  %v2058_v1 = vmax.f32 %v2042_v27, 0.0  ;;  %v1496_v59 = vadd.f32 %v1472_v23, %v6643_v18  ;;  %2187 = vst [vmem:[#allocation2 + $0x7c] sm:$0x1] %v2186_v44  ;;  %v2442_v49 = vld [vmem:[#allocation2 + $0x6c] sm:$0x1] }
 0x1a9   :  { %v823_v51 = vadd.f32 %v6396_v32, %v669_v41  ;;  %v2614_v53 = vrot.slane %v2613_v3, 4  ;;  %v2618_v10 = vrot.slane %v2616_v63, 5  ;;  %2172 = vst [vmem:[#allocation2 + $0x54] sm:$0x1] %v2171_v33  ;;  %v2127_v62 = vsel %vm6373_vm8, 0, %v2126_v43  ;;  %v1629_v38 = vpop.f32.mrf.mxu3  ;;  %v2002_v57 = vpop.f32.mrf.mxu0 }
 0x1aa   :  { %v2434_v61 = vsel %vm6461_vm11, %v2294_v13, %v2433_v36  ;;  %v2437_v37 = vsel %vm6373_vm8, %v2295_v35, %v2436_v60  ;;  %v2210_v25 = vpack.c.bf16 %v2058_v1, %v2058_v1  ;;  %v1650_v26 = vadd.f32 %v1626_v11, %v1496_v59  ;;  %v5433_v18 = vld [vmem:[#allocation2 + $0x54] sm:$0xf0]  ;;  %2128 = vst [vmem:[#allocation2 + $0x80] sm:$0x1] %v2127_v62  ;;  %v2129_v62 = vld [vmem:[#allocation2 + $0x88] sm:$0x1] }
 0x1ab   :  { %v2962_v47 = vld [vmem:[#allocation2 + $0x58] sm:$0xe]  ;;  %2435 = vst [vmem:[#allocation2 + $0x60] sm:$0xf] %v2434_v61  ;;  %v2619_v32 = vsel %vm5667_vm4, %v2614_v53, %v2618_v10  ;;  %v2739_v41 = vunpack.c.l.b16 %v2605_v6  ;;  %v6747_v48 = vld [vmem:[#allocation2 + $0x5c] sm:$0x1]  ;;  %v6752_v45 = vadd.f32 %v1330_v28, %v6408_v46  ;;  %v6755_v16 = vadd.f32 %v6399_v34, %v823_v51 }
 0x1ac   :  { %v5222_v31 = vrot.slane %v2962_v47, 9  ;;  %v2189_v40 = vsel %vm6381_vm10, 0, %v2188_v7  ;;  %2438 = vst [vmem:[#allocation2 + $0x64] sm:$0x1] %v2437_v37  ;;  %v2297_v52 = vshrl.u32 %v2210_v25, 16  ;;  %v2300_v19 = vshll.u32 %v2210_v25, 16 }
 0x1ad   :  { %v2023_v50 = vadd.f32 %v1999_v22, %v1650_v26  ;;  %v2740_v11 = vunpack.c.l.b16 %v2619_v32  ;;  %v2484_v0 = vld [vmem:[#allocation2 + $0x58] sm:$0xf]  ;;  %v5191_v4 = vld [vmem:[#allocation2 + $0x50] sm:$0xf]  ;;  %v3042_v58 = vrot.slane %v6747_v48, 5  ;;  %v5221_v36 = vrot.slane %v2961_v42, 9 }
 0x1ae   :  { %v2635_v2 = vshrl.u32 %v2484_v0, 16  ;;  %v2299_v21 = vrot.slane %v2297_v52, 7  ;;  %v6761_v22 = vld [vmem:[%s7385_s2] ss:$0 sm:$0xff]  ;;  %v5192_v20 = vor.u32 %v5433_v18, %v5191_v4  ;;  %2190 = vst [vmem:[#allocation2 + $0x84] sm:$0x1] %v2189_v40 }
 0x1af   :  { %v2043_v46 = vadd.f32 %v6761_v22, %v2023_v50  ;;  %v2752_v17 = vpack.c.b16 %v2740_v11, %v2739_v41  ;;  %v1475_v34 = vpop.f32.mrf.mxu2  ;;  %v3043_v12 = vsel %vm6480_vm14, %v5222_v31, %v3042_v58  ;;  %v2483_v15 = vld [vmem:[#allocation2 + $0x50] sm:$0xf]  ;;  %v2638_v9 = vshll.u32 %v2484_v0, 16  ;;  %v5255_v59 = vld [vmem:[#allocation2 + $0x58] sm:$0xf] }
 0x1b0   :  { %v2637_v63 = vrot.slane %v2635_v2, 4  ;;  %v2302_v43 = vor.u32 %v2300_v19, %v2299_v21  ;;  %v2303_v8 = vrot.slane %v2299_v21, 4  ;;  %5209 = vmatmul.msk.bf16.gmra.mxu2 %vm100_vm1, %v5192_v20  ;;  %v1497_v56 = vadd.f32 %v1475_v34, %v6699_v5  ;;  %v2500_v44 = vld [vmem:[#allocation2 + $0x54] sm:$0x1]  ;;  %v2445_v26 = vld [vmem:[#allocation2 + $0x70] sm:$0xf] }
 0x1b1   :  { %v2059_v27 = vmax.f32 %v2043_v46, 0.0  ;;  %5168 = vmatmul.msk.bf16.gmra.mxu1 %vm100_vm1, %v2752_v17  ;;  %v3038_v60 = vrot.slane %v2500_v44, 5  ;;  %v3078_v23 = vunpack.c.l.b16 %v3043_v12  ;;  %v2621_v6 = vshrl.u32 %v2483_v15, 16  ;;  %v2448_v18 = vld [vmem:[#allocation2 + $0x74] sm:$0x1]  ;;  %v1631_v42 = vpop.f32.mrf.mxu3  ;;  %v2004_v0 = vpop.f32.mrf.mxu0 }
 0x1b2   :  { %v2624_v3 = vshll.u32 %v2483_v15, 16  ;;  %v2440_v33 = vsel %vm6461_vm11, %v2302_v43, %v2439_v55  ;;  %v2443_v13 = vsel %vm6373_vm8, %v2303_v8, %v2442_v49  ;;  %v1651_v1 = vadd.f32 %v1629_v38, %v1497_v56  ;;  %v5441_v7 = vld [vmem:[#allocation2 + $0x5c] sm:$0xf0]  ;;  %v2191_v50 = vld [vmem:[#allocation2 + $0x8c] sm:$0x1] }
 0x1b3   :  { %v2211_v35 = vpack.c.bf16 %v2059_v27, %v2059_v27  ;;  %2441 = vst [vmem:[#allocation2 + $0x68] sm:$0xf] %v2440_v33  ;;  %v3039_v51 = vsel %vm6480_vm14, %v5221_v36, %v3038_v60  ;;  %v5256_v5 = vor.u32 %v5441_v7, %v5255_v59  ;;  %v2623_v53 = vrot.slane %v2621_v6, 4  ;;  %v2963_v11 = vld [vmem:[#allocation2 + $0x60] sm:$0xe] }
 0x1b4   :  { %v2626_v10 = vrot.slane %v2624_v3, 5  ;;  %2444 = vst [vmem:[#allocation2 + $0x6c] sm:$0x1] %v2443_v13  ;;  %v2024_v37 = vadd.f32 %v2002_v57, %v1651_v1  ;;  %v3077_v25 = vunpack.c.l.b16 %v3039_v51  ;;  %v2630_v32 = vshll.u32 %v2500_v44, 16  ;;  %v5195_v17 = vld [vmem:[#allocation2 + $0x60] sm:$0xf] }
 0x1b5   :  { %v2305_v28 = vshrl.u32 %v2211_v35, 16  ;;  %v2308_v61 = vshll.u32 %v2211_v35, 16  ;;  %5273 = vmatmul.msk.bf16.gmra.mxu0 %vm100_vm1, %v5256_v5  ;;  %v2640_v41 = vrot.slane %v2638_v9, 5  ;;  %v2644_v38 = vshll.u32 %v6747_v48, 16  ;;  %v6782_v20 = vld [vmem:[#allocation2 + $0x64] sm:$0x1] }
 0x1b6   :  { %v2627_v47 = vor.u32 %v2626_v10, %v2623_v53  ;;  %v2044_v40 = vadd.f32 %v6761_v22, %v2024_v37  ;;  %v3089_v52 = vpack.c.b16 %v3078_v23, %v3077_v25  ;;  %v2130_v19 = vsel %vm6373_vm8, 0, %v2129_v62  ;;  %v2194_v44 = vld [vmem:[#allocation2 + $0x94] sm:$0x1]  ;;  %v2485_v7 = vld [vmem:[#allocation2 + $0x60] sm:$0xf] }
 0x1b7   :  { %v2307_v31 = vrot.slane %v2305_v28, 7  ;;  %v1477_v55 = vpop.f32.mrf.mxu2  ;;  %v2632_v4 = vrot.slane %v2630_v32, 5  ;;  %v2641_v58 = vor.u32 %v2640_v41, %v2637_v63  ;;  %v2646_v2 = vrot.slane %v2644_v38, 5  ;;  %2131 = vst [vmem:[#allocation2 + $0x88] sm:$0x1] %v2130_v19 }
 0x1b8   :  { %v2628_v57 = vrot.slane %v2627_v47, 4  ;;  %v2060_v46 = vmax.f32 %v2044_v40, 0.0  ;;  %5233 = vmatmul.msk.bf16.gmra.mxu3 %vm100_vm1, %v3089_v52  ;;  %v1498_v48 = vadd.f32 %v1477_v55, %v6731_v30  ;;  %v2192_v12 = vsel %vm6381_vm10, 0, %v2191_v50  ;;  %v2132_v63 = vld [vmem:[#allocation2 + $0x90] sm:$0x1] }
 0x1b9   :  { %v2310_v21 = vor.u32 %v2308_v61, %v2307_v31  ;;  %v2311_v49 = vrot.slane %v2307_v31, 4  ;;  %v2642_v36 = vrot.slane %v2641_v58, 4  ;;  %v5223_v15 = vrot.slane %v2963_v11, 9  ;;  %2193 = vst [vmem:[#allocation2 + $0x8c] sm:$0x1] %v2192_v12  ;;  %v1332_v31 = vpop.f32.mrf.mxu1  ;;  %v2007_v11 = vpop.f32.mrf.mxu0 }
 0x1ba   :  { %v2633_v34 = vsel %vm5667_vm4, %v2628_v57, %v2632_v4  ;;  %v2212_v8 = vpack.c.bf16 %v2060_v46, %v2060_v46  ;;  %v1652_v30 = vadd.f32 %v1631_v42, %v1498_v48  ;;  %v5434_v27 = vld [vmem:[#allocation2 + $0x64] sm:$0xf0]  ;;  %v3046_v33 = vrot.slane %v6782_v20, 5  ;;  %v2451_v28 = vld [vmem:[#allocation2 + $0x78] sm:$0xf] }
 0x1bb   :  { %v2446_v9 = vsel %vm6461_vm11, %v2310_v21, %v2445_v26  ;;  %v2449_v43 = vsel %vm6373_vm8, %v2311_v49, %v2448_v18  ;;  %v2964_v56 = vld [vmem:[#allocation2 + $0x68] sm:$0xe]  ;;  %v2647_v60 = vsel %vm5667_vm4, %v2642_v36, %v2646_v2  ;;  %v2741_v23 = vunpack.c.l.b16 %v2633_v34  ;;  %v6794_v3 = vld [vmem:[#allocation2 + $0x6c] sm:$0x1]  ;;  %v2454_v26 = vld [vmem:[#allocation2 + $0x7c] sm:$0x1]  ;;  %v1634_v18 = vpop.f32.mrf.mxu3 }
 0x1bc   :  { %2447 = vst [vmem:[#allocation2 + $0x70] sm:$0xf] %v2446_v9  ;;  %v5196_v6 = vor.u32 %v5434_v27, %v5195_v17  ;;  %v2313_v13 = vshrl.u32 %v2212_v8, 16  ;;  %v2316_v35 = vshll.u32 %v2212_v8, 16  ;;  %v2025_v1 = vadd.f32 %v2004_v0, %v1652_v30  ;;  %v2486_v55 = vld [vmem:[#allocation2 + $0x68] sm:$0xf] }
 0x1bd   :  { %2450 = vst [vmem:[#allocation2 + $0x74] sm:$0x1] %v2449_v43  ;;  %v2742_v59 = vunpack.c.l.b16 %v2647_v60  ;;  %v3047_v51 = vsel %vm6480_vm14, %v5223_v15, %v3046_v33  ;;  %v5224_v5 = vrot.slane %v2964_v56, 9  ;;  %v3050_v53 = vrot.slane %v6794_v3, 5  ;;  %v5259_v48 = vld [vmem:[#allocation2 + $0x68] sm:$0xf] }
 0x1be   :  { %v2133_v10 = vsel %vm6373_vm8, 0, %v2132_v63  ;;  %v2315_v62 = vrot.slane %v2313_v13, 7  ;;  %v2045_v61 = vadd.f32 %v6761_v22, %v2025_v1  ;;  %v3079_v25 = vunpack.c.l.b16 %v3047_v51  ;;  %v2457_v8 = vld [vmem:[#allocation2 + $0x80] sm:$0xf]  ;;  %v2460_v13 = vld [vmem:[#allocation2 + $0x84] sm:$0x1] }
 0x1bf   :  { %v2753_v37 = vpack.c.b16 %v2742_v59, %v2741_v23  ;;  %2134 = vst [vmem:[#allocation2 + $0x90] sm:$0x1] %v2133_v10  ;;  %v1480_v42 = vpop.f32.mrf.mxu2  ;;  %v3051_v47 = vsel %vm6480_vm14, %v5224_v5, %v3050_v53  ;;  %v2195_v32 = vsel %vm6381_vm10, 0, %v2194_v44  ;;  %v2649_v41 = vshrl.u32 %v2485_v7, 16 }
 0x1c0   :  { %v2652_v38 = vshll.u32 %v2485_v7, 16  ;;  %v2318_v40 = vor.u32 %v2316_v35, %v2315_v62  ;;  %v2319_v52 = vrot.slane %v2315_v62, 4  ;;  %v2061_v19 = vmax.f32 %v2045_v61, 0.0  ;;  %5210 = vmatmul.msk.bf16.gmra.mxu2 %vm100_vm1, %v5196_v6  ;;  %2196 = vst [vmem:[#allocation2 + $0x94] sm:$0x1] %v2195_v32 }
 0x1c1   :  { %5169 = vmatmul.msk.bf16.gmra.mxu1 %vm100_vm1, %v2753_v37  ;;  %v1499_v50 = vadd.f32 %v1480_v42, %v6752_v45  ;;  %v3080_v0 = vunpack.c.l.b16 %v3051_v47  ;;  %v2651_v57 = vrot.slane %v2649_v41, 4  ;;  %v2658_v58 = vshll.u32 %v6782_v20, 16 }
 0x1c2   :  { %v2654_v4 = vrot.slane %v2652_v38, 5  ;;  %v2452_v2 = vsel %vm6461_vm11, %v2318_v40, %v2451_v28  ;;  %v2455_v21 = vsel %vm6373_vm8, %v2319_v52, %v2454_v26  ;;  %v2213_v49 = vpack.c.bf16 %v2061_v19, %v2061_v19  ;;  %v2009_v38 = vpop.f32.mrf.mxu0 }
 0x1c3   :  { %v1653_v46 = vadd.f32 %v1634_v18, %v1499_v50  ;;  %v5442_v17 = vld [vmem:[#allocation2 + $0x6c] sm:$0xf0]  ;;  %v1350_v45 = vadd.f32 %v1332_v31, %v6755_v16  ;;  %2453 = vst [vmem:[#allocation2 + $0x78] sm:$0xf] %v2452_v2  ;;  %v3090_v20 = vpack.c.b16 %v3080_v0, %v3079_v25  ;;  %v2663_v9 = vshrl.u32 %v2486_v55, 16  ;;  %v1636_v62 = vpop.f32.mrf.mxu3 }
 0x1c4   :  { %v5260_v34 = vor.u32 %v5442_v17, %v5259_v48  ;;  %v2655_v36 = vor.u32 %v2654_v4, %v2651_v57  ;;  %v2965_v12 = vld [vmem:[#allocation2 + $0x70] sm:$0xe]  ;;  %2456 = vst [vmem:[#allocation2 + $0x7c] sm:$0x1] %v2455_v21  ;;  %v2321_v15 = vshrl.u32 %v2213_v49, 16  ;;  %v2660_v27 = vrot.slane %v2658_v58, 5 }
 0x1c5   :  { %v2026_v63 = vadd.f32 %v2007_v11, %v1653_v46  ;;  %v6816_v43 = vld [vmem:[#allocation2 + $0x74] sm:$0x1]  ;;  %v2666_v56 = vshll.u32 %v2486_v55, 16  ;;  %v2672_v44 = vshll.u32 %v6794_v3, 16  ;;  %v2324_v60 = vshll.u32 %v2213_v49, 16 }
 0x1c6   :  { %5274 = vmatmul.msk.bf16.gmra.mxu0 %vm100_vm1, %v5260_v34  ;;  %v2656_v30 = vrot.slane %v2655_v36, 4  ;;  %v2323_v16 = vrot.slane %v2321_v15, 7  ;;  %v2665_v6 = vrot.slane %v2663_v9, 4  ;;  %v2487_v33 = vld [vmem:[#allocation2 + $0x70] sm:$0xf]  ;;  %v5225_v7 = vrot.slane %v2965_v12, 9 }
 0x1c7   :  { %v2046_v23 = vadd.f32 %v6761_v22, %v2026_v63  ;;  %v1482_v35 = vpop.f32.mrf.mxu2  ;;  %v2668_v59 = vrot.slane %v2666_v56, 5  ;;  %v3054_v51 = vrot.slane %v6816_v43, 5  ;;  %v2674_v61 = vrot.slane %v2672_v44, 5  ;;  %v5199_v47 = vld [vmem:[#allocation2 + $0x70] sm:$0xf] }
 0x1c8   :  { %v2661_v1 = vsel %vm5667_vm4, %v2656_v30, %v2660_v27  ;;  %v2326_v5 = vor.u32 %v2324_v60, %v2323_v16  ;;  %v2327_v53 = vrot.slane %v2323_v16, 4  ;;  %5234 = vmatmul.msk.bf16.gmra.mxu3 %vm100_vm1, %v3090_v20  ;;  %v1500_v3 = vadd.f32 %v1482_v35, %v1350_v45  ;;  %v2463_v48 = vld [vmem:[#allocation2 + $0x88] sm:$0xf]  ;;  %v2466_v36 = vld [vmem:[#allocation2 + $0x8c] sm:$0x1] }
 0x1c9   :  { %v2062_v10 = vmax.f32 %v2046_v23, 0.0  ;;  %v2669_v28 = vor.u32 %v2668_v59, %v2665_v6  ;;  %v2677_v37 = vshrl.u32 %v2487_v33, 16  ;;  %v2743_v40 = vunpack.c.l.b16 %v2661_v1 }
 0x1ca   :  { %v2458_v25 = vsel %vm6461_vm11, %v2326_v5, %v2457_v8  ;;  %v2461_v26 = vsel %vm6373_vm8, %v2327_v53, %v2460_v13  ;;  %v1654_v42 = vadd.f32 %v1636_v62, %v1500_v3  ;;  %v5435_v32 = vld [vmem:[#allocation2 + $0x74] sm:$0xf0]  ;;  %v3055_v19 = vsel %vm6480_vm14, %v5225_v7, %v3054_v51 }
 0x1cb   :  { %v2214_v18 = vpack.c.bf16 %v2062_v10, %v2062_v10  ;;  %v2966_v41 = vld [vmem:[#allocation2 + $0x78] sm:$0xe]  ;;  %2459 = vst [vmem:[#allocation2 + $0x80] sm:$0xf] %v2458_v25  ;;  %v2670_v31 = vrot.slane %v2669_v28, 4  ;;  %v5200_v55 = vor.u32 %v5435_v32, %v5199_v47  ;;  %v2679_v21 = vrot.slane %v2677_v37, 4 }
 0x1cc   :  { %v2505_v52 = vld [vmem:[#allocation2 + $0x7c] sm:$0x1]  ;;  %v5226_v50 = vrot.slane %v2966_v41, 9  ;;  %2462 = vst [vmem:[#allocation2 + $0x84] sm:$0x1] %v2461_v26  ;;  %v2027_v0 = vadd.f32 %v2009_v38, %v1654_v42  ;;  %v2680_v49 = vshll.u32 %v2487_v33, 16  ;;  %v3081_v56 = vunpack.c.l.b16 %v3055_v19 }
 0x1cd   :  { %v2329_v11 = vshrl.u32 %v2214_v18, 16  ;;  %v3058_v57 = vrot.slane %v2505_v52, 5  ;;  %v2332_v4 = vshll.u32 %v2214_v18, 16  ;;  %v2675_v58 = vsel %vm5667_vm4, %v2670_v31, %v2674_v61  ;;  %v2488_v2 = vld [vmem:[#allocation2 + $0x78] sm:$0xf] }
 0x1ce   :  { %v2047_v17 = vadd.f32 %v6761_v22, %v2027_v0  ;;  %v2744_v45 = vunpack.c.l.b16 %v2675_v58  ;;  %v2682_v15 = vrot.slane %v2680_v49, 5  ;;  %v2686_v63 = vshll.u32 %v6816_v43, 16  ;;  %v3823_v22 = vld [vmem:[%s7386_s3 + $0x8] sm:$0xc]  ;;  %v5263_v33 = vld [vmem:[#allocation2 + $0x78] sm:$0xf] }
 0x1cf   :  { %v2331_v46 = vrot.slane %v2329_v11, 7  ;;  %v3059_v34 = vsel %vm6480_vm14, %v5226_v50, %v3058_v57  ;;  %v2691_v20 = vshrl.u32 %v2488_v2, 16  ;;  %v2694_v60 = vshll.u32 %v2488_v2, 16  ;;  %v2469_v42 = vld [vmem:[#allocation2 + $0x90] sm:$0xf] }
 0x1d0   :  { %v3082_v12 = vunpack.c.l.b16 %v3059_v34  ;;  %v2063_v30 = vmax.f32 %v2047_v17, 0.0  ;;  %v2754_v27 = vpack.c.b16 %v2744_v45, %v2743_v40  ;;  %5211 = vmatmul.msk.bf16.gmra.mxu2 %vm100_vm1, %v5200_v55  ;;  %v2683_v44 = vor.u32 %v2682_v15, %v2679_v21  ;;  %v2472_v47 = vld [vmem:[#allocation2 + $0x94] sm:$0x1]  ;;  %v4350_v11 = vld [vmem:[%s7386_s3 + $0xc] sm:$0xc] }
 0x1d1   :  { %v2334_v9 = vor.u32 %v2332_v4, %v2331_v46  ;;  %v2335_v8 = vrot.slane %v2331_v46, 4  ;;  %v2693_v16 = vrot.slane %v2691_v20, 4  ;;  %v2700_v35 = vshll.u32 %v2505_v52, 16 }
 0x1d2   :  { %v2215_v6 = vpack.c.bf16 %v2063_v30, %v2063_v30  ;;  %5170 = vmatmul.msk.bf16.gmra.mxu1 %vm100_vm1, %v2754_v27  ;;  %v5443_v13 = vld [vmem:[#allocation2 + $0x7c] sm:$0xf0]  ;;  %v2684_v59 = vrot.slane %v2683_v44, 4  ;;  %v2696_v7 = vrot.slane %v2694_v60, 5  ;;  %v3849_v51 = vunpack.c.l.b16 %v3823_v22 }
 0x1d3   :  { %v2464_v23 = vsel %vm6461_vm11, %v2334_v9, %v2463_v48  ;;  %v2467_v43 = vsel %vm6373_vm8, %v2335_v8, %v2466_v36  ;;  %v5264_v1 = vor.u32 %v5443_v13, %v5263_v33  ;;  %v3091_v53 = vpack.c.b16 %v3082_v12, %v3081_v56  ;;  %v6847_v62 = vld [vmem:[#allocation2 + $0x84] sm:$0x1]  ;;  %v2967_v28 = vld [vmem:[#allocation2 + $0x80] sm:$0xe]  ;;  %v3961_v8 = vld [vmem:[%s7386_s3 + $0xc] sm:$0x3] }
 0x1d4   :  { %2465 = vst [vmem:[#allocation2 + $0x88] sm:$0xf] %v2464_v23  ;;  %v2337_v5 = vshrl.u32 %v2215_v6, 16  ;;  %v2688_v10 = vrot.slane %v2686_v63, 5  ;;  %v2697_v3 = vor.u32 %v2696_v7, %v2693_v16  ;;  %v2489_v61 = vld [vmem:[#allocation2 + $0x80] sm:$0xf]  ;;  %v3850_v31 = vpack.c.b16 %v3849_v51, %v3849_v51 }
 0x1d5   :  { %2468 = vst [vmem:[#allocation2 + $0x8c] sm:$0x1] %v2467_v43  ;;  %v2340_v25 = vshll.u32 %v2215_v6, 16  ;;  %v2705_v26 = vshrl.u32 %v2489_v61, 16  ;;  %v2708_v18 = vshll.u32 %v2489_v61, 16  ;;  %v2702_v38 = vrot.slane %v2700_v35, 5 }
 0x1d6   :  { %5275 = vmatmul.msk.bf16.gmra.mxu0 %vm100_vm1, %v5264_v1  ;;  %v2339_v37 = vrot.slane %v2337_v5, 7  ;;  %v2689_v32 = vsel %vm5667_vm4, %v2684_v59, %v2688_v10  ;;  %v2698_v41 = vrot.slane %v2697_v3, 4  ;;  %v5227_v19 = vrot.slane %v2967_v28, 9  ;;  %v5203_v49 = vld [vmem:[#allocation2 + $0x80] sm:$0xf] }
 0x1d7   :  { %v3062_v50 = vrot.slane %v6847_v62, 5  ;;  %v2707_v55 = vrot.slane %v2705_v26, 4  ;;  %v2710_v57 = vrot.slane %v2708_v18, 5  ;;  %v3851_v4 = vrot.slane %v3850_v31, 2  ;;  %v3712_v23 = vld [vmem:[#allocation2 + $0x10] sm:$0xe] }
 0x1d8   :  { %v2342_v40 = vor.u32 %v2340_v25, %v2339_v37  ;;  %v2343_v52 = vrot.slane %v2339_v37, 4  ;;  %5235 = vmatmul.msk.bf16.gmra.mxu3 %vm100_vm1, %v3091_v53  ;;  %v2703_v0 = vsel %vm5667_vm4, %v2698_v41, %v2702_v38  ;;  %v4376_v17 = vunpack.c.l.b16 %v4350_v11  ;;  %v4094_v43 = vld [vmem:[#allocation2 + $0x10] sm:$0xf]  ;;  %v6872_v13 = vld [vmem:[#allocation2 + $0xc] sm:$0x1] }
 0x1d9   :  { %v2746_v21 = vunpack.c.l.b16 %v2703_v0  ;;  %v3877_v36 = vsel %vm125_vm0, %v3851_v4, 0  ;;  %v2745_v12 = vunpack.c.l.b16 %v2689_v32  ;;  %v3063_v22 = vsel %vm6480_vm14, %v5227_v19, %v3062_v50  ;;  %v6874_v35 = vld [vmem:[#allocation2 + $0x14] sm:$0x1]  ;;  %v3711_v1 = vld [vmem:[#allocation2 + $0x8] sm:$0xe] }
 0x1da   :  { %v2470_v58 = vsel %vm6461_vm11, %v2342_v40, %v2469_v42  ;;  %v2473_v2 = vsel %vm6373_vm8, %v2343_v52, %v2472_v47  ;;  %3886 = vmatpush.bf16.msra.mxu2 %v3877_v36  ;;  %v4377_v30 = vpack.c.b16 %v4376_v17, %v4376_v17  ;;  %v2711_v44 = vor.u32 %v2710_v57, %v2707_v55  ;;  %v4096_v3 = vld [vmem:[#allocation2 + $0x18] sm:$0xf]  ;;  %v4095_v32 = vld [vmem:[#allocation2 + $0x14] sm:$0x1]  ;;  %v3338_v41 = vld [vmem:[#allocation2 + $0x8] sm:$0xf] }
 0x1db   :  { %v5436_v46 = vld [vmem:[#allocation2 + $0x84] sm:$0xf0]  ;;  %2471 = vst [vmem:[#allocation2 + $0x90] sm:$0xf] %v2470_v58  ;;  %v2755_v27 = vpack.c.b16 %v2746_v21, %v2745_v12  ;;  %v2714_v33 = vshll.u32 %v6847_v62, 16  ;;  %v4027_v59 = vsel %vm125_vm0, %v3961_v8, 0  ;;  %v3083_v7 = vunpack.c.l.b16 %v3063_v22 }
 0x1dc   :  { %v2968_v48 = vld [vmem:[#allocation2 + $0x88] sm:$0xe]  ;;  %v2507_v45 = vld [vmem:[#allocation2 + $0x8c] sm:$0x1]  ;;  %2474 = vst [vmem:[#allocation2 + $0x94] sm:$0x1] %v2473_v2  ;;  %v5204_v15 = vor.u32 %v5436_v46, %v5203_v49  ;;  %4036 = vmatpush.bf16.msra.mxu3 %v4027_v59 }
 0x1dd   :  { %v5228_v34 = vrot.slane %v2968_v48, 9  ;;  %v3066_v63 = vrot.slane %v2507_v45, 5  ;;  %v2490_v20 = vld [vmem:[#allocation2 + $0x88] sm:$0xf]  ;;  %v2728_v53 = vshll.u32 %v2507_v45, 16  ;;  %v4378_v10 = vrot.slane %v4377_v30, 2 }
 0x1de   :  { %v2719_v39 = vshrl.u32 %v2490_v20, 16  ;;  %v2722_v9 = vshll.u32 %v2490_v20, 16  ;;  %v5267_v51 = vld [vmem:[#allocation2 + $0x88] sm:$0xf]  ;;  %v2712_v61 = vrot.slane %v2711_v44, 4  ;;  %v5286_v37 = vrot.slane %v3712_v23, 9 }
 0x1df   :  { %v3067_v56 = vsel %vm6480_vm14, %v5228_v34, %v3066_v63  ;;  %v4127_v62 = vshrl.u32 %v4094_v43, 16  ;;  %v4130_v25 = vshll.u32 %v4094_v43, 16  ;;  %v3765_v42 = vrot.slane %v6874_v35, 5  ;;  %v4097_v31 = vld [vmem:[#allocation2 + $0x1c] sm:$0x1] }
 0x1e0   :  { %v2721_v16 = vrot.slane %v2719_v39, 4  ;;  %v2724_v60 = vrot.slane %v2722_v9, 5  ;;  %5212 = vmatmul.msk.bf16.gmra.mxu2 %vm100_vm1, %v5204_v15  ;;  %v3084_v6 = vunpack.c.l.b16 %v3067_v56  ;;  %v4404_v47 = vsel %vm125_vm0, %v4378_v10, 0  ;;  %v3340_v57 = vld [vmem:[#allocation2 + $0x10] sm:$0xf] }
 0x1e1   :  { %4413 = vmatpush.bf16.msra.mxu0 %v4404_v47  ;;  %v4129_v40 = vrot.slane %v4127_v62, 4  ;;  %v4132_v52 = vrot.slane %v4130_v25, 5  ;;  %v4141_v19 = vshrl.u32 %v4096_v3, 16  ;;  %v2730_v50 = vrot.slane %v2728_v53, 5  ;;  %v4583_v45 = vld [vmem:[%s7386_s3 + $0x10] sm:$0x3] }
 0x1e2   :  { %v2725_v5 = vor.u32 %v2724_v60, %v2721_v16  ;;  %5171 = vmatmul.msk.bf16.gmra.mxu1 %vm100_vm1, %v2755_v27  ;;  %v5444_v28 = vld [vmem:[#allocation2 + $0x8c] sm:$0xf0]  ;;  %v3092_v38 = vpack.c.b16 %v3084_v6, %v3083_v7  ;;  %v5285_v11 = vrot.slane %v3711_v1, 9  ;;  %v3761_v0 = vrot.slane %v6872_v13, 5  ;;  %v4098_v23 = vld [vmem:[#allocation2 + $0x20] sm:$0xf] }
 0x1e3   :  { %v5268_v26 = vor.u32 %v5444_v28, %v5267_v51  ;;  %v4144_v55 = vshll.u32 %v4096_v3, 16  ;;  %v2716_v4 = vrot.slane %v2714_v33, 5  ;;  %v4133_v58 = vor.u32 %v4132_v52, %v4129_v40  ;;  %v6899_v51 = vld [vmem:[#allocation2 + $0x1c] sm:$0x1]  ;;  %v3713_v10 = vld [vmem:[#allocation2 + $0x18] sm:$0xe] }
 0x1e4   :  { %v2726_v18 = vrot.slane %v2725_v5, 4  ;;  %v4136_v2 = vshll.u32 %v4095_v32, 16  ;;  %v4143_v21 = vrot.slane %v4141_v19, 4  ;;  %v3766_v46 = vsel %vm6480_vm14, %v5286_v37, %v3765_v42  ;;  %v4100_v3 = vld [vmem:[#allocation2 + $0x28] sm:$0xf] }
 0x1e5   :  { %v4146_v48 = vrot.slane %v4144_v55, 5  ;;  %v4150_v17 = vshll.u32 %v4097_v31, 16  ;;  %v2717_v34 = vsel %vm5667_vm4, %v2712_v61, %v2716_v4  ;;  %v3371_v36 = vshrl.u32 %v3338_v41, 16  ;;  %v6901_v62 = vld [vmem:[#allocation2 + $0x24] sm:$0x1] }
 0x1e6   :  { %5276 = vmatmul.msk.bf16.gmra.mxu0 %vm100_vm1, %v5268_v26  ;;  %v2731_v49 = vsel %vm5667_vm4, %v2726_v18, %v2730_v50  ;;  %v3374_v12 = vshll.u32 %v3338_v41, 16  ;;  %v3385_v15 = vshrl.u32 %v3340_v57, 16  ;;  %v3762_v63 = vsel %vm6480_vm14, %v5285_v11, %v3761_v0  ;;  %v3714_v25 = vld [vmem:[#allocation2 + $0x20] sm:$0xe]  ;;  %v5311_v52 = vld [vmem:[#allocation2 + $0x10] sm:$0xf] }
 0x1e7   :  { %v4134_v20 = vrot.slane %v4133_v58, 4  ;;  %v4147_v39 = vor.u32 %v4146_v48, %v4143_v21  ;;  %v3388_v9 = vshll.u32 %v3340_v57, 16  ;;  %v2748_v8 = vunpack.c.l.b16 %v2731_v49  ;;  %v5445_v19 = vld [vmem:[#allocation2 + $0x14] sm:$0xf0]  ;;  %v4101_v58 = vld [vmem:[#allocation2 + $0x2c] sm:$0x1] }
 0x1e8   :  { %5236 = vmatmul.msk.bf16.gmra.mxu3 %vm100_vm1, %v3092_v38  ;;  %v3825_v30 = vunpack.c.l.b16 %v3766_v46  ;;  %v4138_v27 = vrot.slane %v4136_v2, 5  ;;  %v4633_v22 = vsel %vm125_vm0, %v4583_v45, 0  ;;  %v4152_v44 = vrot.slane %v4150_v17, 5  ;;  %v3342_v49 = vld [vmem:[#allocation2 + $0x18] sm:$0xf] }
 0x1e9   :  { %v4148_v56 = vrot.slane %v4147_v39, 4  ;;  %v3387_v16 = vrot.slane %v3385_v15, 4  ;;  %v3390_v60 = vrot.slane %v3388_v9, 5  ;;  %4642 = vmatpush.bf16.msra.mxu1 %v4633_v22  ;;  %v2747_v43 = vunpack.c.l.b16 %v2717_v34  ;;  %v3344_v34 = vld [vmem:[#allocation2 + $0x20] sm:$0xf] }
 0x1ea   :  { %v3824_v6 = vunpack.c.l.b16 %v3762_v63  ;;  %v3373_v33 = vrot.slane %v3371_v36, 4  ;;  %v3376_v1 = vrot.slane %v3374_v12, 5  ;;  %v4139_v59 = vsel %vm5667_vm4, %v4134_v20, %v4138_v27 }
 0x1eb   :  { %v4153_v7 = vsel %vm5667_vm4, %v4148_v56, %v4152_v44  ;;  %v2756_v5 = vpack.c.b16 %v2748_v8, %v2747_v43  ;;  %v4155_v28 = vshrl.u32 %v4098_v23, 16  ;;  %v3391_v37 = vor.u32 %v3390_v60, %v3387_v16 }
 0x1ec   :  { %v3840_v53 = vpack.c.b16 %v3825_v30, %v3824_v6  ;;  %v4352_v61 = vunpack.c.l.b16 %v4153_v7  ;;  %v4351_v18 = vunpack.c.l.b16 %v4139_v59  ;;  %v3377_v42 = vor.u32 %v3376_v1, %v3373_v33 }
 0x1ed   :  { %v3380_v47 = vshll.u32 %v6872_v13, 16  ;;  %v3394_v32 = vshll.u32 %v6874_v35, 16  ;;  %v5287_v41 = vrot.slane %v3713_v10, 9  ;;  %v3769_v38 = vrot.slane %v6899_v51, 5  ;;  %v4099_v35 = vld [vmem:[#allocation2 + $0x24] sm:$0x1] }
 0x1ee   :  { %v4158_v31 = vshll.u32 %v4098_v23, 16  ;;  %v4169_v40 = vshrl.u32 %v4100_v3, 16  ;;  %v5288_v50 = vrot.slane %v3714_v25, 9  ;;  %v3773_v11 = vrot.slane %v6901_v62, 5  ;;  %v4102_v10 = vld [vmem:[#allocation2 + $0x30] sm:$0xf] }
 0x1ef   :  { %v4157_v0 = vrot.slane %v4155_v28, 4  ;;  %v4172_v55 = vshll.u32 %v4100_v3, 16  ;;  %v4367_v57 = vpack.c.b16 %v4352_v61, %v4351_v18  ;;  %v3392_v4 = vrot.slane %v3391_v37, 4  ;;  %v4104_v25 = vld [vmem:[#allocation2 + $0x38] sm:$0xf] }
 0x1f0   :  { %5301 = vmatmul.msk.bf16.vlgmr.msra.gmra.mxu2 %vm100_vm1, %v3840_v53  ;;  %v2913_v26 = vpop.f32.mrf.mxu2  ;;  %v4160_v13 = vrot.slane %v4158_v31, 5  ;;  %v4171_v2 = vrot.slane %v4169_v40, 4  ;;  %v5312_v46 = vor.u32 %v5445_v19, %v5311_v52  ;;  %v3378_v48 = vrot.slane %v3377_v42, 4  ;;  %v6925_v40 = vld [vmem:[#allocation2 + $0x2c] sm:$0x1] }
 0x1f1   :  { %v4174_v21 = vrot.slane %v4172_v55, 5  ;;  %v3382_v17 = vrot.slane %v3380_v47, 5  ;;  %v3396_v45 = vrot.slane %v3394_v32, 5  ;;  %v3770_v12 = vsel %vm6480_vm14, %v5287_v41, %v3769_v38  ;;  %v3715_v52 = vld [vmem:[#allocation2 + $0x28] sm:$0xe] }
 0x1f2   :  { %5172 = vmatmul.msk.bf16.gmra.mxu1 %vm100_vm1, %v2756_v5  ;;  %v4161_v15 = vor.u32 %v4160_v13, %v4157_v0  ;;  %v4178_v20 = vshll.u32 %v4101_v58, 16  ;;  %v3774_v9 = vsel %vm6480_vm14, %v5288_v50, %v3773_v11  ;;  %v4164_v8 = vshll.u32 %v4099_v35, 16  ;;  %v6929_v58 = vld [vmem:[#allocation2 + $0x34] sm:$0x1]  ;;  %v3716_v13 = vld [vmem:[#allocation2 + $0x30] sm:$0xe] }
 0x1f3   :  { %v4175_v63 = vor.u32 %v4174_v21, %v4171_v2  ;;  %v3397_v39 = vsel %vm5667_vm4, %v3392_v4, %v3396_v45  ;;  %v3399_v30 = vshrl.u32 %v3342_v49, 16  ;;  %v3402_v56 = vshll.u32 %v3342_v49, 16 }
 0x1f4   :  { %v3413_v44 = vshrl.u32 %v3344_v34, 16  ;;  %v3416_v16 = vshll.u32 %v3344_v34, 16  ;;  %v3383_v60 = vsel %vm5667_vm4, %v3378_v48, %v3382_v17  ;;  %v3826_v43 = vunpack.c.l.b16 %v3770_v12  ;;  %v5446_v12 = vld [vmem:[#allocation2 + $0x24] sm:$0xf0] }
 0x1f5   :  { %v4176_v22 = vrot.slane %v4175_v63, 4  ;;  %v3827_v6 = vunpack.c.l.b16 %v3774_v9  ;;  %v4162_v33 = vrot.slane %v4161_v15, 4  ;;  %v4180_v1 = vrot.slane %v4178_v20, 5  ;;  %v4105_v20 = vld [vmem:[#allocation2 + $0x3c] sm:$0x1] }
 0x1f6   :  { %5349 = vmatmul.msk.bf16.vlgmr.msra.gmra.mxu0 %vm100_vm1, %v4367_v57  ;;  %v3129_v36 = vpop.f32.mrf.mxu3  ;;  %v3596_v7 = vunpack.c.l.b16 %v3397_v39  ;;  %v4166_v5 = vrot.slane %v4164_v8, 5  ;;  %v3401_v53 = vrot.slane %v3399_v30, 4  ;;  %v3404_v28 = vrot.slane %v3402_v56, 5  ;;  %v5315_v39 = vld [vmem:[#allocation2 + $0x20] sm:$0xf] }
 0x1f7   :  { %v4181_v3 = vsel %vm5667_vm4, %v4176_v22, %v4180_v1  ;;  %v3415_v61 = vrot.slane %v3413_v44, 4  ;;  %v3418_v37 = vrot.slane %v3416_v16, 5  ;;  %v3595_v42 = vunpack.c.l.b16 %v3383_v60  ;;  %v3348_v30 = vld [vmem:[#allocation2 + $0x30] sm:$0xf]  ;;  %v4103_v44 = vld [vmem:[#allocation2 + $0x34] sm:$0x1] }
 0x1f8   :  { %5341 = vmatmul.msk.bf16.vlgmr.msra.gmra.mxu3 %vm100_vm1, %v5312_v46  ;;  %v2915_v27 = vpop.f32.mrf.mxu2  ;;  %v3841_v32 = vpack.c.b16 %v3827_v6, %v3826_v43  ;;  %v4167_v41 = vsel %vm5667_vm4, %v4162_v33, %v4166_v5  ;;  %v4186_v38 = vshll.u32 %v4102_v10, 16  ;;  %v4354_v31 = vunpack.c.l.b16 %v4181_v3  ;;  %v3346_v16 = vld [vmem:[#allocation2 + $0x28] sm:$0xf]  ;;  %v2167_v33 = vld [vmem:[#allocation2 + $0x4c] sm:$0x1] }
 0x1f9   :  { %v4197_v19 = vshrl.u32 %v4104_v25, 16  ;;  %v4200_v50 = vshll.u32 %v4104_v25, 16  ;;  %v3611_v11 = vpack.c.b16 %v3596_v7, %v3595_v42  ;;  %v3405_v55 = vor.u32 %v3404_v28, %v3401_v53  ;;  %v2105_v6 = vld [vmem:[#allocation2 + $0x48] sm:$0x1] }
 0x1fa   :  { %v2797_v23 = vpop.f32.mrf.mxu1  ;;  %v3408_v57 = vshll.u32 %v6899_v51, 16  ;;  %v3419_v4 = vor.u32 %v3418_v37, %v3415_v61  ;;  %v4353_v2 = vunpack.c.l.b16 %v4167_v41  ;;  %v3422_v35 = vshll.u32 %v6901_v62, 16  ;;  %v4106_v41 = vld [vmem:[#allocation2 + $0x40] sm:$0xf] }
 0x1fb   :  { %v2914_v59 = vadd.f32 %v2913_v26, %v2797_v23  ;;  %v4183_v26 = vshrl.u32 %v4102_v10, 16  ;;  %v4199_v21 = vrot.slane %v4197_v19, 4  ;;  %v4202_v49 = vrot.slane %v4200_v50, 5 }
 0x1fc   :  { %v5289_v48 = vrot.slane %v3715_v52, 9  ;;  %v3777_v17 = vrot.slane %v6925_v40, 5  ;;  %v4188_v34 = vrot.slane %v4186_v38, 5  ;;  %v4368_v51 = vpack.c.b16 %v4354_v31, %v4353_v2 }
 0x1fd   :  { %v6921_v18 = vadd.f32 %v3129_v36, %v2914_v59  ;;  %v4185_v45 = vrot.slane %v4183_v26, 4  ;;  %v5290_v15 = vrot.slane %v3716_v13, 9  ;;  %v3781_v63 = vrot.slane %v6929_v58, 5 }
 0x1fe   :  { %v3131_v47 = vpop.f32.mrf.mxu3  ;;  %v3406_v9 = vrot.slane %v3405_v55, 4  ;;  %v3420_v62 = vrot.slane %v3419_v4, 4  ;;  %v4203_v8 = vor.u32 %v4202_v49, %v4199_v21  ;;  %v3410_v56 = vrot.slane %v3408_v57, 5 }
 0x1ff   :  { %v5316_v60 = vor.u32 %v5446_v12, %v5315_v39  ;;  %v4189_v23 = vor.u32 %v4188_v34, %v4185_v45  ;;  %v4206_v43 = vshll.u32 %v4105_v20, 16  ;;  %v3778_v1 = vsel %vm6480_vm14, %v5289_v48, %v3777_v17  ;;  %v6957_v12 = vld [vmem:[#allocation2 + $0x3c] sm:$0x1] }
 0x200   :  { %5302 = vmatmul.msk.bf16.gmra.mxu2 %vm100_vm1, %v3841_v32  ;;  %v2918_v0 = vpop.f32.mrf.mxu2  ;;  %v3782_v59 = vsel %vm6480_vm14, %v5290_v15, %v3781_v63  ;;  %v3441_v7 = vshrl.u32 %v3348_v30, 16  ;;  %v3444_v5 = vshll.u32 %v3348_v30, 16  ;;  %v3411_v3 = vsel %vm5667_vm4, %v3406_v9, %v3410_v56  ;;  %v6963_v9 = vld [vmem:[#allocation2 + $0x44] sm:$0x1]  ;;  %v5447_v30 = vld [vmem:[#allocation2 + $0x34] sm:$0xf0] }
 0x201   :  { %v4192_v61 = vshll.u32 %v4103_v44, 16  ;;  %v4204_v37 = vrot.slane %v4203_v8, 4  ;;  %v3427_v25 = vshrl.u32 %v3346_v16, 16  ;;  %v3430_v42 = vshll.u32 %v3346_v16, 16 }
 0x202   :  { %5277 = vmatmul.msk.bf16.vlgmr.msrb.gmra.mxu1 %vm100_vm1, %v3611_v11  ;;  %v2799_v46 = vpop.f32.mrf.mxu1  ;;  %v2168_v32 = vsel %vm6381_vm10, 0, %v2167_v33  ;;  %v3828_v38 = vunpack.c.l.b16 %v3778_v1  ;;  %v3829_v31 = vunpack.c.l.b16 %v3782_v59  ;;  %v4190_v52 = vrot.slane %v4189_v23, 4  ;;  %v3350_v59 = vld [vmem:[#allocation2 + $0x38] sm:$0xf] }
 0x203   :  { %v2916_v36 = vadd.f32 %v2915_v27, %v2799_v46  ;;  %v3424_v27 = vrot.slane %v3422_v35, 5  ;;  %v4208_v19 = vrot.slane %v4206_v43, 5  ;;  %v3443_v55 = vrot.slane %v3441_v7, 4  ;;  %2169 = vst [vmem:[#allocation2 + $0x4c] sm:$0x1] %v2168_v32 }
 0x204   :  { %v3446_v57 = vrot.slane %v3444_v5, 5  ;;  %v4194_v4 = vrot.slane %v4192_v61, 5  ;;  %v4211_v2 = vshrl.u32 %v4106_v41, 16  ;;  %v4214_v35 = vshll.u32 %v4106_v41, 16  ;;  %v5319_v43 = vld [vmem:[#allocation2 + $0x30] sm:$0xf] }
 0x205   :  { %v6935_v22 = vadd.f32 %v3131_v47, %v2916_v36  ;;  %v3425_v28 = vsel %vm5667_vm4, %v3420_v62, %v3424_v27  ;;  %v2106_v47 = vsel %vm6373_vm8, 0, %v2105_v6  ;;  %v4209_v13 = vsel %vm5667_vm4, %v4204_v37, %v4208_v19 }
 0x206   :  { %5350 = vmatmul.msk.bf16.gmra.mxu0 %vm100_vm1, %v4368_v51  ;;  %2107 = vst [vmem:[#allocation2 + $0x48] sm:$0x1] %v2106_v47  ;;  %v3598_v11 = vunpack.c.l.b16 %v3425_v28  ;;  %v3429_v49 = vrot.slane %v3427_v25, 4  ;;  %v3432_v46 = vrot.slane %v3430_v42, 5  ;;  %v3597_v48 = vunpack.c.l.b16 %v3411_v3  ;;  %v3718_v51 = vld [vmem:[#allocation2 + $0x40] sm:$0xe] }
 0x207   :  { %v3842_v17 = vpack.c.b16 %v3829_v31, %v3828_v38  ;;  %v4195_v45 = vsel %vm5667_vm4, %v4190_v52, %v4194_v4  ;;  %v4356_v34 = vunpack.c.l.b16 %v4209_v13  ;;  %v3447_v36 = vor.u32 %v3446_v57, %v3443_v55  ;;  %v6969_v28 = vld [vmem:[#allocation2 + $0x44] sm:$0x1]  ;;  %v3352_v47 = vld [vmem:[#allocation2 + $0x40] sm:$0xf] }
 0x208   :  { %5342 = vmatmul.msk.bf16.gmra.mxu3 %vm100_vm1, %v5316_v60  ;;  %v3134_v53 = vpop.f32.mrf.mxu3  ;;  %v2920_v10 = vpop.f32.mrf.mxu2  ;;  %v3612_v15 = vpack.c.b16 %v3598_v11, %v3597_v48  ;;  %v3436_v39 = vshll.u32 %v6925_v40, 16  ;;  %v4213_v62 = vrot.slane %v4211_v2, 4  ;;  %v4216_v8 = vrot.slane %v4214_v35, 5 }
 0x209   :  { %v4355_v56 = vunpack.c.l.b16 %v4195_v45  ;;  %v3433_v44 = vor.u32 %v3432_v46, %v3429_v49  ;;  %v3450_v16 = vshll.u32 %v6929_v58, 16  ;;  %v3785_v6 = vrot.slane %v6957_v12, 5 }
 0x20a   :  { %v2802_v26 = vpop.f32.mrf.mxu1  ;;  %v5292_v33 = vrot.slane %v3718_v51, 9  ;;  %v3789_v3 = vrot.slane %v6963_v9, 5  ;;  %v6971_v58 = vld [vmem:[#allocation2 + $0x4c] sm:$0x1]  ;;  %v4217_v61 = vor.u32 %v4216_v8, %v4213_v62  ;;  %v5320_v41 = vor.u32 %v5447_v30, %v5319_v43  ;;  %v4110_v51 = vld [vmem:[#allocation2 + $0x60] sm:$0xf] }
 0x20b   :  { %v2919_v50 = vadd.f32 %v2918_v0, %v2802_v26  ;;  %v3717_v0 = vld [vmem:[#allocation2 + $0x38] sm:$0xe]  ;;  %v4369_v5 = vpack.c.b16 %v4356_v34, %v4355_v56  ;;  %v4234_v42 = vshll.u32 %v6971_v58, 16  ;;  %v3452_v26 = vrot.slane %v3450_v16, 5 }
 0x20c   :  { %v5291_v60 = vrot.slane %v3717_v0, 9  ;;  %v3434_v38 = vrot.slane %v3433_v44, 4  ;;  %v4220_v52 = vshll.u32 %v6969_v28, 16  ;;  %v3455_v11 = vshrl.u32 %v3350_v59, 16 }
 0x20d   :  { %v6953_v21 = vadd.f32 %v3134_v53, %v2919_v50  ;;  %v4108_v27 = vld [vmem:[#allocation2 + $0x48] sm:$0xf]  ;;  %v3448_v53 = vrot.slane %v3447_v36, 4  ;;  %v3790_v50 = vsel %vm6480_vm14, %v5292_v33, %v3789_v3  ;;  %v3469_v55 = vshrl.u32 %v3352_v47, 16  ;;  %v3720_v3 = vld [vmem:[#allocation2 + $0x60] sm:$0xe] }
 0x20e   :  { %v4225_v1 = vshrl.u32 %v4108_v27, 16  ;;  %v4228_v40 = vshll.u32 %v4108_v27, 16  ;;  %v3786_v31 = vsel %vm6480_vm14, %v5291_v60, %v3785_v6  ;;  %v3472_v57 = vshll.u32 %v3352_v47, 16  ;;  %v7003_v47 = vld [vmem:[#allocation2 + $0x5c] sm:$0x1] }
 0x20f   :  { %v3453_v2 = vsel %vm5667_vm4, %v3448_v53, %v3452_v26  ;;  %v4218_v35 = vrot.slane %v4217_v61, 4  ;;  %v4236_v46 = vrot.slane %v4234_v42, 5  ;;  %v3458_v48 = vshll.u32 %v3350_v59, 16  ;;  %v5323_v59 = vld [vmem:[#allocation2 + $0x40] sm:$0xf] }
 0x210   :  { %v3136_v63 = vpop.f32.mrf.mxu3  ;;  %5303 = vmatmul.msk.bf16.gmra.mxu2 %vm100_vm1, %v3842_v17  ;;  %v6960_v20 = vpop.f32.mrf.mxu2  ;;  %v4227_v37 = vrot.slane %v4225_v1, 4  ;;  %v4230_v25 = vrot.slane %v4228_v40, 5  ;;  %v4112_v17 = vld [vmem:[#allocation2 + $0x68] sm:$0xf]  ;;  %v3830_v0 = vunpack.c.l.b16 %v3786_v31  ;;  %v3831_v34 = vunpack.c.l.b16 %v3790_v50  ;;  %v6998_v53 = vld [vmem:[#allocation2 + $0x64] sm:$0x1] }
 0x211   :  { %v4222_v36 = vrot.slane %v4220_v52, 5  ;;  %v3474_v62 = vrot.slane %v3472_v57, 5  ;;  %v4253_v44 = vshrl.u32 %v4112_v17, 16  ;;  %v4256_v16 = vshll.u32 %v4112_v17, 16  ;;  %v6994_v1 = vpop.f32.mrf.mxu0  ;;  %v3719_v31 = vld [vmem:[#allocation2 + $0x58] sm:$0xe] }
 0x212   :  { %5278 = vmatmul.msk.bf16.gmra.mxu1 %vm100_vm1, %v3612_v15  ;;  %v2804_v23 = vpop.f32.mrf.mxu1  ;;  %v4231_v19 = vor.u32 %v4230_v25, %v4227_v37  ;;  %v3600_v15 = vunpack.c.l.b16 %v3453_v2  ;;  %v3460_v27 = vrot.slane %v3458_v48, 5  ;;  %v4242_v43 = vshll.u32 %v4110_v51, 16  ;;  %v5448_v25 = vld [vmem:[#allocation2 + $0x44] sm:$0xf0] }
 0x213   :  { %v2921_v7 = vadd.f32 %v2920_v10, %v2804_v23  ;;  %v3438_v10 = vrot.slane %v3436_v39, 5  ;;  %v3471_v39 = vrot.slane %v3469_v55, 4  ;;  %v4223_v30 = vsel %vm5667_vm4, %v4218_v35, %v4222_v36  ;;  %v3354_v55 = vld [vmem:[#allocation2 + $0x58] sm:$0xf]  ;;  %v7009_v35 = vld [vmem:[#allocation2 + $0x6c] sm:$0x1] }
 0x214   :  { %v4232_v49 = vrot.slane %v4231_v19, 4  ;;  %v4239_v23 = vshrl.u32 %v4110_v51, 16  ;;  %v3843_v33 = vpack.c.b16 %v3831_v34, %v3830_v0  ;;  %v4244_v19 = vrot.slane %v4242_v43, 5 }
 0x215   :  { %v6974_v32 = vadd.f32 %v3136_v63, %v2921_v7  ;;  %v3439_v45 = vsel %vm5667_vm4, %v3434_v38, %v3438_v10  ;;  %v3457_v63 = vrot.slane %v3455_v11, 4  ;;  %v4357_v7 = vunpack.c.l.b16 %v4223_v30 }
 0x216   :  { %5351 = vmatmul.msk.bf16.gmra.mxu0 %vm100_vm1, %v4369_v5  ;;  %v4237_v56 = vsel %vm5667_vm4, %v4232_v49, %v4236_v46  ;;  %v3599_v6 = vunpack.c.l.b16 %v3439_v45  ;;  %v3475_v42 = vor.u32 %v3474_v62, %v3471_v39  ;;  %v4258_v10 = vrot.slane %v4256_v16, 5  ;;  %v3356_v49 = vld [vmem:[#allocation2 + $0x60] sm:$0xf]  ;;  %v7012_v45 = vld [vmem:[#allocation2 + $0x64] sm:$0x1] }
 0x217   :  { %v4358_v5 = vunpack.c.l.b16 %v4237_v56  ;;  %v3461_v26 = vor.u32 %v3460_v27, %v3457_v63  ;;  %v3478_v38 = vshll.u32 %v6963_v9, 16  ;;  %v4241_v52 = vrot.slane %v4239_v23, 4 }
 0x218   :  { %5343 = vmatmul.msk.bf16.gmra.mxu3 %vm100_vm1, %v5320_v41  ;;  %v3139_v4 = vpop.f32.mrf.mxu3  ;;  %v6983_v13 = vpop.f32.mrf.mxu2  ;;  %v3613_v61 = vpack.c.b16 %v3600_v15, %v3599_v6  ;;  %v4255_v41 = vrot.slane %v4253_v44, 4  ;;  %v5294_v50 = vrot.slane %v3720_v3, 9  ;;  %v3797_v11 = vrot.slane %v6998_v53, 5 }
 0x219   :  { %v5324_v57 = vor.u32 %v5448_v25, %v5323_v59  ;;  %v3464_v2 = vshll.u32 %v6957_v12, 16  ;;  %v3476_v48 = vrot.slane %v3475_v42, 4  ;;  %v5293_v17 = vrot.slane %v3719_v31, 9  ;;  %v7027_v43 = vpop.f32.mrf.mxu0 }
 0x21a   :  { %v3793_v9 = vrot.slane %v7003_v47, 5  ;;  %v4259_v0 = vor.u32 %v4258_v10, %v4255_v41  ;;  %v3462_v36 = vrot.slane %v3461_v26, 4  ;;  %v3480_v51 = vrot.slane %v3478_v38, 5  ;;  %v4114_v26 = vld [vmem:[#allocation2 + $0x70] sm:$0xf] }
 0x21b   :  { %v4245_v15 = vor.u32 %v4244_v19, %v4241_v52  ;;  %v3798_v12 = vsel %vm6480_vm14, %v5294_v50, %v3797_v11  ;;  %v4262_v63 = vshll.u32 %v7009_v35, 16  ;;  %v3497_v39 = vshrl.u32 %v3356_v49, 16 }
 0x21c   :  { %v2807_v8 = vpop.f32.mrf.mxu1  ;;  %v3500_v62 = vshll.u32 %v3356_v49, 16  ;;  %v3466_v30 = vrot.slane %v3464_v2, 5  ;;  %v4248_v56 = vshll.u32 %v7012_v45, 16  ;;  %v3483_v44 = vshrl.u32 %v3354_v55, 16  ;;  %v7038_v49 = vld [vmem:[#allocation2 + $0x74] sm:$0x1] }
 0x21d   :  { %v2924_v60 = vadd.f32 %v6960_v20, %v2807_v8  ;;  %v3481_v16 = vsel %vm5667_vm4, %v3476_v48, %v3480_v51  ;;  %v4260_v27 = vrot.slane %v4259_v0, 4  ;;  %v3486_v23 = vshll.u32 %v3354_v55, 16 }
 0x21e   :  { %v4246_v59 = vrot.slane %v4245_v15, 4  ;;  %v4264_v3 = vrot.slane %v4262_v63, 5  ;;  %v3602_v25 = vunpack.c.l.b16 %v3481_v16  ;;  %v4250_v41 = vrot.slane %v4248_v56, 5  ;;  %v7044_v15 = vld [vmem:[#allocation2 + $0x6c] sm:$0x1] }
 0x21f   :  { %v6996_v40 = vadd.f32 %v3139_v4, %v2924_v60  ;;  %v4370_v4 = vpack.c.b16 %v4358_v5, %v4357_v7  ;;  %v3794_v60 = vsel %vm6480_vm14, %v5293_v17, %v3793_v9  ;;  %v4116_v7 = vld [vmem:[#allocation2 + $0x78] sm:$0xf]  ;;  %v3467_v5 = vsel %vm5667_vm4, %v3462_v36, %v3466_v30 }
 0x220   :  { %v3141_v37 = vpop.f32.mrf.mxu3  ;;  %5304 = vmatmul.msk.bf16.gmra.mxu2 %vm100_vm1, %v3843_v33  ;;  %v7001_v20 = vpop.f32.mrf.mxu2  ;;  %v3833_v33 = vunpack.c.l.b16 %v3798_v12  ;;  %v3832_v42 = vunpack.c.l.b16 %v3794_v60  ;;  %v3485_v10 = vrot.slane %v3483_v44, 4  ;;  %v4265_v38 = vsel %vm5667_vm4, %v4260_v27, %v4264_v3  ;;  %v3721_v12 = vld [vmem:[#allocation2 + $0x68] sm:$0xe] }
 0x221   :  { %v3488_v31 = vrot.slane %v3486_v23, 5  ;;  %v4281_v52 = vshrl.u32 %v4116_v7, 16  ;;  %v4284_v19 = vshll.u32 %v4116_v7, 16  ;;  %v3601_v11 = vunpack.c.l.b16 %v3467_v5  ;;  %v3358_v27 = vld [vmem:[#allocation2 + $0x68] sm:$0xf]  ;;  %v7049_v23 = vpop.f32.mrf.mxu0 }
 0x222   :  { %5279 = vmatmul.msk.bf16.gmra.mxu1 %vm100_vm1, %v3613_v61  ;;  %v3499_v61 = vrot.slane %v3497_v39, 4  ;;  %v3844_v55 = vpack.c.b16 %v3833_v33, %v3832_v42  ;;  %v4267_v48 = vshrl.u32 %v4114_v26, 16  ;;  %v4270_v17 = vshll.u32 %v4114_v26, 16 }
 0x223   :  { %v3614_v9 = vpack.c.b16 %v3602_v25, %v3601_v11  ;;  %v4360_v0 = vunpack.c.l.b16 %v4265_v38  ;;  %v3489_v51 = vor.u32 %v3488_v31, %v3485_v10  ;;  %v4283_v63 = vrot.slane %v4281_v52, 4  ;;  %v7057_v31 = vld [vmem:[#allocation2 + $0x74] sm:$0x1] }
 0x224   :  { %v2809_v46 = vpop.f32.mrf.mxu1  ;;  %v3492_v56 = vshll.u32 %v7003_v47, 16  ;;  %v3805_v16 = vrot.slane %v7038_v49, 5  ;;  %v4272_v60 = vrot.slane %v4270_v17, 5  ;;  %v5295_v5 = vrot.slane %v3721_v12, 9 }
 0x225   :  { %v2926_v34 = vadd.f32 %v6983_v13, %v2809_v46  ;;  %v3722_v46 = vld [vmem:[#allocation2 + $0x70] sm:$0xe]  ;;  %v3801_v3 = vrot.slane %v7044_v15, 5  ;;  %v3511_v52 = vshrl.u32 %v3358_v27, 16 }
 0x226   :  { %5352 = vmatmul.msk.bf16.gmra.mxu0 %vm100_vm1, %v4370_v4  ;;  %v5296_v44 = vrot.slane %v3722_v46, 9  ;;  %v3494_v26 = vrot.slane %v3492_v56, 5 }
 0x227   :  { %v7019_v8 = vadd.f32 %v3141_v37, %v2926_v34  ;;  %v3502_v37 = vrot.slane %v3500_v62, 5  ;;  %v3506_v34 = vshll.u32 %v6998_v53, 16  ;;  %v5449_v62 = vld [vmem:[#allocation2 + $0x64] sm:$0xf0] }
 0x228   :  { %5344 = vmatmul.msk.bf16.gmra.mxu3 %vm100_vm1, %v5324_v57  ;;  %v3144_v13 = vpop.f32.mrf.mxu3  ;;  %v7029_v6 = vpop.f32.mrf.mxu2  ;;  %v4251_v57 = vsel %vm5667_vm4, %v4246_v59, %v4250_v41  ;;  %v5327_v59 = vld [vmem:[#allocation2 + $0x60] sm:$0xf]  ;;  %v3360_v41 = vld [vmem:[#allocation2 + $0x70] sm:$0xf]  ;;  %v3806_v38 = vsel %vm6480_vm14, %v5296_v44, %v3805_v16 }
 0x229   :  { %v3503_v2 = vor.u32 %v3502_v37, %v3499_v61  ;;  %v4359_v30 = vunpack.c.l.b16 %v4251_v57  ;;  %v7052_v61 = vld [vmem:[#allocation2 + $0x7c] sm:$0x1]  ;;  %v5328_v47 = vor.u32 %v5449_v62, %v5327_v59  ;;  %v3490_v37 = vrot.slane %v3489_v51, 4 }
 0x22a   :  { %v3508_v25 = vrot.slane %v3506_v34, 5  ;;  %v4290_v57 = vshll.u32 %v7052_v61, 16  ;;  %v3528_v46 = vshll.u32 %v3360_v41, 16  ;;  %v3835_v34 = vunpack.c.l.b16 %v3806_v38  ;;  %v3724_v38 = vld [vmem:[#allocation2 + $0x80] sm:$0xe] }
 0x22b   :  { %v3504_v53 = vrot.slane %v3503_v2, 4  ;;  %v4371_v7 = vpack.c.b16 %v4360_v0, %v4359_v30  ;;  %v3525_v2 = vshrl.u32 %v3360_v41, 16  ;;  %v3495_v17 = vsel %vm5667_vm4, %v3490_v37, %v3494_v26  ;;  %v7077_v26 = vld [vmem:[#allocation2 + $0x7c] sm:$0x1] }
 0x22c   :  { %v3513_v51 = vrot.slane %v3511_v52, 4  ;;  %v4292_v62 = vrot.slane %v4290_v57, 5  ;;  %v3603_v44 = vunpack.c.l.b16 %v3495_v17  ;;  %v3534_v57 = vshll.u32 %v7038_v49, 16  ;;  %v5450_v49 = vld [vmem:[#allocation2 + $0x74] sm:$0xf0] }
 0x22d   :  { %v3509_v11 = vsel %vm5667_vm4, %v3504_v53, %v3508_v25  ;;  %v3527_v16 = vrot.slane %v3525_v2, 4  ;;  %v3530_v53 = vrot.slane %v3528_v46, 5  ;;  %v2135_v2 = vld [vmem:[#allocation2 + $0x98] sm:$0x1] }
 0x22e   :  { %v2812_v50 = vpop.f32.mrf.mxu1  ;;  %v3604_v0 = vunpack.c.l.b16 %v3509_v11  ;;  %v3520_v11 = vshll.u32 %v7044_v15, 16  ;;  %v5331_v15 = vld [vmem:[#allocation2 + $0x70] sm:$0xf]  ;;  %v3536_v14 = vrot.slane %v3534_v57, 5 }
 0x22f   :  { %v2929_v4 = vadd.f32 %v7001_v20, %v2812_v50  ;;  %v4286_v20 = vrot.slane %v4284_v19, 5  ;;  %v3514_v19 = vshll.u32 %v3358_v27, 16  ;;  %v4122_v57 = vld [vmem:[#allocation2 + $0x90] sm:$0xf] }
 0x230   :  { %5305 = vmatmul.msk.bf16.gmra.mxu2 %vm100_vm1, %v3844_v55  ;;  %v3146_v39 = vpop.f32.mrf.mxu3 }
 0x231   :  { %v7041_v36 = vadd.f32 %v3144_v13, %v2929_v4  ;;  %v4269_v13 = vrot.slane %v4267_v48, 4  ;;  %v4287_v42 = vor.u32 %v4286_v20, %v4283_v63  ;;  %v3802_v4 = vsel %vm6480_vm14, %v5295_v5, %v3801_v3  ;;  %v4120_v63 = vld [vmem:[#allocation2 + $0x88] sm:$0xf]  ;;  %v7073_v5 = vpop.f32.mrf.mxu0 }
 0x232   :  { %5280 = vmatmul.msk.bf16.gmra.mxu1 %vm100_vm1, %v3614_v9  ;;  %v3516_v12 = vrot.slane %v3514_v19, 5  ;;  %v4309_v59 = vshrl.u32 %v4120_v63, 16 }
 0x233   :  { %v2933_v33 = vpop.f32.mrf.mxu2  ;;  %v4273_v55 = vor.u32 %v4272_v60, %v4269_v13  ;;  %v4288_v9 = vrot.slane %v4287_v42, 4  ;;  %v4118_v13 = vld [vmem:[#allocation2 + $0x80] sm:$0xf]  ;;  %v3723_v42 = vld [vmem:[#allocation2 + $0x78] sm:$0xe] }
 0x234   :  { %v3517_v25 = vor.u32 %v3516_v12, %v3513_v51  ;;  %v4295_v52 = vshrl.u32 %v4118_v13, 16  ;;  %v4298_v19 = vshll.u32 %v4118_v13, 16  ;;  %v4311_v17 = vrot.slane %v4309_v59, 4 }
 0x235   :  { %v4274_v20 = vrot.slane %v4273_v55, 4  ;;  %v4293_v27 = vsel %vm5667_vm4, %v4288_v9, %v4292_v62  ;;  %v3531_v55 = vor.u32 %v3530_v53, %v3527_v16  ;;  %v2197_v9 = vld [vmem:[#allocation2 + $0x9c] sm:$0x1]  ;;  %v3809_v51 = vrot.slane %v7077_v26, 5  ;;  %v7091_v53 = vld [vmem:[#allocation2 + $0x8c] sm:$0x1] }
 0x236   :  { %v2814_v10 = vpop.f32.mrf.mxu1  ;;  %5353 = vmatmul.msk.bf16.gmra.mxu0 %vm100_vm1, %v4371_v7  ;;  %v4312_v7 = vshll.u32 %v4120_v63, 16  ;;  %v5298_v12 = vrot.slane %v3724_v38, 9  ;;  %v4300_v62 = vrot.slane %v4298_v19, 5  ;;  %v2198_v13 = vsel %vm6381_vm10, 0, %v2197_v9 }
 0x237   :  { %v2931_v50 = vadd.f32 %v7029_v6, %v2814_v10  ;;  %v4276_v6 = vshll.u32 %v7057_v31, 16  ;;  %v3532_v16 = vrot.slane %v3531_v55, 4  ;;  %2199 = vst [vmem:[#allocation2 + $0x9c] sm:$0x1] %v2198_v13  ;;  %v3362_v55 = vld [vmem:[#allocation2 + $0x78] sm:$0xf] }
 0x238   :  { %5345 = vmatmul.msk.bf16.gmra.mxu3 %vm100_vm1, %v5328_v47  ;;  %v3615_v47 = vpack.c.b16 %v3604_v0, %v3603_v44 }
 0x239   :  { %v7065_v48 = vadd.f32 %v3146_v39, %v2931_v50  ;;  %v3834_v39 = vunpack.c.l.b16 %v3802_v4  ;;  %v4278_v60 = vrot.slane %v4276_v6, 5  ;;  %v4362_v50 = vunpack.c.l.b16 %v4293_v27  ;;  %v7081_v4 = vld [vmem:[#allocation2 + $0x84] sm:$0x1]  ;;  %v7103_v38 = vpop.f32.mrf.mxu0 }
 0x23a   :  { %v4314_v6 = vrot.slane %v4312_v7, 5  ;;  %v3813_v63 = vrot.slane %v7081_v4, 5  ;;  %v7095_v27 = vld [vmem:[#allocation2 + $0x84] sm:$0x1] }
 0x23b   :  { %v3149_v30 = vpop.f32.mrf.mxu3  ;;  %v2935_v56 = vpop.f32.mrf.mxu2  ;;  %v3845_v37 = vpack.c.b16 %v3835_v34, %v3834_v39  ;;  %v4279_v10 = vsel %vm5667_vm4, %v4274_v20, %v4278_v60  ;;  %v3518_v34 = vrot.slane %v3517_v25, 4  ;;  %v4297_v20 = vrot.slane %v4295_v52, 4 }
 0x23c   :  { %v4361_v0 = vunpack.c.l.b16 %v4279_v10  ;;  %v3522_v60 = vrot.slane %v3520_v11, 5  ;;  %v4315_v59 = vor.u32 %v4314_v6, %v4311_v17  ;;  %v3364_v10 = vld [vmem:[#allocation2 + $0x80] sm:$0xf]  ;;  %v3537_v52 = vsel %vm5667_vm4, %v3532_v16, %v3536_v14 }
 0x23d   :  { %v4301_v24 = vor.u32 %v4300_v62, %v4297_v20  ;;  %v3814_v19 = vsel %vm6480_vm14, %v5298_v12, %v3813_v63  ;;  %v3553_v17 = vshrl.u32 %v3364_v10, 16  ;;  %v3556_v6 = vshll.u32 %v3364_v10, 16 }
 0x23e   :  { %v2817_v3 = vpop.f32.mrf.mxu1  ;;  %v4372_v39 = vpack.c.b16 %v4362_v50, %v4361_v0  ;;  %v4304_v50 = vshll.u32 %v7095_v27, 16  ;;  %v3606_v9 = vunpack.c.l.b16 %v3537_v52  ;;  %v3837_v0 = vunpack.c.l.b16 %v3814_v19  ;;  %v3726_v19 = vld [vmem:[#allocation2 + $0x90] sm:$0xe] }
 0x23f   :  { %v2934_v41 = vadd.f32 %v2933_v33, %v2817_v3  ;;  %v5297_v33 = vrot.slane %v3723_v42, 9  ;;  %v3523_v42 = vsel %vm5667_vm4, %v3518_v34, %v3522_v60  ;;  %v4302_v34 = vrot.slane %v4301_v24, 4 }
 0x240   :  { %5306 = vmatmul.msk.bf16.gmra.mxu2 %vm100_vm1, %v3845_v37  ;;  %v4306_v12 = vrot.slane %v4304_v50, 5  ;;  %v3539_v63 = vshrl.u32 %v3362_v55, 16  ;;  %v3542_v20 = vshll.u32 %v3362_v55, 16  ;;  %v4323_v62 = vshrl.u32 %v4122_v57, 16 }
 0x241   :  { %v7083_v46 = vadd.f32 %v3149_v30, %v2934_v41  ;;  %v2136_v30 = vsel %vm6373_vm8, 0, %v2135_v2  ;;  %v3810_v37 = vsel %vm6480_vm14, %v5297_v33, %v3809_v51  ;;  %v4318_v41 = vshll.u32 %v7091_v53, 16 }
 0x242   :  { %5281 = vmatmul.msk.bf16.gmra.mxu1 %vm100_vm1, %v3615_v47  ;;  %2137 = vst [vmem:[#allocation2 + $0x98] sm:$0x1] %v2136_v30  ;;  %v5332_v47 = vor.u32 %v5450_v49, %v5331_v15  ;;  %v3605_v2 = vunpack.c.l.b16 %v3523_v42  ;;  %v3836_v33 = vunpack.c.l.b16 %v3810_v37  ;;  %v3555_v13 = vrot.slane %v3553_v17, 4 }
 0x243   :  { %v3151_v44 = vpop.f32.mrf.mxu3  ;;  %v2938_v3 = vpop.f32.mrf.mxu2  ;;  %v4320_v51 = vrot.slane %v4318_v41, 5  ;;  %v3558_v60 = vrot.slane %v3556_v6, 5  ;;  %v3541_v42 = vrot.slane %v3539_v63, 4  ;;  %v3544_v24 = vrot.slane %v3542_v20, 5  ;;  %v7117_v41 = vld [vmem:[#allocation2 + $0x94] sm:$0x1] }
 0x244   :  { %v4325_v10 = vrot.slane %v4323_v62, 4  ;;  %v5300_v63 = vrot.slane %v3726_v19, 9  ;;  %v3821_v20 = vrot.slane %v7117_v41, 5  ;;  %v7130_v62 = vld [vmem:[#allocation2 + $0x94] sm:$0x1] }
 0x245   :  { %v3559_v17 = vor.u32 %v3558_v60, %v3555_v13 }
 0x246   :  { %v2819_v7 = vpop.f32.mrf.mxu1  ;;  %5354 = vmatmul.msk.bf16.gmra.mxu0 %vm100_vm1, %v4372_v39 }
 0x247   :  { %v2936_v25 = vadd.f32 %v2935_v56, %v2819_v7  ;;  %v4316_v56 = vrot.slane %v4315_v59, 4  ;;  %v3616_v59 = vpack.c.b16 %v3606_v9, %v3605_v2  ;;  %v3846_v7 = vpack.c.b16 %v3837_v0, %v3836_v33  ;;  %v5451_v2 = vld [vmem:[#allocation2 + $0x84] sm:$0xf0] }
 0x248   :  { %5346 = vmatmul.msk.bf16.gmra.mxu3 %vm100_vm1, %v5332_v47  ;;  %v4307_v47 = vsel %vm5667_vm4, %v4302_v34, %v4306_v12  ;;  %v3548_v9 = vshll.u32 %v7077_v26, 16  ;;  %v3562_v0 = vshll.u32 %v7081_v4, 16  ;;  %v3725_v34 = vld [vmem:[#allocation2 + $0x88] sm:$0xe]  ;;  %v3545_v12 = vor.u32 %v3544_v24, %v3541_v42  ;;  %v5335_v26 = vld [vmem:[#allocation2 + $0x80] sm:$0xf] }
 0x249   :  { %v7110_v11 = vadd.f32 %v3151_v44, %v2936_v25  ;;  %v4124_v15 = vld [vmem:[#allocation2 + $0x98] sm:$0xf]  ;;  %v4321_v30 = vsel %vm5667_vm4, %v4316_v56, %v4320_v51  ;;  %v4326_v44 = vshll.u32 %v4122_v57, 16  ;;  %v7120_v57 = vpop.f32.mrf.mxu0  ;;  %v4363_v33 = vunpack.c.l.b16 %v4307_v47 }
 0x24a   :  { %v4337_v39 = vshrl.u32 %v4124_v15, 16  ;;  %v4340_v16 = vshll.u32 %v4124_v15, 16  ;;  %v4364_v25 = vunpack.c.l.b16 %v4321_v30  ;;  %v7132_v30 = vld [vmem:[#allocation2 + $0x9c] sm:$0x1]  ;;  %v3560_v4 = vrot.slane %v3559_v17, 4 }
 0x24b   :  { %v3154_v49 = vpop.f32.mrf.mxu3  ;;  %v2940_v37 = vpop.f32.mrf.mxu2  ;;  %v4328_v50 = vrot.slane %v4326_v44, 5  ;;  %v5336_v60 = vor.u32 %v5451_v2, %v5335_v26  ;;  %v3564_v42 = vrot.slane %v3562_v0, 5  ;;  %v3822_v24 = vsel %vm6480_vm14, %v5300_v63, %v3821_v20 }
 0x24c   :  { %v4339_v56 = vrot.slane %v4337_v39, 4  ;;  %v4342_v55 = vrot.slane %v4340_v16, 5  ;;  %v4373_v15 = vpack.c.b16 %v4364_v25, %v4363_v33  ;;  %v4346_v39 = vshll.u32 %v7132_v30, 16 }
 0x24d   :  { %v5299_v16 = vrot.slane %v3725_v34, 9  ;;  %v3550_v25 = vrot.slane %v3548_v9, 5  ;;  %v3565_v2 = vsel %vm5667_vm4, %v3560_v4, %v3564_v42  ;;  %v3839_v34 = vunpack.c.l.b16 %v3822_v24 }
 0x24e   :  { %v4343_v44 = vor.u32 %v4342_v55, %v4339_v56  ;;  %v3366_v56 = vld [vmem:[#allocation2 + $0x88] sm:$0xf] }
 0x24f   :  { %v2822_v14 = vpop.f32.mrf.mxu1  ;;  %v3567_v20 = vshrl.u32 %v3366_v56, 16 }
 0x250   :  { %v2939_v52 = vadd.f32 %v2938_v3, %v2822_v14  ;;  %5307 = vmatmul.msk.bf16.gmra.mxu2 %vm100_vm1, %v3846_v7  ;;  %v7127_v3 = vld [vmem:[#allocation2 + $0x8c] sm:$0x1]  ;;  %v3368_v7 = vld [vmem:[#allocation2 + $0x90] sm:$0xf]  ;;  %v3546_v14 = vrot.slane %v3545_v12, 4  ;;  %v4344_v19 = vrot.slane %v4343_v44, 4  ;;  %v3608_v44 = vunpack.c.l.b16 %v3565_v2 }
 0x251   :  { %v3817_v13 = vrot.slane %v7127_v3, 5  ;;  %v3581_v17 = vshrl.u32 %v3368_v7, 16  ;;  %v3584_v9 = vshll.u32 %v3368_v7, 16  ;;  %v3569_v42 = vrot.slane %v3567_v20, 4 }
 0x252   :  { %v7122_v6 = vadd.f32 %v3154_v49, %v2939_v52  ;;  %5282 = vmatmul.msk.bf16.gmra.mxu1 %vm100_vm1, %v3616_v59  ;;  %v4329_v49 = vor.u32 %v4328_v50, %v4325_v10  ;;  %v4332_v59 = vshll.u32 %v7130_v62, 16  ;;  %v4348_v50 = vrot.slane %v4346_v39, 5 }
 0x253   :  { %v3156_v51 = vpop.f32.mrf.mxu3  ;;  %v2943_v55 = vpop.f32.mrf.mxu2  ;;  %v3818_v33 = vsel %vm6480_vm14, %v5299_v16, %v3817_v13  ;;  %v3551_v63 = vsel %vm5667_vm4, %v3546_v14, %v3550_v25  ;;  %v3586_v16 = vrot.slane %v3584_v9, 5 }
 0x254   :  { %v4330_v52 = vrot.slane %v4329_v49, 4  ;;  %v3570_v49 = vshll.u32 %v3366_v56, 16  ;;  %v3838_v39 = vunpack.c.l.b16 %v3818_v33  ;;  %v4349_v4 = vsel %vm5667_vm4, %v4344_v19, %v4348_v50  ;;  %v5339_v19 = vld [vmem:[#allocation2 + $0x90] sm:$0xf]  ;;  %v5452_v50 = vld [vmem:[#allocation2 + $0x94] sm:$0xf0] }
 0x255   :  { %v3607_v13 = vunpack.c.l.b16 %v3551_v63  ;;  %v5340_v63 = vor.u32 %v5452_v50, %v5339_v19  ;;  %v5460_v50 = vld [vmem:[#allocation2 + $0x14] sm:$0x1] }
 0x256   :  { %5355 = vmatmul.msk.bf16.gmra.mxu0 %vm100_vm1, %v4373_v15  ;;  %v4334_v15 = vrot.slane %v4332_v59, 5  ;;  %v3572_v24 = vrot.slane %v3570_v49, 5 }
 0x257   :  { %v2824_v47 = vpop.f32.mrf.mxu1  ;;  %v3617_v25 = vpack.c.b16 %v3608_v44, %v3607_v13 }
 0x258   :  { %v2941_v10 = vadd.f32 %v2940_v37, %v2824_v47  ;;  %5347 = vmatmul.msk.bf16.gmra.mxu3 %vm100_vm1, %v5336_v60  ;;  %v7147_v37 = vpop.f32.mrf.mxu0  ;;  %v4335_v26 = vsel %vm5667_vm4, %v4330_v52, %v4334_v15  ;;  %v3847_v60 = vpack.c.b16 %v3839_v34, %v3838_v39  ;;  %v4366_v47 = vunpack.c.l.b16 %v4349_v4 }
 0x259   :  { %v4365_v7 = vunpack.c.l.b16 %v4335_v26  ;;  %v3573_v33 = vor.u32 %v3572_v24, %v3569_v42  ;;  %v4472_v42 = vld [vmem:[#allocation2 + $0x18] sm:$0xe]  ;;  %v4471_v24 = vld [vmem:[#allocation2 + $0x10] sm:$0xe] }
 0x25a   :  { %v7145_v0 = vadd.f32 %v3156_v51, %v2941_v10  ;;  %v3583_v51 = vrot.slane %v3581_v17, 4  ;;  %v3590_v17 = vshll.u32 %v7117_v41, 16  ;;  %v5357_v54 = vrot.slane %v4471_v24, 9 }
 0x25b   :  { %v3159_v12 = vpop.f32.mrf.mxu3  ;;  %v2945_v52 = vpop.f32.mrf.mxu2  ;;  %v4374_v2 = vpack.c.b16 %v4366_v47, %v4365_v7  ;;  %v3574_v20 = vrot.slane %v3573_v33, 4 }
 0x25c   :  { %v3587_v10 = vor.u32 %v3586_v16, %v3583_v51  ;;  %v3592_v49 = vrot.slane %v3590_v17, 5 }
 0x25e   :  { %v3588_v15 = vrot.slane %v3587_v10, 4 }
 0x25f   :  { %v2827_v59 = vpop.f32.mrf.mxu1 }
 0x260   :  { %v2944_v14 = vadd.f32 %v2943_v55, %v2827_v59  ;;  %5308 = vmatmul.msk.bf16.gmra.mxu2 %vm100_vm1, %v3847_v60  ;;  %v7160_v9 = vpop.f32.mrf.mxu0  ;;  %v3576_v55 = vshll.u32 %v7127_v3, 16  ;;  %v3593_v26 = vsel %vm5667_vm4, %v3588_v15, %v3592_v49 }
 0x261   :  { %v3610_v51 = vunpack.c.l.b16 %v3593_v26  ;;  %v4474_v26 = vld [vmem:[#allocation2 + $0x28] sm:$0xe] }
 0x262   :  { %v7156_v56 = vadd.f32 %v3159_v12, %v2944_v14  ;;  %5283 = vmatmul.msk.bf16.gmra.mxu1 %vm100_vm1, %v3617_v25  ;;  %v3578_v39 = vrot.slane %v3576_v55, 5  ;;  %v5358_v14 = vrot.slane %v4472_v42, 9  ;;  %v5459_v25 = vld [vmem:[#allocation2 + $0x1c] sm:$0x1] }
 0x263   :  { %v3161_v34 = vpop.f32.mrf.mxu3  ;;  %v2948_v16 = vpop.f32.mrf.mxu2  ;;  %v4525_v10 = vrot.slane %v5459_v25, 5  ;;  %v3324_v25 = vadd.f32 %v7049_v23, %v6953_v21 }
 0x264   :  { %v3579_v4 = vsel %vm5667_vm4, %v3574_v20, %v3578_v39 }
 0x265   :  { %v3609_v3 = vunpack.c.l.b16 %v3579_v4  ;;  %v4473_v4 = vld [vmem:[#allocation2 + $0x20] sm:$0xe] }
 0x266   :  { %5356 = vmatmul.msk.bf16.gmra.mxu0 %vm100_vm1, %v4374_v2  ;;  %v4521_v2 = vrot.slane %v5460_v50, 5  ;;  %v4475_v50 = vld [vmem:[#allocation2 + $0x30] sm:$0xe] }
 0x267   :  { %v2829_v12 = vpop.f32.mrf.mxu1  ;;  %v3618_v7 = vpack.c.b16 %v3610_v51, %v3609_v3  ;;  %v5360_v51 = vrot.slane %v4474_v26, 9 }
 0x268   :  { %v2946_v44 = vadd.f32 %v2945_v52, %v2829_v12  ;;  %5348 = vmatmul.msk.bf16.gmra.mxu3 %vm100_vm1, %v5340_v63  ;;  %v4522_v15 = vsel %vm6480_vm14, %v5357_v54, %v4521_v2  ;;  %v3322_v12 = vadd.f32 %v6994_v1, %v6921_v18  ;;  %v4476_v54 = vld [vmem:[#allocation2 + $0x38] sm:$0xe] }
 0x269   :  { %v4584_v20 = vunpack.c.l.b16 %v4522_v15  ;;  %v5362_v2 = vrot.slane %v4476_v54, 9 }
 0x26a   :  { %v7167_v41 = vadd.f32 %v3161_v34, %v2946_v44  ;;  %v4526_v34 = vsel %vm6480_vm14, %v5358_v14, %v4525_v10 }
 0x26b   :  { %v3164_v60 = vpop.f32.mrf.mxu3  ;;  %v2950_v52 = vpop.f32.mrf.mxu2  ;;  %v4585_v63 = vunpack.c.l.b16 %v4526_v34  ;;  %v3325_v34 = vadd.f32 %v7073_v5, %v6974_v32 }
 0x26d   :  { %v4600_v39 = vpack.c.b16 %v4585_v63, %v4584_v20  ;;  %v5361_v63 = vrot.slane %v4475_v50, 9 }
 0x26f   :  { %v2832_v13 = vpop.f32.mrf.mxu1 }
 0x270   :  { %v2949_v59 = vadd.f32 %v2948_v16, %v2832_v13  ;;  %v5461_v16 = vld [vmem:[#allocation2 + $0x2c] sm:$0x1]  ;;  %v3323_v13 = vadd.f32 %v7027_v43, %v6935_v22 }
 0x271   :  { %v4533_v3 = vrot.slane %v5461_v16, 5 }
 0x272   :  { %v7171_v47 = vadd.f32 %v3164_v60, %v2949_v59  ;;  %5284 = vmatmul.msk.bf16.gmra.mxu1 %vm100_vm1, %v3618_v7  ;;  %v5359_v59 = vrot.slane %v4473_v4, 9  ;;  %v5462_v7 = vld [vmem:[#allocation2 + $0x24] sm:$0x1]  ;;  %v3326_v4 = vadd.f32 %v7103_v38, %v6996_v40 }
 0x273   :  { %v3166_v17 = vpop.f32.mrf.mxu3  ;;  %v4529_v42 = vrot.slane %v5462_v7, 5  ;;  %v4534_v1 = vsel %vm6480_vm14, %v5360_v51, %v4533_v3  ;;  %v4477_v3 = vld [vmem:[#allocation2 + $0x40] sm:$0xe]  ;;  %v4545_v7 = vrot.slane %v6969_v28, 5  ;;  %v3328_v28 = vadd.f32 %v7147_v37, %v7041_v36 }
 0x274   :  { %v4587_v14 = vunpack.c.l.b16 %v4534_v1  ;;  %v4549_v1 = vrot.slane %v6971_v58, 5 }
 0x275   :  { %v4530_v24 = vsel %vm6480_vm14, %v5359_v59, %v4529_v42  ;;  %v5363_v59 = vrot.slane %v4477_v3, 9 }
 0x276   :  { %v4586_v10 = vunpack.c.l.b16 %v4530_v24  ;;  %v3327_v24 = vadd.f32 %v7120_v57, %v7019_v8  ;;  %v4480_v8 = vld [vmem:[#allocation2 + $0x68] sm:$0xe]  ;;  %v4479_v57 = vld [vmem:[#allocation2 + $0x60] sm:$0xe] }
 0x277   :  { %v2834_v19 = vpop.f32.mrf.mxu1 }
 0x278   :  { %v2951_v33 = vadd.f32 %v2950_v52, %v2834_v19  ;;  %v3302_v52 = vpop.f32.mrf.mxu0  ;;  %v4601_v43 = vpack.c.b16 %v4587_v14, %v4586_v10  ;;  %v4546_v14 = vsel %vm6480_vm14, %v5363_v59, %v4545_v7  ;;  %v4561_v7 = vrot.slane %v7057_v31, 5  ;;  %v4484_v31 = vld [vmem:[#allocation2 + $0x88] sm:$0xe] }
 0x279   :  { %v4590_v10 = vunpack.c.l.b16 %v4546_v14 }
 0x27a   :  { %v7176_v55 = vadd.f32 %v3166_v17, %v2951_v33  ;;  %v5463_v33 = vld [vmem:[#allocation2 + $0x3c] sm:$0x1] }
 0x27b   :  { %v4541_v17 = vrot.slane %v5463_v33, 5  ;;  %v4557_v33 = vrot.slane %v7009_v35, 5 }
 0x27f   :  { %v3655_v49 = vpop.f32.mrf.mxu1 }
 0x280   :  { %v7182_v44 = vadd.f32 %v3655_v49, %v3322_v12  ;;  %v5464_v12 = vld [vmem:[#allocation2 + $0x34] sm:$0x1]  ;;  %v3304_v20 = vpop.f32.mrf.mxu0  ;;  %v4542_v49 = vsel %vm6480_vm14, %v5362_v2, %v4541_v17  ;;  %v5366_v2 = vrot.slane %v4480_v8, 9  ;;  %v3329_v17 = vadd.f32 %v7160_v9, %v7065_v48 }
 0x281   :  { %v4537_v21 = vrot.slane %v5464_v12, 5  ;;  %v4589_v26 = vunpack.c.l.b16 %v4542_v49  ;;  %v4553_v12 = vrot.slane %v7012_v45, 5  ;;  %v4482_v45 = vld [vmem:[#allocation2 + $0x78] sm:$0xe]  ;;  %v3331_v3 = vadd.f32 %v3304_v20, %v7110_v11  ;;  %v4483_v20 = vld [vmem:[#allocation2 + $0x80] sm:$0xe] }
 0x282   :  { %5373 = vmatmul.msk.bf16.vlgmr.msra.gmra.mxu1 %vm100_vm1, %v4600_v39  ;;  %v4558_v37 = vsel %vm6480_vm14, %v5366_v2, %v4557_v33  ;;  %v4038_v33 = vpop.f32.mrf.mxu3 }
 0x283   :  { %v4538_v39 = vsel %vm6480_vm14, %v5361_v63, %v4537_v21  ;;  %v5365_v63 = vrot.slane %v4479_v57, 9  ;;  %v4593_v49 = vunpack.c.l.b16 %v4558_v37  ;;  %v5369_v57 = vrot.slane %v4483_v20, 9 }
 0x284   :  { %v4588_v51 = vunpack.c.l.b16 %v4538_v39  ;;  %v3330_v39 = vadd.f32 %v3302_v52, %v7083_v46 }
 0x285   :  { %v4554_v21 = vsel %vm6480_vm14, %v5365_v63, %v4553_v12 }
 0x286   :  { %v4602_v5 = vpack.c.b16 %v4589_v26, %v4588_v51  ;;  %v4592_v35 = vunpack.c.l.b16 %v4554_v21  ;;  %v4481_v51 = vld [vmem:[#allocation2 + $0x70] sm:$0xe] }
 0x287   :  { %v3657_v60 = vpop.f32.mrf.mxu1  ;;  %v5367_v59 = vrot.slane %v4481_v51, 9 }
 0x288   :  { %v7187_v18 = vadd.f32 %v3657_v60, %v3323_v13  ;;  %v4478_v13 = vld [vmem:[#allocation2 + $0x48] sm:$0xe]  ;;  %v3307_v60 = vpop.f32.mrf.mxu0  ;;  %v4604_v48 = vpack.c.b16 %v4593_v49, %v4592_v35  ;;  %v4486_v49 = vld [vmem:[#allocation2 + $0x98] sm:$0xe] }
 0x289   :  { %v5364_v42 = vrot.slane %v4478_v13, 9 }
 0x28f   :  { %v3660_v19 = vpop.f32.mrf.mxu1 }
 0x290   :  { %v7195_v22 = vadd.f32 %v3660_v19, %v3324_v25  ;;  %v4550_v25 = vsel %vm6480_vm14, %v5364_v42, %v4549_v1  ;;  %v4562_v1 = vsel %vm6480_vm14, %v5367_v59, %v4561_v7 }
 0x291   :  { %v4591_v19 = vunpack.c.l.b16 %v4550_v25  ;;  %v4594_v14 = vunpack.c.l.b16 %v4562_v1 }
 0x292   :  { %5374 = vmatmul.msk.bf16.gmra.mxu1 %vm100_vm1, %v4601_v43  ;;  %v3309_v43 = vpop.f32.mrf.mxu0 }
 0x293   :  { %v4603_v50 = vpack.c.b16 %v4591_v19, %v4590_v10  ;;  %v5370_v19 = vrot.slane %v4484_v31, 9 }
 0x297   :  { %v3662_v15 = vpop.f32.mrf.mxu1 }
 0x298   :  { %v7200_v23 = vadd.f32 %v3662_v15, %v3325_v34 }
 0x29a   :  { %v3312_v34 = vpop.f32.mrf.mxu0 }
 0x29b   :  { %v3334_v63 = vadd.f32 %v3312_v34, %v7156_v56 }
 0x29f   :  { %v3665_v16 = vpop.f32.mrf.mxu1 }
 0x2a0   :  { %v7208_v32 = vadd.f32 %v3665_v16, %v3326_v4  ;;  %v5368_v16 = vrot.slane %v4482_v45, 9  ;;  %v4581_v45 = vrot.slane %v7132_v30, 5 }
 0x2a2   :  { %5375 = vmatmul.msk.bf16.gmra.mxu1 %vm100_vm1, %v4602_v5  ;;  %v3314_v9 = vpop.f32.mrf.mxu0  ;;  %v4565_v5 = vrot.slane %v7052_v61, 5 }
 0x2a3   :  { %v3335_v56 = vadd.f32 %v3314_v9, %v7167_v41 }
 0x2a4   :  { %v4566_v52 = vsel %vm6480_vm14, %v5368_v16, %v4565_v5 }
 0x2a7   :  { %v3667_v40 = vpop.f32.mrf.mxu1 }
 0x2a8   :  { %v7215_v38 = vadd.f32 %v3667_v40, %v3327_v24  ;;  %v4595_v24 = vunpack.c.l.b16 %v4566_v52  ;;  %v3332_v40 = vadd.f32 %v3307_v60, %v7122_v6  ;;  %v4569_v6 = vrot.slane %v7095_v27, 5  ;;  %v4485_v27 = vld [vmem:[#allocation2 + $0x90] sm:$0xe] }
 0x2a9   :  { %v5371_v35 = vrot.slane %v4485_v27, 9 }
 0x2aa   :  { %v3317_v42 = vpop.f32.mrf.mxu0  ;;  %v4605_v11 = vpack.c.b16 %v4595_v24, %v4594_v14 }
 0x2af   :  { %v3670_v54 = vpop.f32.mrf.mxu1 }
 0x2b0   :  { %v7223_v58 = vadd.f32 %v3670_v54, %v3328_v28  ;;  %v4573_v28 = vrot.slane %v7091_v53, 5  ;;  %v3333_v54 = vadd.f32 %v3309_v43, %v7145_v0 }
 0x2b2   :  { %5376 = vmatmul.msk.bf16.gmra.mxu1 %vm100_vm1, %v4603_v50  ;;  %v3319_v10 = vpop.f32.mrf.mxu0  ;;  %v3888_v50 = vpop.f32.mrf.mxu2  ;;  %v4574_v2 = vsel %vm6480_vm14, %v5370_v19, %v4573_v28  ;;  %v7287_v19 = vld [vmem:[%s7387_s4] ss:$0 sm:$0xff] }
 0x2b3   :  { %v3337_v14 = vadd.f32 %v3319_v10, %v7176_v55 }
 0x2b7   :  { %v3672_v15 = vpop.f32.mrf.mxu1 }
 0x2b8   :  { %v7230_v36 = vadd.f32 %v3672_v15, %v3329_v17  ;;  %v4570_v17 = vsel %vm6480_vm14, %v5369_v57, %v4569_v6  ;;  %v4597_v15 = vunpack.c.l.b16 %v4574_v2 }
 0x2b9   :  { %v4596_v53 = vunpack.c.l.b16 %v4570_v17 }
 0x2ba   :  { %v4415_v12 = vpop.f32.mrf.mxu0  ;;  %v3890_v21 = vpop.f32.mrf.mxu2 }
 0x2bb   :  { %v4606_v37 = vpack.c.b16 %v4597_v15, %v4596_v53 }
 0x2bf   :  { %v3675_v26 = vpop.f32.mrf.mxu1 }
 0x2c0   :  { %v7237_v4 = vadd.f32 %v3675_v26, %v3330_v39  ;;  %v4040_v39 = vpop.f32.mrf.mxu3  ;;  %v4577_v26 = vrot.slane %v7130_v62, 5  ;;  %v3336_v62 = vadd.f32 %v3317_v42, %v7171_v47  ;;  %v3929_v47 = vadd.f32 %v3890_v21, %v7187_v18 }
 0x2c2   :  { %5377 = vmatmul.msk.bf16.gmra.mxu1 %vm100_vm1, %v4604_v48  ;;  %v5372_v48 = vrot.slane %v4486_v49, 9  ;;  %v4417_v16 = vpop.f32.mrf.mxu0  ;;  %v4578_v5 = vsel %vm6480_vm14, %v5371_v35, %v4577_v26 }
 0x2c3   :  { %v4598_v59 = vunpack.c.l.b16 %v4578_v5 }
 0x2c7   :  { %v3677_v13 = vpop.f32.mrf.mxu1 }
 0x2c8   :  { %v7243_v46 = vadd.f32 %v3677_v13, %v3331_v3  ;;  %v4582_v3 = vsel %vm6480_vm14, %v5372_v48, %v4581_v45  ;;  %v3893_v13 = vpop.f32.mrf.mxu2  ;;  %v4043_v52 = vpop.f32.mrf.mxu3 }
 0x2c9   :  { %v4599_v7 = vunpack.c.l.b16 %v4582_v3  ;;  %v3930_v57 = vadd.f32 %v3893_v13, %v7195_v22 }
 0x2ca   :  { %v4420_v9 = vpop.f32.mrf.mxu0 }
 0x2cb   :  { %v4607_v41 = vpack.c.b16 %v4599_v7, %v4598_v59  ;;  %v4080_v15 = vadd.f32 %v4043_v52, %v3930_v57 }
 0x2cd   :  { %v4457_v22 = vadd.f32 %v4420_v9, %v4080_v15 }
 0x2cf   :  { %v3680_v61 = vpop.f32.mrf.mxu1 }
 0x2d0   :  { %v7250_v25 = vadd.f32 %v3680_v61, %v3332_v40  ;;  %v3895_v24 = vpop.f32.mrf.mxu2  ;;  %v3928_v40 = vadd.f32 %v3888_v50, %v7182_v44  ;;  %v4079_v44 = vadd.f32 %v4040_v39, %v3929_v47 }
 0x2d2   :  { %5378 = vmatmul.msk.bf16.gmra.mxu1 %vm100_vm1, %v4605_v11  ;;  %v4045_v11 = vpop.f32.mrf.mxu3  ;;  %v4078_v31 = vadd.f32 %v4038_v33, %v3928_v40  ;;  %v4422_v20 = vpop.f32.mrf.mxu0  ;;  %v4456_v18 = vadd.f32 %v4417_v16, %v4079_v44 }
 0x2d4   :  { %v4455_v42 = vadd.f32 %v4415_v12, %v4078_v31 }
 0x2d7   :  { %v3682_v8 = vpop.f32.mrf.mxu1 }
 0x2d8   :  { %v7256_v60 = vadd.f32 %v3682_v8, %v3333_v54  ;;  %v3898_v28 = vpop.f32.mrf.mxu2 }
 0x2d9   :  { %v3932_v48 = vadd.f32 %v3898_v28, %v7208_v32 }
 0x2da   :  { %v4048_v10 = vpop.f32.mrf.mxu3  ;;  %v4425_v6 = vpop.f32.mrf.mxu0 }
 0x2db   :  { %v4082_v16 = vadd.f32 %v4048_v10, %v3932_v48 }
 0x2dd   :  { %v4459_v32 = vadd.f32 %v4425_v6, %v4082_v16 }
 0x2df   :  { %v3685_v0 = vpop.f32.mrf.mxu1 }
 0x2e0   :  { %v7263_v43 = vadd.f32 %v3685_v0, %v3334_v63  ;;  %v3900_v17 = vpop.f32.mrf.mxu2  ;;  %v3931_v0 = vadd.f32 %v3895_v24, %v7200_v23 }
 0x2e1   :  { %v3933_v7 = vadd.f32 %v3900_v17, %v7215_v38 }
 0x2e2   :  { %5379 = vmatmul.msk.bf16.gmra.mxu1 %vm100_vm1, %v4606_v37  ;;  %v4050_v12 = vpop.f32.mrf.mxu3  ;;  %v4427_v27 = vpop.f32.mrf.mxu0  ;;  %v4081_v49 = vadd.f32 %v4045_v11, %v3931_v0 }
 0x2e4   :  { %v4458_v23 = vadd.f32 %v4422_v20, %v4081_v49 }
 0x2e7   :  { %v3687_v34 = vpop.f32.mrf.mxu1 }
 0x2e8   :  { %v7269_v51 = vadd.f32 %v3687_v34, %v3335_v56  ;;  %v3903_v35 = vpop.f32.mrf.mxu2 }
 0x2ea   :  { %v4053_v45 = vpop.f32.mrf.mxu3  ;;  %v4430_v3 = vpop.f32.mrf.mxu0 }
 0x2ef   :  { %v3690_v1 = vpop.f32.mrf.mxu1 }
 0x2f0   :  { %v7276_v30 = vadd.f32 %v3690_v1, %v3336_v62  ;;  %v3905_v59 = vpop.f32.mrf.mxu2 }
 0x2f2   :  { %5380 = vmatmul.msk.bf16.gmra.mxu1 %vm100_vm1, %v4607_v41  ;;  %v4055_v1 = vpop.f32.mrf.mxu3  ;;  %v4083_v41 = vadd.f32 %v4050_v12, %v3933_v7  ;;  %v4432_v40 = vpop.f32.mrf.mxu0 }
 0x2f4   :  { %v4460_v38 = vadd.f32 %v4427_v27, %v4083_v41 }
 0x2f7   :  { %v3692_v29 = vpop.f32.mrf.mxu1 }
 0x2f8   :  { %v7281_v61 = vadd.f32 %v3692_v29, %v3337_v14  ;;  %v3934_v14 = vadd.f32 %v3903_v35, %v7223_v58  ;;  %v3908_v29 = vpop.f32.mrf.mxu2 }
 0x2fa   :  { %v4084_v20 = vadd.f32 %v4053_v45, %v3934_v14 }
 0x2fc   :  { %v4461_v58 = vadd.f32 %v4430_v3, %v4084_v20 }
 0x2ff   :  { %v4644_v54 = vpop.f32.mrf.mxu1 }
 0x300   :  { %v4684_v8 = vadd.f32 %v4644_v54, %v4455_v42  ;;  %v4058_v42 = vpop.f32.mrf.mxu3  ;;  %v3935_v54 = vadd.f32 %v3905_v59, %v7230_v36  ;;  %v3910_v10 = vpop.f32.mrf.mxu2 }
 0x302   :  { %v4704_v55 = vadd.f32 %v7287_v19, %v4684_v8  ;;  %v4435_v8 = vpop.f32.mrf.mxu0 }
 0x304   :  { %v4720_v50 = vmax.f32 %v4704_v55, 0.0 }
 0x306   :  { %4737 = vst.msk [vmem:[%s7388_s5] sm:$0xff] %vm4736_vm15, %v4720_v50  ;;  %v4085_v50 = vadd.f32 %v4055_v1, %v3935_v54 }
 0x307   :  { %v4646_v2 = vpop.f32.mrf.mxu1 }
 0x308   :  { %v4685_v33 = vadd.f32 %v4646_v2, %v4456_v18  ;;  %v4060_v6 = vpop.f32.mrf.mxu3  ;;  %v3936_v2 = vadd.f32 %v3908_v29, %v7237_v4  ;;  %v4462_v36 = vadd.f32 %v4432_v40, %v4085_v50  ;;  %v3913_v12 = vpop.f32.mrf.mxu2 }
 0x30a   :  { %v4705_v63 = vadd.f32 %v7287_v19, %v4685_v33  ;;  %v4437_v15 = vpop.f32.mrf.mxu0 }
 0x30c   :  { %v4721_v53 = vmax.f32 %v4705_v63, 0.0  ;;  %v4086_v63 = vadd.f32 %v4058_v42, %v3936_v2 }
 0x30e   :  { %4738 = vst.msk [vmem:[%s7388_s5 + $0x8] sm:$0xff] %vm4736_vm15, %v4721_v53  ;;  %v4463_v4 = vadd.f32 %v4435_v8, %v4086_v63 }
 0x30f   :  { %v4649_v37 = vpop.f32.mrf.mxu1 }
 0x310   :  { %v4686_v21 = vadd.f32 %v4649_v37, %v4457_v22  ;;  %v3937_v22 = vadd.f32 %v3910_v10, %v7243_v46  ;;  %v4063_v37 = vpop.f32.mrf.mxu3  ;;  %v3915_v48 = vpop.f32.mrf.mxu2 }
 0x311   :  { %v3939_v59 = vadd.f32 %v3915_v48, %v7256_v60 }
 0x312   :  { %v4706_v39 = vadd.f32 %v7287_v19, %v4686_v21  ;;  %v4087_v49 = vadd.f32 %v4060_v6, %v3937_v22  ;;  %v4440_v35 = vpop.f32.mrf.mxu0 }
 0x314   :  { %v4722_v26 = vmax.f32 %v4706_v39, 0.0  ;;  %v4464_v46 = vadd.f32 %v4437_v15, %v4087_v49 }
 0x316   :  { %4739 = vst.msk [vmem:[%s7388_s5 + $0x10] sm:$0xff] %vm4736_vm15, %v4722_v26 }
 0x317   :  { %v4651_v56 = vpop.f32.mrf.mxu1 }
 0x318   :  { %v4687_v34 = vadd.f32 %v4651_v56, %v4458_v23  ;;  %v3938_v23 = vadd.f32 %v3913_v12, %v7250_v25  ;;  %v3918_v7 = vpop.f32.mrf.mxu2 }
 0x31a   :  { %v4707_v5 = vadd.f32 %v7287_v19, %v4687_v34  ;;  %v4065_v34 = vpop.f32.mrf.mxu3  ;;  %v4088_v16 = vadd.f32 %v4063_v37, %v3938_v23 }
 0x31c   :  { %v4723_v13 = vmax.f32 %v4707_v5, 0.0  ;;  %v4465_v25 = vadd.f32 %v4440_v35, %v4088_v16 }
 0x31e   :  { %4740 = vst.msk [vmem:[%s7388_s5 + $0x18] sm:$0xff] %vm4736_vm15, %v4723_v13  ;;  %v4442_v13 = vpop.f32.mrf.mxu0 }
 0x31f   :  { %v4654_v62 = vpop.f32.mrf.mxu1 }
 0x320   :  { %v4688_v52 = vadd.f32 %v4654_v62, %v4459_v32  ;;  %v3920_v29 = vpop.f32.mrf.mxu2 }
 0x321   :  { %v3941_v42 = vadd.f32 %v3920_v29, %v7269_v51 }
 0x322   :  { %v4708_v9 = vadd.f32 %v7287_v19, %v4688_v52  ;;  %v4089_v52 = vadd.f32 %v4065_v34, %v3939_v59  ;;  %v4068_v41 = vpop.f32.mrf.mxu3 }
 0x324   :  { %v4724_v24 = vmax.f32 %v4708_v9, 0.0  ;;  %v4466_v60 = vadd.f32 %v4442_v13, %v4089_v52 }
 0x326   :  { %4741 = vst.msk [vmem:[%s7388_s5 + $0x20] sm:$0xff] %vm4736_vm15, %v4724_v24  ;;  %v3940_v24 = vadd.f32 %v3918_v7, %v7263_v43  ;;  %v4445_v40 = vpop.f32.mrf.mxu0 }
 0x327   :  { %v4656_v11 = vpop.f32.mrf.mxu1 }
 0x328   :  { %v4689_v31 = vadd.f32 %v4656_v11, %v4460_v38  ;;  %v4090_v11 = vadd.f32 %v4068_v41, %v3940_v24 }
 0x32a   :  { %v4709_v47 = vadd.f32 %v7287_v19, %v4689_v31  ;;  %v4467_v43 = vadd.f32 %v4445_v40, %v4090_v11 }
 0x32c   :  { %v4725_v28 = vmax.f32 %v4709_v47, 0.0  ;;  %v4070_v47 = vpop.f32.mrf.mxu3 }
 0x32d   :  { %v4091_v8 = vadd.f32 %v4070_v47, %v3941_v42 }
 0x32e   :  { %4742 = vst.msk [vmem:[%s7388_s5 + $0x28] sm:$0xff] %vm4736_vm15, %v4725_v28 }
 0x32f   :  { %v4659_v44 = vpop.f32.mrf.mxu1 }
 0x330   :  { %v4690_v55 = vadd.f32 %v4659_v44, %v4461_v58  ;;  %v4447_v58 = vpop.f32.mrf.mxu0 }
 0x331   :  { %v4468_v51 = vadd.f32 %v4447_v58, %v4091_v8 }
 0x332   :  { %v4710_v57 = vadd.f32 %v7287_v19, %v4690_v55  ;;  %v3923_v55 = vpop.f32.mrf.mxu2 }
 0x333   :  { %v3942_v50 = vadd.f32 %v3923_v55, %v7276_v30 }
 0x334   :  { %v4726_v18 = vmax.f32 %v4710_v57, 0.0  ;;  %v4073_v57 = vpop.f32.mrf.mxu3 }
 0x335   :  { %v4092_v2 = vadd.f32 %v4073_v57, %v3942_v50 }
 0x336   :  { %4743 = vst.msk [vmem:[%s7388_s5 + $0x30] sm:$0xff] %vm4736_vm15, %v4726_v18 }
 0x337   :  { %v4661_v33 = vpop.f32.mrf.mxu1 }
 0x338   :  { %v4691_v17 = vadd.f32 %v4661_v33, %v4462_v36  ;;  %v4450_v33 = vpop.f32.mrf.mxu0 }
 0x339   :  { %v4469_v30 = vadd.f32 %v4450_v33, %v4092_v2 }
 0x33a   :  { %v4711_v53 = vadd.f32 %v7287_v19, %v4691_v17  ;;  %v3925_v15 = vpop.f32.mrf.mxu2 }
 0x33b   :  { %v3943_v63 = vadd.f32 %v3925_v15, %v7281_v61 }
 0x33c   :  { %v4727_v0 = vmax.f32 %v4711_v53, 0.0 }
 0x33e   :  { %4744 = vst.msk [vmem:[%s7388_s5 + $0x38] sm:$0xff] %vm4736_vm15, %v4727_v0  ;;  %v4075_v0 = vpop.f32.mrf.mxu3 }
 0x33f   :  { %v4664_v21 = vpop.f32.mrf.mxu1  ;;  %v4093_v22 = vadd.f32 %v4075_v0, %v3943_v63 }
 0x340   :  { %v4692_v27 = vadd.f32 %v4664_v21, %v4463_v4  ;;  %v4452_v21 = vpop.f32.mrf.mxu0 }
 0x341   :  { %v4470_v61 = vadd.f32 %v4452_v21, %v4093_v22 }
 0x342   :  { %v4712_v39 = vadd.f32 %v7287_v19, %v4692_v27 }
 0x344   :  { %v4728_v26 = vmax.f32 %v4712_v39, 0.0 }
 0x346   :  { %4745 = vst.msk [vmem:[%s7388_s5 + $0x40] sm:$0xff] %vm4736_vm15, %v4728_v26 }
 0x347   :  { %v4666_v45 = vpop.f32.mrf.mxu1 }
 0x348   :  { %v4693_v56 = vadd.f32 %v4666_v45, %v4464_v46 }
 0x34a   :  { %v4713_v5 = vadd.f32 %v7287_v19, %v4693_v56 }
 0x34c   :  { %v4729_v3 = vmax.f32 %v4713_v5, 0.0 }
 0x34e   :  { %4746 = vst.msk [vmem:[%s7388_s5 + $0x48] sm:$0xff] %vm4736_vm15, %v4729_v3 }
 0x34f   :  { %v4669_v32 = vpop.f32.mrf.mxu1 }
 0x350   :  { %v4694_v62 = vadd.f32 %v4669_v32, %v4465_v25 }
 0x352   :  { %v4714_v1 = vadd.f32 %v7287_v19, %v4694_v62 }
 0x354   :  { %v4730_v9 = vmax.f32 %v4714_v1, 0.0 }
 0x356   :  { %4747 = vst.msk [vmem:[%s7388_s5 + $0x50] sm:$0xff] %vm4736_vm15, %v4730_v9 }
 0x357   :  { %v4671_v14 = vpop.f32.mrf.mxu1 }
 0x358   :  { %v4695_v38 = vadd.f32 %v4671_v14, %v4466_v60 }
 0x35a   :  { %v4715_v31 = vadd.f32 %v7287_v19, %v4695_v38 }
 0x35c   :  { %v4731_v20 = vmax.f32 %v4715_v31, 0.0 }
 0x35e   :  { %4748 = vst.msk [vmem:[%s7388_s5 + $0x58] sm:$0xff] %vm4736_vm15, %v4731_v20 }
 0x35f   :  { %v4674_v28 = vpop.f32.mrf.mxu1 }
 0x360   :  { %v4696_v54 = vadd.f32 %v4674_v28, %v4467_v43 }
 0x362   :  { %v4716_v44 = vadd.f32 %v7287_v19, %v4696_v54 }
 0x364   :  { %v4732_v10 = vmax.f32 %v4716_v44, 0.0 }
 0x366   :  { %4749 = vst.msk [vmem:[%s7388_s5 + $0x60] sm:$0xff] %vm4736_vm15, %v4732_v10 }
 0x367   :  { %v4676_v18 = vpop.f32.mrf.mxu1 }
 0x368   :  { %v4697_v6 = vadd.f32 %v4676_v18, %v4468_v51 }
 0x36a   :  { %v4717_v36 = vadd.f32 %v7287_v19, %v4697_v6 }
 0x36c   :  { %v4733_v17 = vmax.f32 %v4717_v36, 0.0 }
 0x36e   :  { %4750 = vst.msk [vmem:[%s7388_s5 + $0x68] sm:$0xff] %vm4736_vm15, %v4733_v17 }
 0x36f   :  { %v4679_v53 = vpop.f32.mrf.mxu1 }
 0x370   :  { %v4698_v12 = vadd.f32 %v4679_v53, %v4469_v30 }
 0x372   :  { %v4718_v4 = vadd.f32 %v7287_v19, %v4698_v12 }
 0x374   :  { %v4734_v37 = vmax.f32 %v4718_v4, 0.0 }
 0x376   :  { %4751 = vst.msk [vmem:[%s7388_s5 + $0x70] sm:$0xff] %vm4736_vm15, %v4734_v37 }
 0x377   :  { %v4681_v27 = vpop.f32.mrf.mxu1 }
 0x378   :  { %v4699_v49 = vadd.f32 %v4681_v27, %v4470_v61 }
 0x37a   :  { %v4719_v39 = vadd.f32 %v7287_v19, %v4699_v49 }
 0x37c   :  { %v4735_v35 = vmax.f32 %v4719_v39, 0.0 }
 0x37e   :  { %4752 = vst.msk [vmem:[%s7388_s5 + $0x78] sm:$0xff] %vm4736_vm15, %v4735_v35 }

</bundles_post_ra>
